<compile_context>
chip_gen: v6e
topology: v6e:2x2x1
jax: 0.10.0
libtpu: 0.0.40
codegen_flags: <defaults>
</compile_context>

<pallas_src>
import math

import numpy as np
import jax
import jax.numpy as jnp
from jax.experimental import pallas as pl
from jax.experimental.pallas import tpu as pltpu


# ----------------------------------------------------------------------------
# In-kernel helpers
# ----------------------------------------------------------------------------
def _erf_f32(x):
    """f32 erf via the standard Eigen/XLA rational polynomial (erf ~ x*P(x^2)/Q(x^2))."""
    alpha = (-2.72614225801306e-10, 2.77068142495902e-08, -2.10102402082508e-06,
             -5.69250639462346e-05, -7.34990630326855e-04, -2.95459980854025e-03,
             -1.60960333262415e-02)
    beta = (-1.45660718464996e-05, -2.13374055278905e-04, -1.68282697438203e-03,
            -7.37332916720468e-03, -1.42647390514189e-02)
    x = jnp.clip(x, -4.0, 4.0)
    x2 = x * x
    p = jnp.full_like(x, alpha[0])
    for a in alpha[1:]:
        p = p * x2 + a
    q = jnp.full_like(x, beta[0])
    for b in beta[1:]:
        q = q * x2 + b
    # Divide on the EUP (separate VLIW slot) instead of the VALU.
    return x * p * pl.reciprocal(q, approx=True)


def _gelu_exact(x):
    # nn.GELU() default (exact, erf-based), computed in f32.
    return 0.5 * x * (1.0 + _erf_f32(x * (1.0 / math.sqrt(2.0))))


# ----------------------------------------------------------------------------
# Deterministic parameter setup (emulates freeze_conv.__init__)
# ----------------------------------------------------------------------------
def init_freeze_conv(key, in_planes, out_planes, ksize):
    kw, kres = jax.random.split(key)
    fan_in = in_planes * ksize * ksize
    bound = 1.0 / math.sqrt(fan_in)
    # PyTorch weight layout: (Cout, Cin, kh, kw)
    weight = jax.random.uniform(kw, (out_planes, in_planes, ksize, ksize),
                                jnp.float32, -bound, bound)
    scale = 1
    params = {"weight": weight, "residuals": [], "scores": []}
    keys = jax.random.split(kres, 3)
    for i in range(3):
        ksp, kc1, kc2 = jax.random.split(keys[i], 3)
        residual = weight  # B{i+1}_residual = self.weight.clone()
        space_score = jax.random.uniform(ksp, (ksize, ksize), jnp.float32)
        if out_planes >= 3 and in_planes >= 3:
            cs1 = jax.random.uniform(kc1, (out_planes // scale, in_planes // scale),
                                     jnp.float32)
            cs2 = jax.random.uniform(kc2, (scale, scale), jnp.float32)
            channel_score = jnp.einsum('ab,cd->acbd', cs1, cs2).reshape(
                out_planes, in_planes)
        else:
            channel_score = jax.random.uniform(kc1, (out_planes, in_planes),
                                               jnp.float32)
        score = channel_score[:, :, None, None] * space_score[None, None, :, :]
        thr = jnp.mean(score) + 0.5 * jnp.std(score, ddof=1)  # torch.std unbiased
        binary = (score >= thr).astype(jnp.float32)            # BinarizerFn forward
        params["residuals"].append(residual)
        params["scores"].append(binary)
    return params


def effective_weight(params, flag):
    # flag[i]*conv(x, w_i) summed == conv(x, sum_i flag[i]*w_i): conv is linear
    # in its weights, so the 3-way masked mix is folded up front.
    w = params["weight"]
    w_eff = jnp.zeros_like(w)
    for i in range(3):
        s = params["scores"][i]
        wi = s * w + (1.0 - s) * params["residuals"][i]
        w_eff = w_eff + flag[i] * wi
    return w_eff  # (Cout, Cin, kh, kw)


def init_rdblock(key, in_channel, out_channel, nConvLayers=3):
    G0 = G = in_channel
    keys = jax.random.split(key, nConvLayers + 1)
    params = {}
    for i in range(nConvLayers):
        params[f"conv{i}"] = init_freeze_conv(keys[i], G0 + i * G, G, 3)
    params["lff"] = init_freeze_conv(keys[-1], G0 + nConvLayers * G, out_channel, 1)
    return params


# ----------------------------------------------------------------------------
# Fused RDBlock forward (NCHW in / NCHW out, like the PyTorch module)
# ----------------------------------------------------------------------------
def rdblock_forward(params, x_nchw, flag=(1.0, 0.0, 0.0), images_per_step=None):
    N, C, H, W = x_nchw.shape
    Hp, Wp = H + 2, W + 2
    HWp = H * Wp             # flattened per-image conv-output length (cols W, W+1 junk)
    FLAT = Hp * Wp + 2       # per-image padded-flat length (+2 so tap (2,2) stays in-bounds)

    def conv_w(p):
        w = effective_weight(p, flag)                       # (Cout, Cin, 3, 3)
        co, ci = w.shape[0], w.shape[1]
        # -> (Cout, (kh, kw, Cin)) so K matches the in-kernel tap-concat order.
        return jnp.transpose(w, (0, 2, 3, 1)).reshape(co, 9 * ci)

    w0 = conv_w(params["conv0"])                            # (C, 9C)
    w1 = conv_w(params["conv1"])                            # (C, 18C)
    w2 = conv_w(params["conv2"])                            # (C, 27C)
    wlff = effective_weight(params["lff"], flag)[:, :, 0, 0]  # (Cout, 4C)
    Cout = wlff.shape[0]
    assert Cout == C, "RDBlock residual add requires out_channel == in_channel"

    # ---- images per grid step (lane-batched). Keep >= 2 parallel steps so both
    # v7x TensorCores get work; v5e/v6e are indifferent.
    if images_per_step is None:
        NB = N // 2 if (N >= 2 and N % 2 == 0) else 1
    else:
        NB = images_per_step
        assert N % NB == 0

    def vmem_need(nb):
        flat_nb = nb * FLAT
        l_nb = (nb - 1) * FLAT + HWp
        return 4 * (4 * C * flat_nb            # feat scratch
                    + 27 * C * l_nb            # taps temp (largest layer)
                    + 2 * C * l_nb             # y / g temps
                    + 2 * nb * C * H * W       # input block (double-buffered)
                    + 2 * nb * Cout * HWp)     # output block (double-buffered)

    while NB > 1 and (N % NB != 0 or vmem_need(NB) > 8 * 2**20):
        NB -= 1
    num_steps = N // NB

    NBFLAT = NB * FLAT
    L = (NB - 1) * FLAT + HWp   # matmul lane width == masked "concat"-write length

    def kernel(x_ref, w0_ref, w1_ref, w2_ref, wlff_ref, o_ref, feat_ref):
        f32 = jnp.float32
        # --- zero ONLY the regions never overwritten this step (not the whole scratch).
        # x channels: pad ring must be zero; interior is rewritten just below.
        feat_ref[pl.ds(0, C), pl.ds(0, NBFLAT)] = jnp.zeros((C, NBFLAT), f32)
        # conv-output channels: the masked writes cover [Wp+1, Wp+1+L); only the
        # head and tail (Wp+1 lanes each) escape them.
        feat_ref[pl.ds(C, 3 * C), pl.ds(0, Wp + 1)] = jnp.zeros((3 * C, Wp + 1), f32)
        feat_ref[pl.ds(C, 3 * C), pl.ds(Wp + 1 + L, Wp + 1)] = (
            jnp.zeros((3 * C, Wp + 1), f32))

        # --- scatter the unpadded input rows into the padded-flat interior
        # (replaces the old host-side jnp.pad HBM pass).
        xb = x_ref[...].astype(f32)                       # (NB, C, H*W)
        for b in range(NB):
            xi = xb[b]                                    # (C, H*W)
            for r in range(H):
                feat_ref[pl.ds(0, C),
                         pl.ds(b * FLAT + (r + 1) * Wp + 1, W)] = (
                             xi[:, r * W:(r + 1) * W])

        # --- validity mask over the L output lanes (hoisted out of the conv loop).
        lane = jax.lax.broadcasted_iota(jnp.int32, (1, L), 1)
        q = lane % FLAT
        ok = ((q < HWp) & ((q % Wp) < W)).astype(f32)
        ok_c = jnp.broadcast_to(ok, (C, L))               # broadcast once, reuse 3x

        w_refs = (w0_ref, w1_ref, w2_ref)
        for i in range(3):                  # RDB_Conv x3: 3x3 conv + GELU + concat
            cin = (i + 1) * C
            fs = feat_ref[pl.ds(0, cin), :]               # (cin, NB*FLAT)
            # Tap (kh, kw) == one contiguous lane shift by kh*Wp+kw for the whole chunk.
            taps = jnp.concatenate(
                [fs[:, kh * Wp + kw: kh * Wp + kw + L]
                 for kh in range(3) for kw in range(3)], axis=0)   # (9*cin, L)
            y = jnp.dot(w_refs[i][...], taps, preferred_element_type=f32)
            # Junk / inter-image lanes -> 0; they land exactly on pad positions.
            g = _gelu_exact(y) * ok_c
            # "concat": this layer's output becomes the next C padded channels.
            feat_ref[pl.ds(cin, C), pl.ds(Wp + 1, L)] = g

        # LFF 1x1 conv over all 4C channels + residual add with x, fused.
        allf = feat_ref[...]                               # (4C, NB*FLAT)
        lff_in = allf[:, Wp + 1: Wp + 1 + L]
        res = allf[0:C, Wp + 1: Wp + 1 + L]                # original x interior
        out = jnp.dot(wlff_ref[...], lff_in, preferred_element_type=f32) + res
        for b in range(NB):
            o_ref[b] = out[:, b * FLAT: b * FLAT + HWp].astype(o_ref.dtype)

    flops = 2 * N * H * W * (sum(C * 9 * (i + 1) * C for i in range(3)) + Cout * 4 * C)
    cost = pl.CostEstimate(
        flops=int(flops),
        transcendentals=int(3 * N * C * H * W),
        bytes_accessed=int(4 * (x_nchw.size + N * Cout * HWp
                                + w0.size + w1.size + w2.size + wlff.size)))

    out_flat = pl.pallas_call(
        kernel,
        out_shape=jax.ShapeDtypeStruct((N, Cout, HWp), x_nchw.dtype),
        grid=(num_steps,),
        in_specs=[
            pl.BlockSpec((NB, C, H * W), lambda n: (n, 0, 0)),
            pl.BlockSpec((C, 9 * C), lambda n: (0, 0)),
            pl.BlockSpec((C, 18 * C), lambda n: (0, 0)),
            pl.BlockSpec((C, 27 * C), lambda n: (0, 0)),
            pl.BlockSpec((Cout, 4 * C), lambda n: (0, 0)),
        ],
        out_specs=pl.BlockSpec((NB, Cout, HWp), lambda n: (n, 0, 0)),
        scratch_shapes=[pltpu.VMEM((4 * C, NBFLAT), jnp.float32)],
        compiler_params=pltpu.CompilerParams(
            dimension_semantics=("parallel",),
            vmem_limit_bytes=int(min(max(2 * vmem_need(NB), 32 * 2**20), 48 * 2**20))),
        cost_estimate=cost,
    )(x_nchw.reshape(N, C, H * W), w0, w1, w2, wlff)

    # Output comes back as (N, Cout, H, Wp): dropping the 2 junk columns per row
    # is a plain slice that XLA can fuse into the consumer.
    return out_flat.reshape(N, Cout, H, Wp)[:, :, :, :W]


# ----------------------------------------------------------------------------
# Plain-JAX reference (no Pallas) for a sanity check.
# ----------------------------------------------------------------------------
def reference_forward(params, x_nchw, flag=(1.0, 0.0, 0.0)):
    def conv2d(x, w, pad):
        return jax.lax.conv_general_dilated(
            x, w, (1, 1), [(pad, pad), (pad, pad)],
            dimension_numbers=("NCHW", "OIHW", "NCHW"))

    feat = x_nchw
    for i in range(3):
        w = effective_weight(params[f"conv{i}"], flag)
        out = jax.nn.gelu(conv2d(feat, w, 1), approximate=False)
        feat = jnp.concatenate([feat, out], axis=1)
    w = effective_weight(params["lff"], flag)
    return conv2d(feat, w, 0) + x_nchw


if __name__ == "__main__":
    key = jax.random.PRNGKey(0)
    kx, kp = jax.random.split(key)

    N, C, H, W = 4, 4, 16, 16           # RDBlock(in_channel=4, out_channel=4)
    x = jax.random.normal(kx, (N, C, H, W), jnp.float32)
    params = init_rdblock(kp, C, C, nConvLayers=3)

    y = rdblock_forward(params, x, flag=(1.0, 0.0, 0.0))   # 2 parallel steps, NB=2 each
    y = jax.block_until_ready(y)
    assert y.shape == (N, C, H, W)

    y_ref = reference_forward(params, x, flag=(1.0, 0.0, 0.0))
    if not np.allclose(np.asarray(y), np.asarray(y_ref), rtol=2e-3, atol=2e-3):
        raise AssertionError("Pallas RDBlock output mismatches JAX reference")

    print("KERNEL_OK")
</pallas_src>

<mosaic_0001>
module attributes {stable_mosaic.version = 11 : i64} {
  func.func @kernel(%arg0: i32, %arg1: memref<2x4x256xf32, #tpu.memory_space<vmem>>, %arg2: memref<4x36xf32, #tpu.memory_space<vmem>>, %arg3: memref<4x72xf32, #tpu.memory_space<vmem>>, %arg4: memref<4x108xf32, #tpu.memory_space<vmem>>, %arg5: memref<4x16xf32, #tpu.memory_space<vmem>>, %arg6: memref<2x4x288xf32, #tpu.memory_space<vmem>>, %arg7: memref<16x652xf32, #tpu.memory_space<vmem>>) attributes {dimension_semantics = [#tpu.dimension_semantics<parallel>], iteration_bounds = array<i64: 2>, scalar_prefetch = 0 : i64, scratch_operands = 1 : i64, tpu.core_type = #tpu.core_type<tc>, window_params = [{transform_indices = @transform_0, window_bounds = array<i64: 2, 4, 256>}, {pipeline_mode = #tpu.pipeline_mode<synchronous>, transform_indices = @transform_1, window_bounds = array<i64: 4, 36>}, {pipeline_mode = #tpu.pipeline_mode<synchronous>, transform_indices = @transform_2, window_bounds = array<i64: 4, 72>}, {pipeline_mode = #tpu.pipeline_mode<synchronous>, transform_indices = @transform_3, window_bounds = array<i64: 4, 108>}, {pipeline_mode = #tpu.pipeline_mode<synchronous>, transform_indices = @transform_4, window_bounds = array<i64: 4, 16>}, {transform_indices = @transform_5, window_bounds = array<i64: 2, 4, 288>}]} {
    %cst = arith.constant 0.000000e+00 : f32
    %0 = vector.broadcast %cst : f32 to vector<4x652xf32>
    %c0 = arith.constant 0 : index
    %c0_0 = arith.constant 0 : index
    %1 = vector.load %arg7[%c0, %c0_0] : memref<16x652xf32, #tpu.memory_space<vmem>>, vector<4x652xf32>
    tpu.vector_store %arg7[%c0, %c0_0], %0 {strides = array<i32>} : memref<16x652xf32, #tpu.memory_space<vmem>>, vector<4x652xf32>,
    %cst_1 = arith.constant 0.000000e+00 : f32
    %2 = vector.broadcast %cst_1 : f32 to vector<12x19xf32>
    %c4 = arith.constant 4 : index
    %c0_2 = arith.constant 0 : index
    %3 = vector.load %arg7[%c4, %c0_2] : memref<16x652xf32, #tpu.memory_space<vmem>>, vector<12x19xf32>
    tpu.vector_store %arg7[%c4, %c0_2], %2 {strides = array<i32>} : memref<16x652xf32, #tpu.memory_space<vmem>>, vector<12x19xf32>,
    %cst_3 = arith.constant 0.000000e+00 : f32
    %4 = vector.broadcast %cst_3 : f32 to vector<12x19xf32>
    %c4_4 = arith.constant 4 : index
    %c633 = arith.constant 633 : index
    %5 = vector.load %arg7[%c4_4, %c633] : memref<16x652xf32, #tpu.memory_space<vmem>>, vector<12x19xf32>
    tpu.vector_store %arg7[%c4_4, %c633], %4 {strides = array<i32>} : memref<16x652xf32, #tpu.memory_space<vmem>>, vector<12x19xf32>,
    %c0_5 = arith.constant 0 : index
    %c0_6 = arith.constant 0 : index
    %c0_7 = arith.constant 0 : index
    %6 = vector.load %arg1[%c0_5, %c0_6, %c0_7] : memref<2x4x256xf32, #tpu.memory_space<vmem>>, vector<2x4x256xf32>
    %7 = vector.extract_strided_slice %6 {offsets = [0, 0, 0], sizes = [1, 4, 256], strides = [1, 1, 1]} : vector<2x4x256xf32> to vector<1x4x256xf32>
    %8 = vector.shape_cast %7 : vector<1x4x256xf32> to vector<4x256xf32>
    %9 = vector.extract_strided_slice %8 {offsets = [0, 0], sizes = [4, 16], strides = [1, 1]} : vector<4x256xf32> to vector<4x16xf32>
    %c0_8 = arith.constant 0 : index
    %c19 = arith.constant 19 : index
    %10 = vector.load %arg7[%c0_8, %c19] : memref<16x652xf32, #tpu.memory_space<vmem>>, vector<4x16xf32>
    tpu.vector_store %arg7[%c0_8, %c19], %9 {strides = array<i32>} : memref<16x652xf32, #tpu.memory_space<vmem>>, vector<4x16xf32>,
    %11 = vector.extract_strided_slice %8 {offsets = [0, 16], sizes = [4, 16], strides = [1, 1]} : vector<4x256xf32> to vector<4x16xf32>
    %c0_9 = arith.constant 0 : index
    %c37 = arith.constant 37 : index
    %12 = vector.load %arg7[%c0_9, %c37] : memref<16x652xf32, #tpu.memory_space<vmem>>, vector<4x16xf32>
    tpu.vector_store %arg7[%c0_9, %c37], %11 {strides = array<i32>} : memref<16x652xf32, #tpu.memory_space<vmem>>, vector<4x16xf32>,
    %13 = vector.extract_strided_slice %8 {offsets = [0, 32], sizes = [4, 16], strides = [1, 1]} : vector<4x256xf32> to vector<4x16xf32>
    %c0_10 = arith.constant 0 : index
    %c55 = arith.constant 55 : index
    %14 = vector.load %arg7[%c0_10, %c55] : memref<16x652xf32, #tpu.memory_space<vmem>>, vector<4x16xf32>
    tpu.vector_store %arg7[%c0_10, %c55], %13 {strides = array<i32>} : memref<16x652xf32, #tpu.memory_space<vmem>>, vector<4x16xf32>,
    %15 = vector.extract_strided_slice %8 {offsets = [0, 48], sizes = [4, 16], strides = [1, 1]} : vector<4x256xf32> to vector<4x16xf32>
    %c0_11 = arith.constant 0 : index
    %c73 = arith.constant 73 : index
    %16 = vector.load %arg7[%c0_11, %c73] : memref<16x652xf32, #tpu.memory_space<vmem>>, vector<4x16xf32>
    tpu.vector_store %arg7[%c0_11, %c73], %15 {strides = array<i32>} : memref<16x652xf32, #tpu.memory_space<vmem>>, vector<4x16xf32>,
    %17 = vector.extract_strided_slice %8 {offsets = [0, 64], sizes = [4, 16], strides = [1, 1]} : vector<4x256xf32> to vector<4x16xf32>
    %c0_12 = arith.constant 0 : index
    %c91 = arith.constant 91 : index
    %18 = vector.load %arg7[%c0_12, %c91] : memref<16x652xf32, #tpu.memory_space<vmem>>, vector<4x16xf32>
    tpu.vector_store %arg7[%c0_12, %c91], %17 {strides = array<i32>} : memref<16x652xf32, #tpu.memory_space<vmem>>, vector<4x16xf32>,
    %19 = vector.extract_strided_slice %8 {offsets = [0, 80], sizes = [4, 16], strides = [1, 1]} : vector<4x256xf32> to vector<4x16xf32>
    %c0_13 = arith.constant 0 : index
    %c109 = arith.constant 109 : index
    %20 = vector.load %arg7[%c0_13, %c109] : memref<16x652xf32, #tpu.memory_space<vmem>>, vector<4x16xf32>
    tpu.vector_store %arg7[%c0_13, %c109], %19 {strides = array<i32>} : memref<16x652xf32, #tpu.memory_space<vmem>>, vector<4x16xf32>,
    %21 = vector.extract_strided_slice %8 {offsets = [0, 96], sizes = [4, 16], strides = [1, 1]} : vector<4x256xf32> to vector<4x16xf32>
    %c0_14 = arith.constant 0 : index
    %c127 = arith.constant 127 : index
    %22 = vector.load %arg7[%c0_14, %c127] : memref<16x652xf32, #tpu.memory_space<vmem>>, vector<4x16xf32>
    tpu.vector_store %arg7[%c0_14, %c127], %21 {strides = array<i32>} : memref<16x652xf32, #tpu.memory_space<vmem>>, vector<4x16xf32>,
    %23 = vector.extract_strided_slice %8 {offsets = [0, 112], sizes = [4, 16], strides = [1, 1]} : vector<4x256xf32> to vector<4x16xf32>
    %c0_15 = arith.constant 0 : index
    %c145 = arith.constant 145 : index
    %24 = vector.load %arg7[%c0_15, %c145] : memref<16x652xf32, #tpu.memory_space<vmem>>, vector<4x16xf32>
    tpu.vector_store %arg7[%c0_15, %c145], %23 {strides = array<i32>} : memref<16x652xf32, #tpu.memory_space<vmem>>, vector<4x16xf32>,
    %25 = vector.extract_strided_slice %8 {offsets = [0, 128], sizes = [4, 16], strides = [1, 1]} : vector<4x256xf32> to vector<4x16xf32>
    %c0_16 = arith.constant 0 : index
    %c163 = arith.constant 163 : index
    %26 = vector.load %arg7[%c0_16, %c163] : memref<16x652xf32, #tpu.memory_space<vmem>>, vector<4x16xf32>
    tpu.vector_store %arg7[%c0_16, %c163], %25 {strides = array<i32>} : memref<16x652xf32, #tpu.memory_space<vmem>>, vector<4x16xf32>,
    %27 = vector.extract_strided_slice %8 {offsets = [0, 144], sizes = [4, 16], strides = [1, 1]} : vector<4x256xf32> to vector<4x16xf32>
    %c0_17 = arith.constant 0 : index
    %c181 = arith.constant 181 : index
    %28 = vector.load %arg7[%c0_17, %c181] : memref<16x652xf32, #tpu.memory_space<vmem>>, vector<4x16xf32>
    tpu.vector_store %arg7[%c0_17, %c181], %27 {strides = array<i32>} : memref<16x652xf32, #tpu.memory_space<vmem>>, vector<4x16xf32>,
    %29 = vector.extract_strided_slice %8 {offsets = [0, 160], sizes = [4, 16], strides = [1, 1]} : vector<4x256xf32> to vector<4x16xf32>
    %c0_18 = arith.constant 0 : index
    %c199 = arith.constant 199 : index
    %30 = vector.load %arg7[%c0_18, %c199] : memref<16x652xf32, #tpu.memory_space<vmem>>, vector<4x16xf32>
    tpu.vector_store %arg7[%c0_18, %c199], %29 {strides = array<i32>} : memref<16x652xf32, #tpu.memory_space<vmem>>, vector<4x16xf32>,
    %31 = vector.extract_strided_slice %8 {offsets = [0, 176], sizes = [4, 16], strides = [1, 1]} : vector<4x256xf32> to vector<4x16xf32>
    %c0_19 = arith.constant 0 : index
    %c217 = arith.constant 217 : index
    %32 = vector.load %arg7[%c0_19, %c217] : memref<16x652xf32, #tpu.memory_space<vmem>>, vector<4x16xf32>
    tpu.vector_store %arg7[%c0_19, %c217], %31 {strides = array<i32>} : memref<16x652xf32, #tpu.memory_space<vmem>>, vector<4x16xf32>,
    %33 = vector.extract_strided_slice %8 {offsets = [0, 192], sizes = [4, 16], strides = [1, 1]} : vector<4x256xf32> to vector<4x16xf32>
    %c0_20 = arith.constant 0 : index
    %c235 = arith.constant 235 : index
    %34 = vector.load %arg7[%c0_20, %c235] : memref<16x652xf32, #tpu.memory_space<vmem>>, vector<4x16xf32>
    tpu.vector_store %arg7[%c0_20, %c235], %33 {strides = array<i32>} : memref<16x652xf32, #tpu.memory_space<vmem>>, vector<4x16xf32>,
    %35 = vector.extract_strided_slice %8 {offsets = [0, 208], sizes = [4, 16], strides = [1, 1]} : vector<4x256xf32> to vector<4x16xf32>
    %c0_21 = arith.constant 0 : index
    %c253 = arith.constant 253 : index
    %36 = vector.load %arg7[%c0_21, %c253] : memref<16x652xf32, #tpu.memory_space<vmem>>, vector<4x16xf32>
    tpu.vector_store %arg7[%c0_21, %c253], %35 {strides = array<i32>} : memref<16x652xf32, #tpu.memory_space<vmem>>, vector<4x16xf32>,
    %37 = vector.extract_strided_slice %8 {offsets = [0, 224], sizes = [4, 16], strides = [1, 1]} : vector<4x256xf32> to vector<4x16xf32>
    %c0_22 = arith.constant 0 : index
    %c271 = arith.constant 271 : index
    %38 = vector.load %arg7[%c0_22, %c271] : memref<16x652xf32, #tpu.memory_space<vmem>>, vector<4x16xf32>
    tpu.vector_store %arg7[%c0_22, %c271], %37 {strides = array<i32>} : memref<16x652xf32, #tpu.memory_space<vmem>>, vector<4x16xf32>,
    %39 = vector.extract_strided_slice %8 {offsets = [0, 240], sizes = [4, 16], strides = [1, 1]} : vector<4x256xf32> to vector<4x16xf32>
    %c0_23 = arith.constant 0 : index
    %c289 = arith.constant 289 : index
    %40 = vector.load %arg7[%c0_23, %c289] : memref<16x652xf32, #tpu.memory_space<vmem>>, vector<4x16xf32>
    tpu.vector_store %arg7[%c0_23, %c289], %39 {strides = array<i32>} : memref<16x652xf32, #tpu.memory_space<vmem>>, vector<4x16xf32>,
    %41 = vector.extract_strided_slice %6 {offsets = [1, 0, 0], sizes = [1, 4, 256], strides = [1, 1, 1]} : vector<2x4x256xf32> to vector<1x4x256xf32>
    %42 = vector.shape_cast %41 : vector<1x4x256xf32> to vector<4x256xf32>
    %43 = vector.extract_strided_slice %42 {offsets = [0, 0], sizes = [4, 16], strides = [1, 1]} : vector<4x256xf32> to vector<4x16xf32>
    %c0_24 = arith.constant 0 : index
    %c345 = arith.constant 345 : index
    %44 = vector.load %arg7[%c0_24, %c345] : memref<16x652xf32, #tpu.memory_space<vmem>>, vector<4x16xf32>
    tpu.vector_store %arg7[%c0_24, %c345], %43 {strides = array<i32>} : memref<16x652xf32, #tpu.memory_space<vmem>>, vector<4x16xf32>,
    %45 = vector.extract_strided_slice %42 {offsets = [0, 16], sizes = [4, 16], strides = [1, 1]} : vector<4x256xf32> to vector<4x16xf32>
    %c0_25 = arith.constant 0 : index
    %c363 = arith.constant 363 : index
    %46 = vector.load %arg7[%c0_25, %c363] : memref<16x652xf32, #tpu.memory_space<vmem>>, vector<4x16xf32>
    tpu.vector_store %arg7[%c0_25, %c363], %45 {strides = array<i32>} : memref<16x652xf32, #tpu.memory_space<vmem>>, vector<4x16xf32>,
    %47 = vector.extract_strided_slice %42 {offsets = [0, 32], sizes = [4, 16], strides = [1, 1]} : vector<4x256xf32> to vector<4x16xf32>
    %c0_26 = arith.constant 0 : index
    %c381 = arith.constant 381 : index
    %48 = vector.load %arg7[%c0_26, %c381] : memref<16x652xf32, #tpu.memory_space<vmem>>, vector<4x16xf32>
    tpu.vector_store %arg7[%c0_26, %c381], %47 {strides = array<i32>} : memref<16x652xf32, #tpu.memory_space<vmem>>, vector<4x16xf32>,
    %49 = vector.extract_strided_slice %42 {offsets = [0, 48], sizes = [4, 16], strides = [1, 1]} : vector<4x256xf32> to vector<4x16xf32>
    %c0_27 = arith.constant 0 : index
    %c399 = arith.constant 399 : index
    %50 = vector.load %arg7[%c0_27, %c399] : memref<16x652xf32, #tpu.memory_space<vmem>>, vector<4x16xf32>
    tpu.vector_store %arg7[%c0_27, %c399], %49 {strides = array<i32>} : memref<16x652xf32, #tpu.memory_space<vmem>>, vector<4x16xf32>,
    %51 = vector.extract_strided_slice %42 {offsets = [0, 64], sizes = [4, 16], strides = [1, 1]} : vector<4x256xf32> to vector<4x16xf32>
    %c0_28 = arith.constant 0 : index
    %c417 = arith.constant 417 : index
    %52 = vector.load %arg7[%c0_28, %c417] : memref<16x652xf32, #tpu.memory_space<vmem>>, vector<4x16xf32>
    tpu.vector_store %arg7[%c0_28, %c417], %51 {strides = array<i32>} : memref<16x652xf32, #tpu.memory_space<vmem>>, vector<4x16xf32>,
    %53 = vector.extract_strided_slice %42 {offsets = [0, 80], sizes = [4, 16], strides = [1, 1]} : vector<4x256xf32> to vector<4x16xf32>
    %c0_29 = arith.constant 0 : index
    %c435 = arith.constant 435 : index
    %54 = vector.load %arg7[%c0_29, %c435] : memref<16x652xf32, #tpu.memory_space<vmem>>, vector<4x16xf32>
    tpu.vector_store %arg7[%c0_29, %c435], %53 {strides = array<i32>} : memref<16x652xf32, #tpu.memory_space<vmem>>, vector<4x16xf32>,
    %55 = vector.extract_strided_slice %42 {offsets = [0, 96], sizes = [4, 16], strides = [1, 1]} : vector<4x256xf32> to vector<4x16xf32>
    %c0_30 = arith.constant 0 : index
    %c453 = arith.constant 453 : index
    %56 = vector.load %arg7[%c0_30, %c453] : memref<16x652xf32, #tpu.memory_space<vmem>>, vector<4x16xf32>
    tpu.vector_store %arg7[%c0_30, %c453], %55 {strides = array<i32>} : memref<16x652xf32, #tpu.memory_space<vmem>>, vector<4x16xf32>,
    %57 = vector.extract_strided_slice %42 {offsets = [0, 112], sizes = [4, 16], strides = [1, 1]} : vector<4x256xf32> to vector<4x16xf32>
    %c0_31 = arith.constant 0 : index
    %c471 = arith.constant 471 : index
    %58 = vector.load %arg7[%c0_31, %c471] : memref<16x652xf32, #tpu.memory_space<vmem>>, vector<4x16xf32>
    tpu.vector_store %arg7[%c0_31, %c471], %57 {strides = array<i32>} : memref<16x652xf32, #tpu.memory_space<vmem>>, vector<4x16xf32>,
    %59 = vector.extract_strided_slice %42 {offsets = [0, 128], sizes = [4, 16], strides = [1, 1]} : vector<4x256xf32> to vector<4x16xf32>
    %c0_32 = arith.constant 0 : index
    %c489 = arith.constant 489 : index
    %60 = vector.load %arg7[%c0_32, %c489] : memref<16x652xf32, #tpu.memory_space<vmem>>, vector<4x16xf32>
    tpu.vector_store %arg7[%c0_32, %c489], %59 {strides = array<i32>} : memref<16x652xf32, #tpu.memory_space<vmem>>, vector<4x16xf32>,
    %61 = vector.extract_strided_slice %42 {offsets = [0, 144], sizes = [4, 16], strides = [1, 1]} : vector<4x256xf32> to vector<4x16xf32>
    %c0_33 = arith.constant 0 : index
    %c507 = arith.constant 507 : index
    %62 = vector.load %arg7[%c0_33, %c507] : memref<16x652xf32, #tpu.memory_space<vmem>>, vector<4x16xf32>
    tpu.vector_store %arg7[%c0_33, %c507], %61 {strides = array<i32>} : memref<16x652xf32, #tpu.memory_space<vmem>>, vector<4x16xf32>,
    %63 = vector.extract_strided_slice %42 {offsets = [0, 160], sizes = [4, 16], strides = [1, 1]} : vector<4x256xf32> to vector<4x16xf32>
    %c0_34 = arith.constant 0 : index
    %c525 = arith.constant 525 : index
    %64 = vector.load %arg7[%c0_34, %c525] : memref<16x652xf32, #tpu.memory_space<vmem>>, vector<4x16xf32>
    tpu.vector_store %arg7[%c0_34, %c525], %63 {strides = array<i32>} : memref<16x652xf32, #tpu.memory_space<vmem>>, vector<4x16xf32>,
    %65 = vector.extract_strided_slice %42 {offsets = [0, 176], sizes = [4, 16], strides = [1, 1]} : vector<4x256xf32> to vector<4x16xf32>
    %c0_35 = arith.constant 0 : index
    %c543 = arith.constant 543 : index
    %66 = vector.load %arg7[%c0_35, %c543] : memref<16x652xf32, #tpu.memory_space<vmem>>, vector<4x16xf32>
    tpu.vector_store %arg7[%c0_35, %c543], %65 {strides = array<i32>} : memref<16x652xf32, #tpu.memory_space<vmem>>, vector<4x16xf32>,
    %67 = vector.extract_strided_slice %42 {offsets = [0, 192], sizes = [4, 16], strides = [1, 1]} : vector<4x256xf32> to vector<4x16xf32>
    %c0_36 = arith.constant 0 : index
    %c561 = arith.constant 561 : index
    %68 = vector.load %arg7[%c0_36, %c561] : memref<16x652xf32, #tpu.memory_space<vmem>>, vector<4x16xf32>
    tpu.vector_store %arg7[%c0_36, %c561], %67 {strides = array<i32>} : memref<16x652xf32, #tpu.memory_space<vmem>>, vector<4x16xf32>,
    %69 = vector.extract_strided_slice %42 {offsets = [0, 208], sizes = [4, 16], strides = [1, 1]} : vector<4x256xf32> to vector<4x16xf32>
    %c0_37 = arith.constant 0 : index
    %c579 = arith.constant 579 : index
    %70 = vector.load %arg7[%c0_37, %c579] : memref<16x652xf32, #tpu.memory_space<vmem>>, vector<4x16xf32>
    tpu.vector_store %arg7[%c0_37, %c579], %69 {strides = array<i32>} : memref<16x652xf32, #tpu.memory_space<vmem>>, vector<4x16xf32>,
    %71 = vector.extract_strided_slice %42 {offsets = [0, 224], sizes = [4, 16], strides = [1, 1]} : vector<4x256xf32> to vector<4x16xf32>
    %c0_38 = arith.constant 0 : index
    %c597 = arith.constant 597 : index
    %72 = vector.load %arg7[%c0_38, %c597] : memref<16x652xf32, #tpu.memory_space<vmem>>, vector<4x16xf32>
    tpu.vector_store %arg7[%c0_38, %c597], %71 {strides = array<i32>} : memref<16x652xf32, #tpu.memory_space<vmem>>, vector<4x16xf32>,
    %73 = vector.extract_strided_slice %42 {offsets = [0, 240], sizes = [4, 16], strides = [1, 1]} : vector<4x256xf32> to vector<4x16xf32>
    %c0_39 = arith.constant 0 : index
    %c615 = arith.constant 615 : index
    %74 = vector.load %arg7[%c0_39, %c615] : memref<16x652xf32, #tpu.memory_space<vmem>>, vector<4x16xf32>
    tpu.vector_store %arg7[%c0_39, %c615], %73 {strides = array<i32>} : memref<16x652xf32, #tpu.memory_space<vmem>>, vector<4x16xf32>,
    %75 = tpu.iota {dimensions = array<i32: 1>} : vector<1x614xi32>
    %c326_i32 = arith.constant 326 : i32
    %c0_i32 = arith.constant 0 : i32
    %76 = arith.cmpi eq, %c326_i32, %c0_i32 : i32
    %c1_i32 = arith.constant 1 : i32
    %77 = arith.select %76, %c1_i32, %c326_i32 : i32
    %78 = vector.broadcast %77 : i32 to vector<1x614xi32>
    %79 = arith.remsi %75, %78 : vector<1x614xi32>
    %c0_i32_40 = arith.constant 0 : i32
    %80 = vector.broadcast %c0_i32_40 : i32 to vector<1x614xi32>
    %81 = arith.cmpi ne, %79, %80 : vector<1x614xi32>
    %c0_i32_41 = arith.constant 0 : i32
    %82 = vector.broadcast %c0_i32_41 : i32 to vector<1x614xi32>
    %83 = arith.cmpi slt, %79, %82 : vector<1x614xi32>
    %c0_i32_42 = arith.constant 0 : i32
    %84 = arith.cmpi slt, %77, %c0_i32_42 : i32
    %85 = vector.broadcast %84 : i1 to vector<1x614xi1>
    %86 = vector.broadcast %85 : vector<1x614xi1> to vector<1x614xi1>
    %87 = arith.xori %83, %86 : vector<1x614xi1>
    %88 = arith.andi %87, %81 : vector<1x614xi1>
    %89 = vector.broadcast %77 : i32 to vector<1x614xi32>
    %90 = arith.addi %79, %89 : vector<1x614xi32>
    %91 = arith.select %88, %90, %79 : vector<1x614xi1>, vector<1x614xi32>
    %c288_i32 = arith.constant 288 : i32
    %92 = vector.broadcast %c288_i32 : i32 to vector<1x614xi32>
    %93 = arith.cmpi slt, %91, %92 : vector<1x614xi32>
    %c18_i32 = arith.constant 18 : i32
    %c0_i32_43 = arith.constant 0 : i32
    %94 = arith.cmpi eq, %c18_i32, %c0_i32_43 : i32
    %c1_i32_44 = arith.constant 1 : i32
    %95 = arith.select %94, %c1_i32_44, %c18_i32 : i32
    %96 = vector.broadcast %95 : i32 to vector<1x614xi32>
    %97 = arith.remsi %91, %96 : vector<1x614xi32>
    %c0_i32_45 = arith.constant 0 : i32
    %98 = vector.broadcast %c0_i32_45 : i32 to vector<1x614xi32>
    %99 = arith.cmpi ne, %97, %98 : vector<1x614xi32>
    %c0_i32_46 = arith.constant 0 : i32
    %100 = vector.broadcast %c0_i32_46 : i32 to vector<1x614xi32>
    %101 = arith.cmpi slt, %97, %100 : vector<1x614xi32>
    %c0_i32_47 = arith.constant 0 : i32
    %102 = arith.cmpi slt, %95, %c0_i32_47 : i32
    %103 = vector.broadcast %102 : i1 to vector<1x614xi1>
    %104 = vector.broadcast %103 : vector<1x614xi1> to vector<1x614xi1>
    %105 = arith.xori %101, %104 : vector<1x614xi1>
    %106 = arith.andi %105, %99 : vector<1x614xi1>
    %107 = vector.broadcast %95 : i32 to vector<1x614xi32>
    %108 = arith.addi %97, %107 : vector<1x614xi32>
    %109 = arith.select %106, %108, %97 : vector<1x614xi1>, vector<1x614xi32>
    %c16_i32 = arith.constant 16 : i32
    %110 = vector.broadcast %c16_i32 : i32 to vector<1x614xi32>
    %111 = arith.cmpi slt, %109, %110 : vector<1x614xi32>
    %112 = arith.andi %93, %111 : vector<1x614xi1>
    %113 = arith.extui %112 : vector<1x614xi1> to vector<1x614xi32>
    %114 = arith.sitofp %113 : vector<1x614xi32> to vector<1x614xf32>
    %115 = vector.shape_cast %114 : vector<1x614xf32> to vector<1x614xf32>
    %116 = vector.broadcast %115 : vector<1x614xf32> to vector<4x614xf32>
    %c0_48 = arith.constant 0 : index
    %c0_49 = arith.constant 0 : index
    %117 = vector.load %arg7[%c0_48, %c0_49] : memref<16x652xf32, #tpu.memory_space<vmem>>, vector<4x652xf32>
    %118 = vector.extract_strided_slice %117 {offsets = [0, 0], sizes = [4, 614], strides = [1, 1]} : vector<4x652xf32> to vector<4x614xf32>
    %119 = vector.extract_strided_slice %117 {offsets = [0, 1], sizes = [4, 614], strides = [1, 1]} : vector<4x652xf32> to vector<4x614xf32>
    %120 = vector.extract_strided_slice %117 {offsets = [0, 2], sizes = [4, 614], strides = [1, 1]} : vector<4x652xf32> to vector<4x614xf32>
    %121 = vector.extract_strided_slice %117 {offsets = [0, 18], sizes = [4, 614], strides = [1, 1]} : vector<4x652xf32> to vector<4x614xf32>
    %122 = vector.extract_strided_slice %117 {offsets = [0, 19], sizes = [4, 614], strides = [1, 1]} : vector<4x652xf32> to vector<4x614xf32>
    %123 = vector.extract_strided_slice %117 {offsets = [0, 20], sizes = [4, 614], strides = [1, 1]} : vector<4x652xf32> to vector<4x614xf32>
    %124 = vector.extract_strided_slice %117 {offsets = [0, 36], sizes = [4, 614], strides = [1, 1]} : vector<4x652xf32> to vector<4x614xf32>
    %125 = vector.extract_strided_slice %117 {offsets = [0, 37], sizes = [4, 614], strides = [1, 1]} : vector<4x652xf32> to vector<4x614xf32>
    %126 = vector.extract_strided_slice %117 {offsets = [0, 38], sizes = [4, 614], strides = [1, 1]} : vector<4x652xf32> to vector<4x614xf32>
    %127 = tpu.concatenate %118, %119, %120, %121, %122, %123, %124, %125, %126 in 0 : vector<4x614xf32>, vector<4x614xf32>, vector<4x614xf32>, vector<4x614xf32>, vector<4x614xf32>, vector<4x614xf32>, vector<4x614xf32>, vector<4x614xf32>, vector<4x614xf32> -> vector<36x614xf32>
    %c0_50 = arith.constant 0 : index
    %c0_51 = arith.constant 0 : index
    %128 = vector.load %arg2[%c0_50, %c0_51] : memref<4x36xf32, #tpu.memory_space<vmem>>, vector<4x36xf32>
    %cst_52 = arith.constant dense<0.000000e+00> : vector<4x614xf32>
    %129 = tpu.matmul %128, %127, %cst_52 {dimension_numbers = #tpu.dot_dimension_numbers<[1], [0], [0], [1], [0, 0, 1, 1], [], []>} : vector<4x36xf32>, vector<36x614xf32>, vector<4x614xf32> -> vector<4x614xf32>
    %cst_53 = arith.constant 5.000000e-01 : f32
    %130 = vector.broadcast %cst_53 : f32 to vector<4x614xf32>
    %131 = arith.mulf %130, %129 : vector<4x614xf32>
    %cst_54 = arith.constant 0.707106769 : f32
    %132 = vector.broadcast %cst_54 : f32 to vector<4x614xf32>
    %133 = arith.mulf %129, %132 : vector<4x614xf32>
    %cst_55 = arith.constant -4.000000e+00 : f32
    %cst_56 = arith.constant 4.000000e+00 : f32
    %134 = vector.broadcast %cst_55 : f32 to vector<4x614xf32>
    %135 = arith.maximumf %134, %133 : vector<4x614xf32>
    %136 = vector.broadcast %cst_56 : f32 to vector<4x614xf32>
    %137 = arith.minimumf %136, %135 : vector<4x614xf32>
    %138 = arith.mulf %137, %137 : vector<4x614xf32>
    %cst_57 = arith.constant -2.72614237E-10 : f32
    %139 = vector.broadcast %cst_57 : f32 to vector<4x614xf32>
    %140 = arith.mulf %139, %138 : vector<4x614xf32>
    %cst_58 = arith.constant 2.77068146E-8 : f32
    %141 = vector.broadcast %cst_58 : f32 to vector<4x614xf32>
    %142 = arith.addf %140, %141 : vector<4x614xf32>
    %143 = arith.mulf %142, %138 : vector<4x614xf32>
    %cst_59 = arith.constant -2.10102394E-6 : f32
    %144 = vector.broadcast %cst_59 : f32 to vector<4x614xf32>
    %145 = arith.addf %143, %144 : vector<4x614xf32>
    %146 = arith.mulf %145, %138 : vector<4x614xf32>
    %cst_60 = arith.constant -5.69250624E-5 : f32
    %147 = vector.broadcast %cst_60 : f32 to vector<4x614xf32>
    %148 = arith.addf %146, %147 : vector<4x614xf32>
    %149 = arith.mulf %148, %138 : vector<4x614xf32>
    %cst_61 = arith.constant -7.34990637E-4 : f32
    %150 = vector.broadcast %cst_61 : f32 to vector<4x614xf32>
    %151 = arith.addf %149, %150 : vector<4x614xf32>
    %152 = arith.mulf %151, %138 : vector<4x614xf32>
    %cst_62 = arith.constant -2.954600e-03 : f32
    %153 = vector.broadcast %cst_62 : f32 to vector<4x614xf32>
    %154 = arith.addf %152, %153 : vector<4x614xf32>
    %155 = arith.mulf %154, %138 : vector<4x614xf32>
    %cst_63 = arith.constant -0.0160960332 : f32
    %156 = vector.broadcast %cst_63 : f32 to vector<4x614xf32>
    %157 = arith.addf %155, %156 : vector<4x614xf32>
    %cst_64 = arith.constant -1.45660715E-5 : f32
    %158 = vector.broadcast %cst_64 : f32 to vector<4x614xf32>
    %159 = arith.mulf %158, %138 : vector<4x614xf32>
    %cst_65 = arith.constant -2.13374049E-4 : f32
    %160 = vector.broadcast %cst_65 : f32 to vector<4x614xf32>
    %161 = arith.addf %159, %160 : vector<4x614xf32>
    %162 = arith.mulf %161, %138 : vector<4x614xf32>
    %cst_66 = arith.constant -0.00168282702 : f32
    %163 = vector.broadcast %cst_66 : f32 to vector<4x614xf32>
    %164 = arith.addf %162, %163 : vector<4x614xf32>
    %165 = arith.mulf %164, %138 : vector<4x614xf32>
    %cst_67 = arith.constant -0.00737332925 : f32
    %166 = vector.broadcast %cst_67 : f32 to vector<4x614xf32>
    %167 = arith.addf %165, %166 : vector<4x614xf32>
    %168 = arith.mulf %167, %138 : vector<4x614xf32>
    %cst_68 = arith.constant -0.0142647391 : f32
    %169 = vector.broadcast %cst_68 : f32 to vector<4x614xf32>
    %170 = arith.addf %168, %169 : vector<4x614xf32>
    %171 = arith.mulf %137, %157 : vector<4x614xf32>
    %172 = tpu.reciprocal %170 {approx = true} : vector<4x614xf32> -> vector<4x614xf32>
    %173 = arith.mulf %171, %172 : vector<4x614xf32>
    %cst_69 = arith.constant 1.000000e+00 : f32
    %174 = vector.broadcast %cst_69 : f32 to vector<4x614xf32>
    %175 = arith.addf %174, %173 : vector<4x614xf32>
    %176 = arith.mulf %131, %175 : vector<4x614xf32>
    %177 = arith.mulf %176, %116 : vector<4x614xf32>
    %c4_70 = arith.constant 4 : index
    %c19_71 = arith.constant 19 : index
    %178 = vector.load %arg7[%c4_70, %c19_71] : memref<16x652xf32, #tpu.memory_space<vmem>>, vector<4x614xf32>
    tpu.vector_store %arg7[%c4_70, %c19_71], %177 {strides = array<i32>} : memref<16x652xf32, #tpu.memory_space<vmem>>, vector<4x614xf32>,
    %c0_72 = arith.constant 0 : index
    %c0_73 = arith.constant 0 : index
    %179 = vector.load %arg7[%c0_72, %c0_73] : memref<16x652xf32, #tpu.memory_space<vmem>>, vector<8x652xf32>
    %180 = vector.extract_strided_slice %179 {offsets = [0, 0], sizes = [8, 614], strides = [1, 1]} : vector<8x652xf32> to vector<8x614xf32>
    %181 = vector.extract_strided_slice %179 {offsets = [0, 1], sizes = [8, 614], strides = [1, 1]} : vector<8x652xf32> to vector<8x614xf32>
    %182 = vector.extract_strided_slice %179 {offsets = [0, 2], sizes = [8, 614], strides = [1, 1]} : vector<8x652xf32> to vector<8x614xf32>
    %183 = vector.extract_strided_slice %179 {offsets = [0, 18], sizes = [8, 614], strides = [1, 1]} : vector<8x652xf32> to vector<8x614xf32>
    %184 = vector.extract_strided_slice %179 {offsets = [0, 19], sizes = [8, 614], strides = [1, 1]} : vector<8x652xf32> to vector<8x614xf32>
    %185 = vector.extract_strided_slice %179 {offsets = [0, 20], sizes = [8, 614], strides = [1, 1]} : vector<8x652xf32> to vector<8x614xf32>
    %186 = vector.extract_strided_slice %179 {offsets = [0, 36], sizes = [8, 614], strides = [1, 1]} : vector<8x652xf32> to vector<8x614xf32>
    %187 = vector.extract_strided_slice %179 {offsets = [0, 37], sizes = [8, 614], strides = [1, 1]} : vector<8x652xf32> to vector<8x614xf32>
    %188 = vector.extract_strided_slice %179 {offsets = [0, 38], sizes = [8, 614], strides = [1, 1]} : vector<8x652xf32> to vector<8x614xf32>
    %189 = tpu.concatenate %180, %181, %182, %183, %184, %185, %186, %187, %188 in 0 : vector<8x614xf32>, vector<8x614xf32>, vector<8x614xf32>, vector<8x614xf32>, vector<8x614xf32>, vector<8x614xf32>, vector<8x614xf32>, vector<8x614xf32>, vector<8x614xf32> -> vector<72x614xf32>
    %c0_74 = arith.constant 0 : index
    %c0_75 = arith.constant 0 : index
    %190 = vector.load %arg3[%c0_74, %c0_75] : memref<4x72xf32, #tpu.memory_space<vmem>>, vector<4x72xf32>
    %cst_76 = arith.constant dense<0.000000e+00> : vector<4x614xf32>
    %191 = tpu.matmul %190, %189, %cst_76 {dimension_numbers = #tpu.dot_dimension_numbers<[1], [0], [0], [1], [0, 0, 1, 1], [], []>} : vector<4x72xf32>, vector<72x614xf32>, vector<4x614xf32> -> vector<4x614xf32>
    %cst_77 = arith.constant 5.000000e-01 : f32
    %192 = vector.broadcast %cst_77 : f32 to vector<4x614xf32>
    %193 = arith.mulf %192, %191 : vector<4x614xf32>
    %cst_78 = arith.constant 0.707106769 : f32
    %194 = vector.broadcast %cst_78 : f32 to vector<4x614xf32>
    %195 = arith.mulf %191, %194 : vector<4x614xf32>
    %cst_79 = arith.constant -4.000000e+00 : f32
    %cst_80 = arith.constant 4.000000e+00 : f32
    %196 = vector.broadcast %cst_79 : f32 to vector<4x614xf32>
    %197 = arith.maximumf %196, %195 : vector<4x614xf32>
    %198 = vector.broadcast %cst_80 : f32 to vector<4x614xf32>
    %199 = arith.minimumf %198, %197 : vector<4x614xf32>
    %200 = arith.mulf %199, %199 : vector<4x614xf32>
    %cst_81 = arith.constant -2.72614237E-10 : f32
    %201 = vector.broadcast %cst_81 : f32 to vector<4x614xf32>
    %202 = arith.mulf %201, %200 : vector<4x614xf32>
    %cst_82 = arith.constant 2.77068146E-8 : f32
    %203 = vector.broadcast %cst_82 : f32 to vector<4x614xf32>
    %204 = arith.addf %202, %203 : vector<4x614xf32>
    %205 = arith.mulf %204, %200 : vector<4x614xf32>
    %cst_83 = arith.constant -2.10102394E-6 : f32
    %206 = vector.broadcast %cst_83 : f32 to vector<4x614xf32>
    %207 = arith.addf %205, %206 : vector<4x614xf32>
    %208 = arith.mulf %207, %200 : vector<4x614xf32>
    %cst_84 = arith.constant -5.69250624E-5 : f32
    %209 = vector.broadcast %cst_84 : f32 to vector<4x614xf32>
    %210 = arith.addf %208, %209 : vector<4x614xf32>
    %211 = arith.mulf %210, %200 : vector<4x614xf32>
    %cst_85 = arith.constant -7.34990637E-4 : f32
    %212 = vector.broadcast %cst_85 : f32 to vector<4x614xf32>
    %213 = arith.addf %211, %212 : vector<4x614xf32>
    %214 = arith.mulf %213, %200 : vector<4x614xf32>
    %cst_86 = arith.constant -2.954600e-03 : f32
    %215 = vector.broadcast %cst_86 : f32 to vector<4x614xf32>
    %216 = arith.addf %214, %215 : vector<4x614xf32>
    %217 = arith.mulf %216, %200 : vector<4x614xf32>
    %cst_87 = arith.constant -0.0160960332 : f32
    %218 = vector.broadcast %cst_87 : f32 to vector<4x614xf32>
    %219 = arith.addf %217, %218 : vector<4x614xf32>
    %cst_88 = arith.constant -1.45660715E-5 : f32
    %220 = vector.broadcast %cst_88 : f32 to vector<4x614xf32>
    %221 = arith.mulf %220, %200 : vector<4x614xf32>
    %cst_89 = arith.constant -2.13374049E-4 : f32
    %222 = vector.broadcast %cst_89 : f32 to vector<4x614xf32>
    %223 = arith.addf %221, %222 : vector<4x614xf32>
    %224 = arith.mulf %223, %200 : vector<4x614xf32>
    %cst_90 = arith.constant -0.00168282702 : f32
    %225 = vector.broadcast %cst_90 : f32 to vector<4x614xf32>
    %226 = arith.addf %224, %225 : vector<4x614xf32>
    %227 = arith.mulf %226, %200 : vector<4x614xf32>
    %cst_91 = arith.constant -0.00737332925 : f32
    %228 = vector.broadcast %cst_91 : f32 to vector<4x614xf32>
    %229 = arith.addf %227, %228 : vector<4x614xf32>
    %230 = arith.mulf %229, %200 : vector<4x614xf32>
    %cst_92 = arith.constant -0.0142647391 : f32
    %231 = vector.broadcast %cst_92 : f32 to vector<4x614xf32>
    %232 = arith.addf %230, %231 : vector<4x614xf32>
    %233 = arith.mulf %199, %219 : vector<4x614xf32>
    %234 = tpu.reciprocal %232 {approx = true} : vector<4x614xf32> -> vector<4x614xf32>
    %235 = arith.mulf %233, %234 : vector<4x614xf32>
    %cst_93 = arith.constant 1.000000e+00 : f32
    %236 = vector.broadcast %cst_93 : f32 to vector<4x614xf32>
    %237 = arith.addf %236, %235 : vector<4x614xf32>
    %238 = arith.mulf %193, %237 : vector<4x614xf32>
    %239 = arith.mulf %238, %116 : vector<4x614xf32>
    %c8 = arith.constant 8 : index
    %c19_94 = arith.constant 19 : index
    %240 = vector.load %arg7[%c8, %c19_94] : memref<16x652xf32, #tpu.memory_space<vmem>>, vector<4x614xf32>
    tpu.vector_store %arg7[%c8, %c19_94], %239 {strides = array<i32>} : memref<16x652xf32, #tpu.memory_space<vmem>>, vector<4x614xf32>,
    %c0_95 = arith.constant 0 : index
    %c0_96 = arith.constant 0 : index
    %241 = vector.load %arg7[%c0_95, %c0_96] : memref<16x652xf32, #tpu.memory_space<vmem>>, vector<12x652xf32>
    %242 = vector.extract_strided_slice %241 {offsets = [0, 0], sizes = [12, 614], strides = [1, 1]} : vector<12x652xf32> to vector<12x614xf32>
    %243 = vector.extract_strided_slice %241 {offsets = [0, 1], sizes = [12, 614], strides = [1, 1]} : vector<12x652xf32> to vector<12x614xf32>
    %244 = vector.extract_strided_slice %241 {offsets = [0, 2], sizes = [12, 614], strides = [1, 1]} : vector<12x652xf32> to vector<12x614xf32>
    %245 = vector.extract_strided_slice %241 {offsets = [0, 18], sizes = [12, 614], strides = [1, 1]} : vector<12x652xf32> to vector<12x614xf32>
    %246 = vector.extract_strided_slice %241 {offsets = [0, 19], sizes = [12, 614], strides = [1, 1]} : vector<12x652xf32> to vector<12x614xf32>
    %247 = vector.extract_strided_slice %241 {offsets = [0, 20], sizes = [12, 614], strides = [1, 1]} : vector<12x652xf32> to vector<12x614xf32>
    %248 = vector.extract_strided_slice %241 {offsets = [0, 36], sizes = [12, 614], strides = [1, 1]} : vector<12x652xf32> to vector<12x614xf32>
    %249 = vector.extract_strided_slice %241 {offsets = [0, 37], sizes = [12, 614], strides = [1, 1]} : vector<12x652xf32> to vector<12x614xf32>
    %250 = vector.extract_strided_slice %241 {offsets = [0, 38], sizes = [12, 614], strides = [1, 1]} : vector<12x652xf32> to vector<12x614xf32>
    %251 = tpu.concatenate %242, %243, %244, %245, %246, %247, %248, %249, %250 in 0 : vector<12x614xf32>, vector<12x614xf32>, vector<12x614xf32>, vector<12x614xf32>, vector<12x614xf32>, vector<12x614xf32>, vector<12x614xf32>, vector<12x614xf32>, vector<12x614xf32> -> vector<108x614xf32>
    %c0_97 = arith.constant 0 : index
    %c0_98 = arith.constant 0 : index
    %252 = vector.load %arg4[%c0_97, %c0_98] : memref<4x108xf32, #tpu.memory_space<vmem>>, vector<4x108xf32>
    %cst_99 = arith.constant dense<0.000000e+00> : vector<4x614xf32>
    %253 = tpu.matmul %252, %251, %cst_99 {dimension_numbers = #tpu.dot_dimension_numbers<[1], [0], [0], [1], [0, 0, 1, 1], [], []>} : vector<4x108xf32>, vector<108x614xf32>, vector<4x614xf32> -> vector<4x614xf32>
    %cst_100 = arith.constant 5.000000e-01 : f32
    %254 = vector.broadcast %cst_100 : f32 to vector<4x614xf32>
    %255 = arith.mulf %254, %253 : vector<4x614xf32>
    %cst_101 = arith.constant 0.707106769 : f32
    %256 = vector.broadcast %cst_101 : f32 to vector<4x614xf32>
    %257 = arith.mulf %253, %256 : vector<4x614xf32>
    %cst_102 = arith.constant -4.000000e+00 : f32
    %cst_103 = arith.constant 4.000000e+00 : f32
    %258 = vector.broadcast %cst_102 : f32 to vector<4x614xf32>
    %259 = arith.maximumf %258, %257 : vector<4x614xf32>
    %260 = vector.broadcast %cst_103 : f32 to vector<4x614xf32>
    %261 = arith.minimumf %260, %259 : vector<4x614xf32>
    %262 = arith.mulf %261, %261 : vector<4x614xf32>
    %cst_104 = arith.constant -2.72614237E-10 : f32
    %263 = vector.broadcast %cst_104 : f32 to vector<4x614xf32>
    %264 = arith.mulf %263, %262 : vector<4x614xf32>
    %cst_105 = arith.constant 2.77068146E-8 : f32
    %265 = vector.broadcast %cst_105 : f32 to vector<4x614xf32>
    %266 = arith.addf %264, %265 : vector<4x614xf32>
    %267 = arith.mulf %266, %262 : vector<4x614xf32>
    %cst_106 = arith.constant -2.10102394E-6 : f32
    %268 = vector.broadcast %cst_106 : f32 to vector<4x614xf32>
    %269 = arith.addf %267, %268 : vector<4x614xf32>
    %270 = arith.mulf %269, %262 : vector<4x614xf32>
    %cst_107 = arith.constant -5.69250624E-5 : f32
    %271 = vector.broadcast %cst_107 : f32 to vector<4x614xf32>
    %272 = arith.addf %270, %271 : vector<4x614xf32>
    %273 = arith.mulf %272, %262 : vector<4x614xf32>
    %cst_108 = arith.constant -7.34990637E-4 : f32
    %274 = vector.broadcast %cst_108 : f32 to vector<4x614xf32>
    %275 = arith.addf %273, %274 : vector<4x614xf32>
    %276 = arith.mulf %275, %262 : vector<4x614xf32>
    %cst_109 = arith.constant -2.954600e-03 : f32
    %277 = vector.broadcast %cst_109 : f32 to vector<4x614xf32>
    %278 = arith.addf %276, %277 : vector<4x614xf32>
    %279 = arith.mulf %278, %262 : vector<4x614xf32>
    %cst_110 = arith.constant -0.0160960332 : f32
    %280 = vector.broadcast %cst_110 : f32 to vector<4x614xf32>
    %281 = arith.addf %279, %280 : vector<4x614xf32>
    %cst_111 = arith.constant -1.45660715E-5 : f32
    %282 = vector.broadcast %cst_111 : f32 to vector<4x614xf32>
    %283 = arith.mulf %282, %262 : vector<4x614xf32>
    %cst_112 = arith.constant -2.13374049E-4 : f32
    %284 = vector.broadcast %cst_112 : f32 to vector<4x614xf32>
    %285 = arith.addf %283, %284 : vector<4x614xf32>
    %286 = arith.mulf %285, %262 : vector<4x614xf32>
    %cst_113 = arith.constant -0.00168282702 : f32
    %287 = vector.broadcast %cst_113 : f32 to vector<4x614xf32>
    %288 = arith.addf %286, %287 : vector<4x614xf32>
    %289 = arith.mulf %288, %262 : vector<4x614xf32>
    %cst_114 = arith.constant -0.00737332925 : f32
    %290 = vector.broadcast %cst_114 : f32 to vector<4x614xf32>
    %291 = arith.addf %289, %290 : vector<4x614xf32>
    %292 = arith.mulf %291, %262 : vector<4x614xf32>
    %cst_115 = arith.constant -0.0142647391 : f32
    %293 = vector.broadcast %cst_115 : f32 to vector<4x614xf32>
    %294 = arith.addf %292, %293 : vector<4x614xf32>
    %295 = arith.mulf %261, %281 : vector<4x614xf32>
    %296 = tpu.reciprocal %294 {approx = true} : vector<4x614xf32> -> vector<4x614xf32>
    %297 = arith.mulf %295, %296 : vector<4x614xf32>
    %cst_116 = arith.constant 1.000000e+00 : f32
    %298 = vector.broadcast %cst_116 : f32 to vector<4x614xf32>
    %299 = arith.addf %298, %297 : vector<4x614xf32>
    %300 = arith.mulf %255, %299 : vector<4x614xf32>
    %301 = arith.mulf %300, %116 : vector<4x614xf32>
    %c12 = arith.constant 12 : index
    %c19_117 = arith.constant 19 : index
    %302 = vector.load %arg7[%c12, %c19_117] : memref<16x652xf32, #tpu.memory_space<vmem>>, vector<4x614xf32>
    tpu.vector_store %arg7[%c12, %c19_117], %301 {strides = array<i32>} : memref<16x652xf32, #tpu.memory_space<vmem>>, vector<4x614xf32>,
    %c0_118 = arith.constant 0 : index
    %c0_119 = arith.constant 0 : index
    %303 = vector.load %arg7[%c0_118, %c0_119] : memref<16x652xf32, #tpu.memory_space<vmem>>, vector<16x652xf32>
    %304 = vector.extract_strided_slice %303 {offsets = [0, 19], sizes = [16, 614], strides = [1, 1]} : vector<16x652xf32> to vector<16x614xf32>
    %305 = vector.extract_strided_slice %303 {offsets = [0, 19], sizes = [4, 614], strides = [1, 1]} : vector<16x652xf32> to vector<4x614xf32>
    %c0_120 = arith.constant 0 : index
    %c0_121 = arith.constant 0 : index
    %306 = vector.load %arg5[%c0_120, %c0_121] : memref<4x16xf32, #tpu.memory_space<vmem>>, vector<4x16xf32>
    %cst_122 = arith.constant dense<0.000000e+00> : vector<4x614xf32>
    %307 = tpu.matmul %306, %304, %cst_122 {dimension_numbers = #tpu.dot_dimension_numbers<[1], [0], [0], [1], [0, 0, 1, 1], [], []>} : vector<4x16xf32>, vector<16x614xf32>, vector<4x614xf32> -> vector<4x614xf32>
    %308 = arith.addf %307, %305 : vector<4x614xf32>
    %309 = vector.extract_strided_slice %308 {offsets = [0, 0], sizes = [4, 288], strides = [1, 1]} : vector<4x614xf32> to vector<4x288xf32>
    %c0_123 = arith.constant 0 : index
    %c0_124 = arith.constant 0 : index
    %c0_125 = arith.constant 0 : index
    %310 = vector.load %arg6[%c0_123, %c0_124, %c0_125] : memref<2x4x288xf32, #tpu.memory_space<vmem>>, vector<1x4x288xf32>
    %311 = vector.shape_cast %310 : vector<1x4x288xf32> to vector<4x288xf32>
    %312 = vector.shape_cast %309 : vector<4x288xf32> to vector<1x4x288xf32>
    tpu.vector_store %arg6[%c0_123, %c0_124, %c0_125], %312 {strides = array<i32>} : memref<2x4x288xf32, #tpu.memory_space<vmem>>, vector<1x4x288xf32>,
    %313 = vector.extract_strided_slice %308 {offsets = [0, 326], sizes = [4, 288], strides = [1, 1]} : vector<4x614xf32> to vector<4x288xf32>
    %c1 = arith.constant 1 : index
    %c0_126 = arith.constant 0 : index
    %c0_127 = arith.constant 0 : index
    %314 = vector.load %arg6[%c1, %c0_126, %c0_127] : memref<2x4x288xf32, #tpu.memory_space<vmem>>, vector<1x4x288xf32>
    %315 = vector.shape_cast %314 : vector<1x4x288xf32> to vector<4x288xf32>
    %316 = vector.shape_cast %313 : vector<4x288xf32> to vector<1x4x288xf32>
    tpu.vector_store %arg6[%c1, %c0_126, %c0_127], %316 {strides = array<i32>} : memref<2x4x288xf32, #tpu.memory_space<vmem>>, vector<1x4x288xf32>,
    return
  }
  func.func @transform_0(%arg0: i32) -> (i32, i32, i32) {
    %c0_i32 = arith.constant 0 : i32
    %c0_i32_0 = arith.constant 0 : i32
    %c0_i32_1 = arith.constant 0 : i32
    return %arg0, %c0_i32, %c0_i32_0 : i32, i32, i32
  }
  func.func @transform_1(%arg0: i32) -> (i32, i32) {
    %c0_i32 = arith.constant 0 : i32
    %c0_i32_0 = arith.constant 0 : i32
    %c0_i32_1 = arith.constant 0 : i32
    return %c0_i32, %c0_i32_0 : i32, i32
  }
  func.func @transform_2(%arg0: i32) -> (i32, i32) {
    %c0_i32 = arith.constant 0 : i32
    %c0_i32_0 = arith.constant 0 : i32
    %c0_i32_1 = arith.constant 0 : i32
    return %c0_i32, %c0_i32_0 : i32, i32
  }
  func.func @transform_3(%arg0: i32) -> (i32, i32) {
    %c0_i32 = arith.constant 0 : i32
    %c0_i32_0 = arith.constant 0 : i32
    %c0_i32_1 = arith.constant 0 : i32
    return %c0_i32, %c0_i32_0 : i32, i32
  }
  func.func @transform_4(%arg0: i32) -> (i32, i32) {
    %c0_i32 = arith.constant 0 : i32
    %c0_i32_0 = arith.constant 0 : i32
    %c0_i32_1 = arith.constant 0 : i32
    return %c0_i32, %c0_i32_0 : i32, i32
  }
  func.func @transform_5(%arg0: i32) -> (i32, i32, i32) {
    %c0_i32 = arith.constant 0 : i32
    %c0_i32_0 = arith.constant 0 : i32
    %c0_i32_1 = arith.constant 0 : i32
    return %arg0, %c0_i32, %c0_i32_0 : i32, i32, i32
  }
}

</mosaic_0001>

<bundles_post_ra>
// kernel: tpu_custom_call.1
= control target key start
LH: loop header
LB: loop body
LE: loop exit
PB: predicated region body
PF: predicated region fallthrough
CT: control target
= control target key end

     0   :  { %10 = vsyncpa [#allocation4], 0  ;;  %s5310_s0 = inlined_call_operand.hbm [shape: f32[4,4,256], index: 0, kind: input, shape index: {}]   ;;  %s5311_s1 = inlined_call_operand.hbm [shape: f32[4,36], index: 1, kind: input, shape index: {}]   ;;  %s5312_s2 = inlined_call_operand.hbm [shape: f32[4,72], index: 2, kind: input, shape index: {}]   ;;  %s5313_s3 = inlined_call_operand.vmem [shape: f32[4,108], index: 3, kind: input, shape index: {}]   ;;  %s5314_s4 = inlined_call_operand.hbm [shape: f32[4,16], index: 4, kind: input, shape index: {}]   ;;  %s5315_s5 = inlined_call_operand.hbm [shape: f32[4,4,288], index: 5, kind: output, shape index: {}]  }
   0x1   :  { %12 = vsyncpa [#allocation4 + $0x1], 0 }
   0x2   :  { %13 = vsyncpa [#allocation7], 0 }
   0x3   :  { %14 = vsyncpa [#allocation10], 0 }
   0x4   :  { %15 = vsyncpa [#allocation5], 0 }
   0x5   :  { %17 = vsyncpa [#allocation5 + $0x1], 0  ;;  %s3688_s18 = smov 0   ;;  %s3690_s19 = smov 0  }
   0x6   :  { %s3692_s20 = smov 0   ;;  %s3694_s21 = smov 0  }
   0x7 LB: > { %s3709_s22 = sadd.s32 4294967295, %s3606_s21   ;;  %s3070_s23 = sadd.s32 4294967294, %s3606_s21   ;;  %s3606_s21 = sphi %s3694_s21, %s5455_s21   ;;  %s3602_s20 = sphi %s3692_s20, %s5454_s20   ;;  %s3598_s19 = sphi %s3690_s19, %s5453_s19   ;;  %s3594_s18 = sphi %s3688_s18, %s5452_s18  }
   0x8   : > { %p43_p0 = scmp.ne.s32.totalorder %s3598_s19, %s3594_s18  ;;  %p5316_p1 = scmp.eq.s32.totalorder %s3709_s22, 0 }
   0x9   : > { %p157_p3 = scmp.eq.s32.totalorder %s3070_s23, 1  ;;  %p3071_p5 = scmp.ge.s32.totalorder %s3606_s21, 1 }
   0xa   : > { %p3718_p4 = por %p5316_p1, %p43_p0  ;;  %p164_p7 = scmp.lt.s32.totalorder %s3606_s21, 3 }
   0xb   : > { %p3723_p6 = por %p157_p3, %p43_p0  ;;  %s3608_s27 = smov [#allocation6]  }
   0xc   : > { %s5338_s24 = scalar_select %p3718_p4, 1, 0 }
   0xd   : > { %s5339_s25 = scalar_select %p3723_p6, 1, 0 }
   0xe   : > { %p3728_p8 = pnand %p3071_p5, %p164_p7  ;;  %s177_s28 = sshll.u32 %s3608_s27, 4  ;;  %s178_s28 = int_to_ptr.vmem [resolvable:$true] %s177_s28 }
   0xf   : > { %s3609_s29 = smov [#allocation8]   ;;  %s3610_s7 = smov [#allocation9]  }
  0x10   : > { %s5340_s26 = scalar_select %p3728_p8, 1, 0 }
  0x11   : > { %p3285_p10 = pneg %p3728_p8  ;;  %s188_s30 = sshll.u32 %s3609_s29, 4  ;;  %s189_s30 = int_to_ptr.vmem [resolvable:$true] %s188_s30 }
  0x12   : > { %s202_s8 = sshll.u32 %s3610_s7, 4  ;;  %s3439_s9 = scalar_lea.vmem %s178_s28, 64  ;;  %s3741_s8 = int_to_ptr.vmem [resolvable:$true] %s202_s8 }
  0x13   : > { %p3737_p11 = pnand %p3285_p10, %p5316_p1  ;;  %p3440_p13 = scmp.ne.s32.totalorder %s178_s28, %s3439_s9 }
  0x14   : > { %p3447_p5 = scmp.lt.s32.totalorder %s178_s28, %s178_s28  ;;  %p3448_p7 = scmp.lt.s32.totalorder %s3439_s9, %s3439_s9 }
  0x15   : > { %p3430_p12 = pneg %p3737_p11 }
  0x16   : > { %p3449_p10 = por %p3448_p7, %p3447_p5 }
  0x17   : > { %p3442_p0 = pnand %p3440_p13, %p3430_p12 }
  0x19   : > { %p3443_p3 = pneg %p3442_p0 }
  0x1b   : > { %p3450_p9 = pnand %p3449_p10, %p3443_p3 }
  0x1d   : > { %3453 = shalt.err (!%p3450_p9)
}
  0x1e   : > { %3288 = dma.hbm_to_vmem [thread:$0]  (!%p3737_p11), %s5311_s1, 64, %s178_s28, [#allocation7]  }
  0x1f   : > { %s3465_s12 = scalar_lea.vmem %s189_s30, 64  ;;  %p3473_p13 = scmp.lt.s32.totalorder %s189_s30, %s189_s30 }
  0x20   : > { %p3466_p1 = scmp.ne.s32.totalorder %s189_s30, %s3465_s12  ;;  %p3474_p0 = scmp.lt.s32.totalorder %s3465_s12, %s3465_s12 }
  0x22   : > { %p3468_p2 = pnand %p3466_p1, %p3430_p12  ;;  %p3475_p4 = por %p3474_p0, %p3473_p13 }
  0x24   : > { %p3469_p6 = pneg %p3468_p2 }
  0x26   : > { %p3476_p8 = pnand %p3475_p4, %p3469_p6 }
  0x28   : > { %3479 = shalt.err (!%p3476_p8)
}
  0x29   : > { %3291 = dma.hbm_to_vmem [thread:$0]  (!%p3737_p11), %s5312_s2, 64, %s189_s30, [#allocation7]  }
  0x2a   : > { %s3491_s15 = scalar_lea.vmem %s3741_s8, 64  ;;  %p3499_p3 = scmp.lt.s32.totalorder %s3741_s8, %s3741_s8 }
  0x2b   : > { %p3492_p9 = scmp.ne.s32.totalorder %s3741_s8, %s3491_s15  ;;  %p3500_p4 = scmp.lt.s32.totalorder %s3491_s15, %s3491_s15 }
  0x2d   : > { %p3494_p1 = pnand %p3492_p9, %p3430_p12  ;;  %p3501_p6 = por %p3500_p4, %p3499_p3 }
  0x2f   : > { %p3495_p2 = pneg %p3494_p1 }
  0x31   : > { %p3502_p8 = pnand %p3501_p6, %p3495_p2 }
  0x33   : > { %3505 = shalt.err (!%p3502_p8)
}
  0x34   : > { %3294 = dma.hbm_to_vmem [thread:$0]  (!%p3737_p11), %s5314_s4, 64, %s3741_s8, [#allocation10]  }
  0x35   : > { %s3775_s23 = sadd.s32 1, %s3606_s21   ;;  %s30_s28 = sadd.s32 1, %s3602_s20 }
  0x36   : > { %s27_s27 = ssub.s32 %s3606_s21, %s3775_s23  ;;  %p37_p5 = scmp.ne.s32.totalorder %s3602_s20, %s3598_s19 }
  0x37   : > { %p28_p12 = scmp.eq.s32.totalorder %s27_s27, 0  ;;  %p38_p7 = scmp.eq.s32.totalorder %s3606_s21, 0 }
  0x38   : > { %p3306_p10 = scmp.lt.s32.totalorder %s3606_s21, 2  ;;  %p5342_p0 = scmp.eq.s32.totalorder %s3709_s22, 1 }
  0x39   : > { %s3785_s29 = scalar_select %p28_p12, %s3602_s20, %s30_s28  }
  0x3a   : > { %p39_p13 = por %p38_p7, %p37_p5  ;;  %p3789_p9 = por %p5342_p0, %p37_p5 }
  0x3b   : > { %s213_s6 = sand.u32 1, %s3602_s20   ;;  %s3140_s7 = sshll.u32 %s3606_s21, 8 }
  0x3c   : > { %s5343_s30 = scalar_select %p3789_p9, 1, 0 }
  0x3d   : > { %s3076_s8 = sshll.u32 %s213_s6, 4  ;;  %s3798_s11 = scalar_lea.hbm %s5310_s0, %s3140_s7 }
  0x3e   : > { %s217_s12 = scalar_lea.vmem [#allocation3], %s3076_s8  ;;  %p3800_p11 = pnand %p3306_p10, %p39_p13 }
  0x3f   : > { %s225_s13 = sshll.u32 %s217_s12, 4  ;;  %s3806_s15 = scalar_lea.sflag [#allocation4], %s213_s6  ;;  %s3804_s13 = int_to_ptr.vmem [resolvable:$true] %s225_s13 }
  0x40   : > { %s3506_s16 = scalar_lea.hbm %s3798_s11, 256  ;;  %p3508_p2 = pneg %p3800_p11 }
  0x41   : > { %p3507_p1 = scmp.ne.s32.totalorder %s3798_s11, %s3506_s16  ;;  %s3511_s28 = scalar_lea.hbm %s5310_s0, 512 }
  0x42   : > { %p3512_p6 = scmp.lt.s32.totalorder %s3798_s11, %s5310_s0  ;;  %p3513_p8 = scmp.lt.s32.totalorder %s3511_s28, %s3506_s16 }
  0x43   : > { %p3509_p3 = pnand %p3508_p2, %p3507_p1 }
  0x44   : > { %p3514_p12 = por %p3513_p8, %p3512_p6 }
  0x45   : > { %p3510_p4 = pneg %p3509_p3 }
  0x47   : > { %p3515_p5 = pnand %p3514_p12, %p3510_p4 }
  0x49   : > { %3518 = shalt.err (!%p3515_p5)
}
  0x4a   : > { %s3519_s6 = scalar_lea.vmem %s3804_s13, 256  ;;  %s3611_s9 = smov [#allocation3]  }
  0x4b   : > { %p3520_p7 = scmp.ne.s32.totalorder %s3804_s13, %s3519_s6  ;;  %s3524_s10 = sshll.u32 %s3611_s9, 4  ;;  %s3525_s10 = int_to_ptr.vmem [resolvable:$false] %s3524_s10 }
  0x4c   : > { %s3526_s12 = scalar_lea.vmem %s3525_s10, 512  ;;  %p3527_p0 = scmp.lt.s32.totalorder %s3804_s13, %s3525_s10 }
  0x4d   : > { %p3522_p10 = pnand %p3520_p7, %p3508_p2  ;;  %p3528_p1 = scmp.lt.s32.totalorder %s3526_s12, %s3519_s6 }
  0x4f   : > { %p3523_p13 = pneg %p3522_p10  ;;  %p3529_p3 = por %p3528_p1, %p3527_p0 }
  0x51   : > { %p3530_p9 = pnand %p3529_p3, %p3523_p13 }
  0x53   : > { %3533 = shalt.err (!%p3530_p9)
}
  0x54   : > { %s3612_s16 = smov 128   ;;  %s3613_s17 = smov 8  }
  0x55   : > { %3298 = dma.hbm_to_vmem [thread:$0]  (!%p3800_p11), %s3798_s11, 256, %s3804_s13, %s3806_s15, %s3612_s16, %s3612_s16, %s3613_s17  }
  0x56   : > { %p5345_p2 = scmp.ne.s32.totalorder %s5340_s26, 0 }
  0x58   : > { %237 = sbr.rel (%p5345_p2) target bundleno = 2382 (0x94e), region = 40 }
  0x5d   : > { %s3830_s27 = sand.u32 1, %s3598_s19   ;;  %p5346_p9 = scmp.ne.s32.totalorder %s5338_s24, 0 }
  0x5e   : > { %s3081_s28 = sshll.u32 %s3830_s27, 4  ;;  %s240_s7 = scalar_lea.sflag [#allocation4], %s3830_s27 }
  0x5f   : > { %s3834_s8 = scalar_lea.vmem [#allocation3], %s3081_s28 }
  0x60   : > { %3577 = dma.done.wait (%p5346_p9), %s240_s7, 256  }
  0x61   : > { %3579 = vsyncadd (%p5346_p9), %s240_s7, 4294967040  ;;  %p5347_p11 = scmp.eq.s32.totalorder %s3709_s22, 0 }
  0x63   : > { %3581 = dma.done.wait (%p5347_p11), [#allocation7], 128   ;;  %p5348_p4 = pmov %p5347_p11 }
  0x65   : > { %3583 = vsyncadd (%p5348_p4), [#allocation7], 4294967168  ;;  %p5349_p6 = pmov %p5348_p4 }
  0x66   : > { %p5350_p8 = pmov %p5348_p4 }
  0x67   : > { %3585 = dma.done.wait (%p5349_p6), [#allocation10], 64  }
  0x68   : > { %3587 = vsyncadd (%p5350_p8), [#allocation10], 4294967232  ;;  %v5326_v0 = vmov 0.0   ;;  %v303_v1 = vld [vmem:[%s3834_s8] sm:$0xff]  ;;  %s3615_s24 = smov 19   ;;  %s3616_s26 = smov 31  }
  0x69   : > { %284 = vst [vmem:[#allocation2] sm:$0xf] %v5326_v0  ;;  %285 = vst [vmem:[#allocation2 + $0x8] sm:$0xf] %v5326_v0  ;;  %944 = vmatprep.mubr.f32.mxu0 %v5326_v0  ;;  %1015 = vmatprep.mubr.f32.mxu1 %v5326_v0  ;;  %s3617_s11 = smov 21   ;;  %s3618_s13 = smov 33   ;;  %v348_v2 = vcombine.high %v303_v1, %v303_v1 }
  0x6a   : > { %286 = vst [vmem:[#allocation2 + $0x10] sm:$0xf] %v5326_v0  ;;  %287 = vst [vmem:[#allocation2 + $0x18] sm:$0xf] %v5326_v0  ;;  %306 = vrot.lane.b32.xlu1 %v303_v1, %s3615_s24  ;;  %336 = vrot.lane.b32.xlu0 %v303_v1, %s3616_s26  ;;  %s3619_s14 = smov 45   ;;  %s3620_s15 = smov 35  }
  0x6b   : > { %288 = vst [vmem:[#allocation2 + $0x20] sm:$0xf] %v5326_v0  ;;  %vm289_vm0 = vcmask 93184   ;;  %s3621_s6 = smov 37   ;;  %s3622_s9 = smov 47   ;;  %v304_v3 = vld [vmem:[%s3834_s8 + $0x8] sm:$0xff] }
  0x6c   : > { %290 = vst.msk [vmem:[#allocation2 + $0x28] sm:$0xf] %vm289_vm0, %v5326_v0  ;;  %s3623_s10 = smov 23   ;;  %s3624_s12 = smov 39   ;;  %v428_v4 = vcombine.high %v304_v3, %v304_v3  ;;  %vm309_vm1 = vcmask 281752   ;;  %vm341_vm2 = vcmask 117760  }
  0x6d   : > { %s3625_s16 = smov 49   ;;  %s3626_s17 = smov 25   ;;  %vm314_vm3 = vcmask 429352   ;;  %vm346_vm4 = vcmask 265352   ;;  %vm379_vm5 = vcmask 101376   ;;  %vm352_vm6 = vcmask 412952  }
  0x6e   : > { %311 = vrot.lane.b32.xlu1 %v303_v1, %s3617_s11  ;;  %343 = vrot.lane.b32.xlu0 %v303_v1, %s3618_s13  ;;  %s3627_s28 = smov 41   ;;  %s3628_s7 = smov 89   ;;  %vm357_vm7 = vcmask 560552   ;;  %vm384_vm8 = vcmask 248952   ;;  %vm319_vm9 = vcmask 576952   ;;  %vm362_vm10 = vcmask 708152  }
  0x6f   : > { %s3629_s26 = smov 27   ;;  %s3630_s11 = smov 43   ;;  %vm389_vm11 = vcmask 396552   ;;  %vm324_vm12 = vcmask 724552   ;;  %vm367_vm13 = vcmask 855752   ;;  %vm329_vm14 = vcmask 872152  }
  0x70   : > { %s3631_s13 = smov 91   ;;  %s3636_s8 = smov 107   ;;  %vm372_vm15 = vcmask 1003352   ;;  %vm377_vm0 = vcmask 1044456  }
  0x71   : > { %p5449_p5 = scmp.ne.s32.totalorder %s5343_s30, 0 }
  0x72   : > { %374 = vrot.lane.b32.xlu0 %v348_v2, %s3619_s14  ;;  %349 = vrot.lane.b32.xlu1 %v348_v2, %s3620_s15  ;;  %s3632_s14 = smov 29   ;;  %s3633_s15 = smov 93  }
  0x73   : > { %v667_v5 = vld [vmem:[#allocation2 + $0x28] sm:$0xf] }
  0x74   : > { %v802_v6 = vrot.slane %v667_v5, 4 }
  0x76   : > { %354 = vrot.lane.b32.xlu0 %v348_v2, %s3621_s6  ;;  %381 = vrot.lane.b32.xlu1 %v348_v2, %s3622_s9  ;;  %s3634_s6 = smov 95   ;;  %s3635_s9 = smov 97  }
  0x7a   : > { %316 = vrot.lane.b32.xlu0 %v303_v1, %s3623_s10  ;;  %359 = vrot.lane.b32.xlu1 %v348_v2, %s3624_s12  ;;  %s3637_s10 = smov 99   ;;  %s3638_s12 = smov 109  }
  0x7e   : > { %386 = vrot.lane.b32.xlu0 %v348_v2, %s3625_s16  ;;  %321 = vrot.lane.b32.xlu1 %v303_v1, %s3626_s17  ;;  %s3639_s16 = smov 101   ;;  %s3640_s17 = smov 111  }
  0x82   : > { %364 = vrot.lane.b32.xlu0 %v348_v2, %s3627_s28  ;;  %392 = vrot.lane.b32.xlu1 %v304_v3, %s3628_s7  ;;  %s3641_s28 = smov 103   ;;  %s3642_s7 = smov 113  }
  0x86   : > { %326 = vrot.lane.b32.xlu0 %v303_v1, %s3629_s26  ;;  %369 = vrot.lane.b32.xlu1 %v348_v2, %s3630_s11  ;;  %s3643_s26 = smov 105   ;;  %s3644_s11 = smov 115  }
  0x8a   : > { %396 = vrot.lane.b32.xlu0 %v304_v3, %s3631_s13  ;;  %331 = vrot.lane.b32.xlu1 %v303_v1, %s3632_s14  ;;  %s3645_s14 = smov 117  }
  0x8e   : > { %400 = vrot.lane.b32.xlu0 %v304_v3, %s3633_s15  ;;  %405 = vrot.lane.b32.xlu1 %v304_v3, %s3634_s6  ;;  %s3646_s15 = smov 119   ;;  %s3647_s6 = smov 90  }
  0x92   : > { %409 = vrot.lane.b32.xlu1 %v304_v3, %s3635_s9  ;;  %434 = vrot.lane.b32.xlu0 %v428_v4, %s3636_s8  ;;  %s3648_s9 = smov 92   ;;  %s3649_s8 = smov 126  }
  0x96   : > { %413 = vrot.lane.b32.xlu1 %v304_v3, %s3637_s10  ;;  %441 = vrot.lane.b32.xlu0 %v428_v4, %s3638_s12  ;;  %s3650_s10 = smov 127  }
  0x9a   : > { %418 = vrot.lane.b32.xlu1 %v304_v3, %s3639_s16  ;;  %446 = vrot.lane.b32.xlu0 %v428_v4, %s3640_s17  ;;  %s3651_s16 = smov 108   ;;  %s3652_s17 = smov 110  }
  0x9e   : > { %423 = vrot.lane.b32.xlu1 %v304_v3, %s3641_s28  ;;  %451 = vrot.lane.b32.xlu0 %v428_v4, %s3642_s7  ;;  %s3654_s7 = smov 58  }
  0xa2   : > { %429 = vrot.lane.b32.xlu1 %v428_v4, %s3643_s26  ;;  %456 = vrot.lane.b32.xlu0 %v428_v4, %s3644_s11  ;;  %s3268_s11 = smul.u32 384, %s3709_s22  ;;  %s2954_s22 = scalar_lea.sflag [#allocation5], %s3830_s27 }
  0xa6   : > { %461 = vrot.lane.b32.xlu0 %v428_v4, %s3645_s14  ;;  %466 = vrot.lane.b32.xlu1 %v428_v4, %s3646_s15 }
  0xaa   : > { %836 = vrot.lane.b32.xlu0 %v667_v5, %s3647_s6  ;;  %789 = vrot.lane.b32.xlu1 %v667_v5, %s3648_s9 }
  0xae   : > { %813 = vrot.lane.b32.xlu0 %v802_v6, %s3631_s13 }
  0xdc   : > { %v307_v7 = vpop.permute.xlu1 %306  ;;  %v337_v8 = vpop.permute.xlu0 %336 }
  0xdd   : > { %310 = vst.msk [vmem:[#allocation2] sm:$0xf] %vm309_vm1, %v307_v7  ;;  %vm334_vm1 = vcmask 1019752  }
  0xde   : > { %342 = vst.msk [vmem:[#allocation2 + $0x8] sm:$0xf] %vm341_vm2, %v337_v8  ;;  %vm339_vm2 = vcmask 1044472  }
  0xe0   : > { %v312_v9 = vpop.permute.xlu1 %311  ;;  %v344_v10 = vpop.permute.xlu0 %343 }
  0xe1   : > { %315 = vst.msk [vmem:[#allocation2] sm:$0xf] %vm314_vm3, %v312_v9  ;;  %vm439_vm3 = vcmask 84992  }
  0xe2   : > { %347 = vst.msk [vmem:[#allocation2 + $0x8] sm:$0xf] %vm346_vm4, %v344_v10  ;;  %vm416_vm4 = vcmask 544152  }
  0xe4   : > { %v375_v11 = vpop.permute.xlu0 %374  ;;  %v350_v12 = vpop.permute.xlu1 %349 }
  0xe5   : > { %380 = vst.msk [vmem:[#allocation2 + $0x10] sm:$0xf] %vm379_vm5, %v375_v11 }
  0xe6   : > { %353 = vst.msk [vmem:[#allocation2 + $0x8] sm:$0xf] %vm352_vm6, %v350_v12  ;;  %vm444_vm6 = vcmask 232552  }
  0xe8   : > { %v355_v13 = vpop.permute.xlu0 %354  ;;  %v382_v14 = vpop.permute.xlu1 %381 }
  0xe9   : > { %358 = vst.msk [vmem:[#allocation2 + $0x8] sm:$0xf] %vm357_vm7, %v355_v13  ;;  %vm449_vm7 = vcmask 380152  }
  0xea   : > { %385 = vst.msk [vmem:[#allocation2 + $0x10] sm:$0xf] %vm384_vm8, %v382_v14 }
  0xec   : > { %v317_v15 = vpop.permute.xlu0 %316  ;;  %v360_v16 = vpop.permute.xlu1 %359 }
  0xed   : > { %320 = vst.msk [vmem:[#allocation2] sm:$0xf] %vm319_vm9, %v317_v15  ;;  %vm454_vm9 = vcmask 527752  }
  0xee   : > { %363 = vst.msk [vmem:[#allocation2 + $0x8] sm:$0xf] %vm362_vm10, %v360_v16  ;;  %vm432_vm10 = vcmask 986952  }
  0xf0   : > { %v387_v17 = vpop.permute.xlu0 %386  ;;  %v322_v18 = vpop.permute.xlu1 %321 }
  0xf1   : > { %390 = vst.msk [vmem:[#allocation2 + $0x10] sm:$0xf] %vm389_vm11, %v387_v17 }
  0xf2   : > { %325 = vst.msk [vmem:[#allocation2] sm:$0xf] %vm324_vm12, %v322_v18  ;;  %vm437_vm12 = vcmask 1044440  }
  0xf4   : > { %v365_v19 = vpop.permute.xlu0 %364  ;;  %v393_v20 = vpop.permute.xlu1 %392 }
  0xf5   : > { %368 = vst.msk [vmem:[#allocation2 + $0x8] sm:$0xf] %vm367_vm13, %v365_v19  ;;  %395 = vst.msk [vmem:[#allocation2 + $0x10] sm:$0xf] %vm367_vm13, %v393_v20  ;;  %vm464_vm13 = vcmask 822952  }
  0xf8   : > { %v327_v21 = vpop.permute.xlu0 %326  ;;  %v370_v22 = vpop.permute.xlu1 %369 }
  0xf9   : > { %330 = vst.msk [vmem:[#allocation2] sm:$0xf] %vm329_vm14, %v327_v21  ;;  %vm469_vm14 = vcmask 970552  }
  0xfa   : > { %373 = vst.msk [vmem:[#allocation2 + $0x8] sm:$0xf] %vm372_vm15, %v370_v22 }
  0xfb   : > { %378 = vst.msk [vmem:[#allocation2 + $0x8] sm:$0xf] %vm377_vm0, %v375_v11 }
  0xfc   : > { %v397_v23 = vpop.permute.xlu0 %396  ;;  %v332_v24 = vpop.permute.xlu1 %331 }
  0xfd   : > { %399 = vst.msk [vmem:[#allocation2 + $0x10] sm:$0xf] %vm372_vm15, %v397_v23  ;;  %vm838_vm15 = vcmask 736256  }
  0xfe   : > { %335 = vst.msk [vmem:[#allocation2] sm:$0xf] %vm334_vm1, %v332_v24  ;;  %vm791_vm1 = vcmask 752640  }
  0xff   : > { %340 = vst.msk [vmem:[#allocation2] sm:$0xf] %vm339_vm2, %v337_v8  ;;  %vm815_vm2 = vcmask 744448  }
 0x100   : > { %v401_v25 = vpop.permute.xlu0 %400  ;;  %v406_v26 = vpop.permute.xlu1 %405 }
 0x101   : > { %403 = vst.msk [vmem:[#allocation2 + $0x10] sm:$0xf] %vm377_vm0, %v401_v25  ;;  %vm5320_vm0 = vcmask 1043456  }
 0x102   : > { %404 = vst.msk [vmem:[#allocation2 + $0x18] sm:$0xf] %vm379_vm5, %v401_v25  ;;  %v3876_v32 = vld [vmem:[#allocation2 + $0x8] sm:$0xf]  ;;  %vm421_vm5 = vcmask 691752  }
 0x103   : > { %408 = vst.msk [vmem:[#allocation2 + $0x18] sm:$0xf] %vm384_vm8, %v406_v26  ;;  %vm426_vm8 = vcmask 839352   ;;  %v674_v46 = vrot.slane %v3876_v32, 4 }
 0x104   : > { %v410_v27 = vpop.permute.xlu1 %409  ;;  %v435_v28 = vpop.permute.xlu0 %434 }
 0x105   : > { %412 = vst.msk [vmem:[#allocation2 + $0x18] sm:$0xf] %vm389_vm11, %v410_v27  ;;  %vm459_vm11 = vcmask 675352  }
 0x106   : > { %v3870_v29 = vld [vmem:[#allocation2] sm:$0xf]  ;;  %440 = vst.msk [vmem:[#allocation2 + $0x20] sm:$0xf] %vm439_vm3, %v435_v28  ;;  %vm768_vm3 = vcmask 883712  }
 0x107   : > { %779 = vrot.lane.b32.xlu1 %v3870_v29, %s3648_s9  ;;  %826 = vrot.lane.b32.xlu0 %v3870_v29, %s3647_s6  ;;  %v673_v43 = vrot.slane %v3870_v29, 4 }
 0x108   : > { %v414_v30 = vpop.permute.xlu1 %413  ;;  %v442_v31 = vpop.permute.xlu0 %441  ;;  %v3886_v35 = vld [vmem:[#allocation2 + $0x10] sm:$0xf] }
 0x109   : > { %417 = vst.msk [vmem:[#allocation2 + $0x18] sm:$0xf] %vm416_vm4, %v414_v30  ;;  %v675_v45 = vrot.slane %v3886_v35, 4  ;;  %vm748_vm4 = vcmask 891904  }
 0x10a   : > { %445 = vst.msk [vmem:[#allocation2 + $0x20] sm:$0xf] %vm444_vm6, %v442_v31  ;;  %vm5325_vm6 = vcmask 900096  }
 0x10b   : > { %738 = vrot.lane.b32.xlu1 %v3870_v29, %s3638_s12  ;;  %828 = vrot.lane.b32.xlu0 %v3876_v32, %s3647_s6 }
 0x10c   : > { %v419_v33 = vpop.permute.xlu1 %418  ;;  %v447_v34 = vpop.permute.xlu0 %446 }
 0x10d   : > { %422 = vst.msk [vmem:[#allocation2 + $0x18] sm:$0xf] %vm421_vm5, %v419_v33  ;;  %vm5324_vm5 = vcmask 1031168  }
 0x10e   : > { %450 = vst.msk [vmem:[#allocation2 + $0x20] sm:$0xf] %vm449_vm7, %v447_v34  ;;  %vm5323_vm7 = vcmask 1039360  }
 0x10f   : > { %698 = vrot.lane.b32.xlu1 %v3870_v29, %s3649_s8  ;;  %781 = vrot.lane.b32.xlu0 %v3876_v32, %s3648_s9 }
 0x110   : > { %v424_v36 = vpop.permute.xlu1 %423  ;;  %v452_v37 = vpop.permute.xlu0 %451 }
 0x111   : > { %427 = vst.msk [vmem:[#allocation2 + $0x18] sm:$0xf] %vm426_vm8, %v424_v36  ;;  %vm866_vm8 = vcmask 293888  }
 0x112   : > { %455 = vst.msk [vmem:[#allocation2 + $0x20] sm:$0xf] %vm454_vm9, %v452_v37  ;;  %vm5321_vm9 = vmmov 0  }
 0x113   : > { %830 = vrot.lane.b32.xlu1 %v3886_v35, %s3647_s6  ;;  %742 = vrot.lane.b32.xlu0 %v3886_v35, %s3638_s12 }
 0x114   : > { %v430_v38 = vpop.permute.xlu1 %429  ;;  %v457_v39 = vpop.permute.xlu0 %456 }
 0x115   : > { %433 = vst.msk [vmem:[#allocation2 + $0x18] sm:$0xf] %vm432_vm10, %v430_v38  ;;  %vm291_vm10 = vcmask 154628  }
 0x116   : > { %460 = vst.msk [vmem:[#allocation2 + $0x20] sm:$0xf] %vm459_vm11, %v457_v39 }
 0x117   : > { %438 = vst.msk [vmem:[#allocation2 + $0x18] sm:$0xf] %vm437_vm12, %v435_v28  ;;  %783 = vrot.lane.b32.xlu1 %v3886_v35, %s3648_s9  ;;  %702 = vrot.lane.b32.xlu0 %v3886_v35, %s3649_s8 }
 0x118   : > { %v462_v40 = vpop.permute.xlu0 %461  ;;  %v467_v41 = vpop.permute.xlu1 %466  ;;  %292 = vst.msk [vmem:[#allocation2] sm:$0xf0] %vm291_vm10, %v5326_v0 }
 0x119   : > { %465 = vst.msk [vmem:[#allocation2 + $0x20] sm:$0xf] %vm464_vm13, %v462_v40 }
 0x11a   : > { %470 = vst.msk [vmem:[#allocation2 + $0x20] sm:$0xf] %vm469_vm14, %v467_v41 }
 0x11b   : > { %740 = vrot.lane.b32.xlu1 %v3876_v32, %s3638_s12 }
 0x11c   : > { %v3945_v49 = vpop.permute.xlu0 %836  ;;  %v3947_v50 = vpop.permute.xlu1 %789 }
 0x11e   : > { %v3898_v42 = vld [vmem:[#allocation2 + $0x18] sm:$0xf] }
 0x11f   : > { %700 = vrot.lane.b32.xlu1 %v3876_v32, %s3649_s8  ;;  %832 = vrot.lane.b32.xlu0 %v3898_v42, %s3647_s6  ;;  %v676_v47 = vrot.slane %v3898_v42, 4 }
 0x120   : > { %v3949_v51 = vpop.permute.xlu0 %813 }
 0x121   : > { %v3912_v44 = vld [vmem:[#allocation2 + $0x20] sm:$0xf] }
 0x122   : > { %v677_v48 = vrot.slane %v3912_v44, 4 }
 0x123   : > { %704 = vrot.lane.b32.xlu1 %v3898_v42, %s3649_s8  ;;  %785 = vrot.lane.b32.xlu0 %v3898_v42, %s3648_s9 }
 0x127   : > { %744 = vrot.lane.b32.xlu0 %v3898_v42, %s3638_s12  ;;  %678 = vrot.lane.b32.xlu1 %v673_v43, %s3650_s10 }
 0x12b   : > { %834 = vrot.lane.b32.xlu1 %v3912_v44, %s3647_s6  ;;  %803 = vrot.lane.b32.xlu0 %v673_v43, %s3631_s13 }
 0x12f   : > { %787 = vrot.lane.b32.xlu1 %v3912_v44, %s3648_s9  ;;  %758 = vrot.lane.b32.xlu0 %v673_v43, %s3651_s16 }
 0x133   : > { %746 = vrot.lane.b32.xlu1 %v3912_v44, %s3638_s12  ;;  %718 = vrot.lane.b32.xlu0 %v673_v43, %s3652_s17 }
 0x137   : > { %807 = vrot.lane.b32.xlu1 %v675_v45, %s3631_s13  ;;  %706 = vrot.lane.b32.xlu0 %v3912_v44, %s3649_s8 }
 0x13b   : > { %760 = vrot.lane.b32.xlu1 %v674_v46, %s3651_s16  ;;  %805 = vrot.lane.b32.xlu0 %v674_v46, %s3631_s13 }
 0x13f   : > { %720 = vrot.lane.b32.xlu1 %v674_v46, %s3652_s17  ;;  %762 = vrot.lane.b32.xlu0 %v675_v45, %s3651_s16 }
 0x143   : > { %680 = vrot.lane.b32.xlu1 %v674_v46, %s3650_s10  ;;  %722 = vrot.lane.b32.xlu0 %v675_v45, %s3652_s17 }
 0x147   : > { %724 = vrot.lane.b32.xlu1 %v676_v47, %s3652_s17  ;;  %682 = vrot.lane.b32.xlu0 %v675_v45, %s3650_s10 }
 0x14b   : > { %811 = vrot.lane.b32.xlu1 %v677_v48, %s3631_s13  ;;  %809 = vrot.lane.b32.xlu0 %v676_v47, %s3631_s13 }
 0x14f   : > { %766 = vrot.lane.b32.xlu1 %v677_v48, %s3651_s16  ;;  %764 = vrot.lane.b32.xlu0 %v676_v47, %s3651_s16 }
 0x153   : > { %684 = vrot.lane.b32.xlu1 %v676_v47, %s3650_s10  ;;  %726 = vrot.lane.b32.xlu0 %v677_v48, %s3652_s17 }
 0x157   : > { %686 = vrot.lane.b32.xlu0 %v677_v48, %s3650_s10 }
 0x179   : > { %v780_v52 = vpop.permute.xlu1 %779  ;;  %v827_v53 = vpop.permute.xlu0 %826 }
 0x17d   : > { %v739_v54 = vpop.permute.xlu1 %738  ;;  %v829_v55 = vpop.permute.xlu0 %828 }
 0x17e   : > { %v839_v61 = vsel %vm838_vm15, %v827_v53, %v829_v55 }
 0x181   : > { %v3951_v56 = vpop.permute.xlu1 %698  ;;  %v782_v57 = vpop.permute.xlu0 %781 }
 0x182   : > { %v792_v20 = vsel %vm791_vm1, %v780_v52, %v782_v57 }
 0x185   : > { %v831_v58 = vpop.permute.xlu1 %830  ;;  %v3954_v60 = vpop.permute.xlu0 %742 }
 0x186   : > { %v840_v59 = vsel %vm838_vm15, %v829_v55, %v831_v58  ;;  %v4003_v55 = vld [vmem:[#allocation6] sm:$0xf] }
 0x187   : > { %3095 = vmatprep.subr.msk.mxu0 %vm5320_vm0, %v840_v59 }
 0x188   : > { %3096 = vmatpush1.msk.msra.mxu0 %vm5320_vm0, %v839_v61 }
 0x189   : > { %v3959_v62 = vpop.permute.xlu1 %783  ;;  %v3961_v63 = vpop.permute.xlu0 %702 }
 0x18a   : > { %v793_v21 = vsel %vm791_vm1, %v782_v57, %v3959_v62 }
 0x18d   : > { %v741_v1 = vpop.permute.xlu1 %740 }
 0x18e   : > { %v750_v30 = vsel %vm748_vm4, %v741_v1, %v3954_v60  ;;  %v749_v33 = vsel %vm748_vm4, %v739_v54, %v741_v1 }
 0x191   : > { %v701_v2 = vpop.permute.xlu1 %700  ;;  %v833_v3 = vpop.permute.xlu0 %832 }
 0x192   : > { %v841_v11 = vsel %vm838_vm15, %v831_v58, %v833_v3  ;;  %v710_v40 = vsel %vm5324_vm5, %v701_v2, %v3961_v63  ;;  %v709_v43 = vsel %vm5324_vm5, %v3951_v56, %v701_v2 }
 0x195   : > { %v3963_v4 = vpop.permute.xlu1 %704  ;;  %v3965_v5 = vpop.permute.xlu0 %785 }
 0x196   : > { %v794_v57 = vsel %vm791_vm1, %v3959_v62, %v3965_v5 }
 0x199   : > { %v3967_v6 = vpop.permute.xlu0 %744  ;;  %v679_v7 = vpop.permute.xlu1 %678 }
 0x19d   : > { %v835_v8 = vpop.permute.xlu1 %834  ;;  %v804_v9 = vpop.permute.xlu0 %803 }
 0x19e   : > { %v842_v10 = vsel %vm838_vm15, %v833_v3, %v835_v8  ;;  %v843_v58 = vsel %vm838_vm15, %v835_v8, %v3945_v49 }
 0x19f   : > { %3098 = vmatprep.subr.msk.mxu1 %vm5320_vm0, %v842_v10 }
 0x1a0   : > { %3099 = vmatpush1.msk.msra.mxu1 %vm5320_vm0, %v841_v11 }
 0x1a1   : > { %v788_v12 = vpop.permute.xlu1 %787  ;;  %v759_v13 = vpop.permute.xlu0 %758 }
 0x1a2   : > { %v795_v59 = vsel %vm791_vm1, %v3965_v5, %v788_v12 }
 0x1a5   : > { %v3973_v14 = vpop.permute.xlu1 %746  ;;  %v719_v15 = vpop.permute.xlu0 %718 }
 0x1a6   : > { %v752_v8 = vsel %vm748_vm4, %v3967_v6, %v3973_v14 }
 0x1a9   : > { %v808_v16 = vpop.permute.xlu1 %807  ;;  %v3975_v17 = vpop.permute.xlu0 %706 }
 0x1ad   : > { %v761_v18 = vpop.permute.xlu1 %760  ;;  %v806_v19 = vpop.permute.xlu0 %805 }
 0x1ae   : > { %v816_v22 = vsel %vm815_vm2, %v804_v9, %v806_v19  ;;  %v817_v23 = vsel %vm815_vm2, %v806_v19, %v808_v16  ;;  %v769_v26 = vsel %vm768_vm3, %v759_v13, %v761_v18  ;;  %v711_v19 = vsel %vm5324_vm5, %v3961_v63, %v3963_v4 }
 0x1af   : > { %v861_v24 = vsel %vm5320_vm0, %v793_v21, %v817_v23  ;;  %v860_v25 = vsel %vm5320_vm0, %v792_v20, %v816_v22  ;;  %v855_v36 = vsel %vm5320_vm0, %v749_v33, %v769_v26 }
 0x1b0   : > { %904 = vmatprep.subr.mxu0 %v861_v24 }
 0x1b1   : > { %v721_v27 = vpop.permute.xlu1 %720  ;;  %905 = vmatpush1.msra.mxu0 %v860_v25  ;;  %v763_v28 = vpop.permute.xlu0 %762 }
 0x1b2   : > { %v770_v31 = vsel %vm768_vm3, %v761_v18, %v763_v28  ;;  %v729_v37 = vsel %vm5325_vm6, %v719_v15, %v721_v27  ;;  %v712_v15 = vsel %vm5324_vm5, %v3963_v4, %v3975_v17 }
 0x1b3   : > { %v856_v34 = vsel %vm5320_vm0, %v750_v30, %v770_v31  ;;  %v850_v46 = vsel %vm5320_vm0, %v709_v43, %v729_v37 }
 0x1b4   : > { %906 = vmatprep.subr.mxu0 %v856_v34 }
 0x1b5   : > { %v681_v38 = vpop.permute.xlu1 %680  ;;  %907 = vmatpush1.msra.mxu0 %v855_v36  ;;  %v723_v39 = vpop.permute.xlu0 %722 }
 0x1b6   : > { %v730_v41 = vsel %vm5325_vm6, %v721_v27, %v723_v39  ;;  %v689_v47 = vsel %vm5323_vm7, %v679_v7, %v681_v38 }
 0x1b7   : > { %v851_v45 = vsel %vm5320_vm0, %v710_v40, %v730_v41  ;;  %v845_v56 = vsel %vm5320_vm0, %v3870_v29, %v689_v47 }
 0x1b8   : > { %908 = vmatprep.subr.mxu0 %v851_v45 }
 0x1b9   : > { %v725_v48 = vpop.permute.xlu1 %724  ;;  %909 = vmatpush1.msra.mxu0 %v850_v46  ;;  %v683_v52 = vpop.permute.xlu0 %682 }
 0x1ba   : > { %v690_v53 = vsel %vm5323_vm7, %v681_v38, %v683_v52  ;;  %v731_v13 = vsel %vm5325_vm6, %v723_v39, %v725_v48 }
 0x1bb   : > { %v846_v54 = vsel %vm5320_vm0, %v3876_v32, %v690_v53  ;;  %v796_v32 = vsel %vm791_vm1, %v788_v12, %v3947_v50  ;;  %v852_v21 = vsel %vm5320_vm0, %v711_v19, %v731_v13 }
 0x1bc   : > { %910 = vmatprep.subr.mxu0 %v846_v54 }
 0x1bd   : > { %v812_v61 = vpop.permute.xlu1 %811  ;;  %911 = vmatpush1.msra.mxu0 %v845_v56  ;;  %v810_v1 = vpop.permute.xlu0 %809 }
 0x1be   : > { %v820_v2 = vsel %vm815_vm2, %v812_v61, %v3949_v51  ;;  %v818_v29 = vsel %vm815_vm2, %v808_v16, %v810_v1  ;;  %v819_v3 = vsel %vm815_vm2, %v810_v1, %v812_v61  ;;  %3097 = vmatmul.mubr.msk.f32.vlgmr.msra.gmra.mxu0 %vm866_vm8, %v4003_v55  ;;  %3175 = vmatprep.subr.mxu0 %v5326_v0 }
 0x1bf   : > { %3176 = vmatpush3.msk.msra.mxu0 %vm5320_vm0, %v843_v58  ;;  %v863_v49 = vsel %vm5320_vm0, %v795_v59, %v819_v3  ;;  %v862_v50 = vsel %vm5320_vm0, %v794_v57, %v818_v29  ;;  %v864_v62 = vsel %vm5320_vm0, %v796_v32, %v820_v2  ;;  %3185 = vmatprep.mubr.msk.f32.mxu0 %vm5321_vm9, %v5326_v0 }
 0x1c0   : > { %975 = vmatprep.subr.mxu1 %v863_v49  ;;  %3177 = vmatprep.subr.mxu0 %v5326_v0  ;;  %v751_v51 = vsel %vm748_vm4, %v3954_v60, %v3967_v6 }
 0x1c1   : > { %v767_v5 = vpop.permute.xlu1 %766  ;;  %976 = vmatpush1.msra.mxu1 %v862_v50  ;;  %3178 = vmatpush3.msra.mxu0 %v864_v62  ;;  %v765_v7 = vpop.permute.xlu0 %764 }
 0x1c2   : > { %v771_v9 = vsel %vm768_vm3, %v763_v28, %v765_v7  ;;  %v772_v10 = vsel %vm768_vm3, %v765_v7, %v767_v5  ;;  %3179 = vmatprep.subr.mxu0 %v5326_v0  ;;  %v859_v11 = vsel %vm5320_vm0, %v3973_v14, %v767_v5 }
 0x1c3   : > { %3180 = vmatpush3.msra.mxu0 %v859_v11  ;;  %v858_v60 = vsel %vm5320_vm0, %v752_v8, %v772_v10  ;;  %v857_v12 = vsel %vm5320_vm0, %v751_v51, %v771_v9 }
 0x1c4   : > { %977 = vmatprep.subr.mxu1 %v858_v60  ;;  %3181 = vmatprep.subr.mxu0 %v5326_v0 }
 0x1c5   : > { %978 = vmatpush1.msra.mxu1 %v857_v12  ;;  %v727_v6 = vpop.permute.xlu0 %726  ;;  %v685_v16 = vpop.permute.xlu1 %684 }
 0x1c6   : > { %v732_v18 = vsel %vm5325_vm6, %v725_v48, %v727_v6  ;;  %v854_v14 = vsel %vm5320_vm0, %v3975_v17, %v727_v6  ;;  %v691_v22 = vsel %vm5323_vm7, %v683_v52, %v685_v16  ;;  %vm295_vm6 = vcmask 1048524  }
 0x1c7   : > { %3182 = vmatpush3.msra.mxu0 %v854_v14  ;;  %v853_v20 = vsel %vm5320_vm0, %v712_v15, %v732_v18  ;;  %v847_v4 = vsel %vm5320_vm0, %v3886_v35, %v691_v22  ;;  %296 = vst.msk [vmem:[#allocation2 + $0x20] sm:$0xf0] %vm295_vm6, %v5326_v0  ;;  %vm297_vm6 = vcmask 97284  }
 0x1c8   : > { %979 = vmatprep.subr.mxu1 %v853_v20  ;;  %3183 = vmatprep.subr.mxu0 %v5326_v0  ;;  %298 = vst.msk [vmem:[#allocation2 + $0x28] sm:$0xf0] %vm297_vm6, %v5326_v0  ;;  %vm5374_vm6 = vmmov 0  }
 0x1c9   : > { %980 = vmatpush1.msra.mxu1 %v852_v21  ;;  %v687_v23 = vpop.permute.xlu0 %686 }
 0x1ca   : > { %v692_v24 = vsel %vm5323_vm7, %v685_v16, %v687_v23  ;;  %v849_v17 = vsel %vm5320_vm0, %v3912_v44, %v687_v23  ;;  %v471_v44 = vlaneseq }
 0x1cb   : > { %3184 = vmatpush3.msra.mxu0 %v849_v17  ;;  %v848_v63 = vsel %vm5320_vm0, %v3898_v42, %v692_v24 }
 0x1cc   : > { %981 = vmatprep.subr.mxu1 %v848_v63  ;;  %3186 = vmatmul.mubr.msk.f32.vlgmr.msra.gmra.mxu0 %vm866_vm8, %v4003_v55  ;;  %v472_v25 = vand.u32 127, %v471_v44 }
 0x1cd   : > { %982 = vmatpush1.msra.mxu1 %v847_v4  ;;  %1596 = vmatprep.mubr.f32.mxu0 %v5326_v0 }
 0x1ce   : > { %3100 = vmatmul.mubr.msk.f32.vlgmr.msra.gmra.mxu1 %vm866_vm8, %v4003_v55  ;;  %v473_v26 = vadd.s32 128, %v472_v25  ;;  %v4071_v27 = vmul.u32.u64.low 3372735055, %v472_v25  ;;  %v4072_v42 = vmul.u32.u64.high 3372735055, %v472_v25, %v4071_v27  ;;  %v474_v38 = vadd.s32 256, %v472_v25 }
 0x1cf   : > { %1525 = vmatprep.mubr.f32.mxu1 %v5326_v0  ;;  %v476_v45 = vadd.s32 512, %v472_v25  ;;  %v475_v47 = vadd.s32 384, %v472_v25 }
 0x1d0   : > { %v4074_v28 = vmul.u32.u64.low 3372735055, %v473_v26  ;;  %v4075_v30 = vmul.u32.u64.high 3372735055, %v473_v26, %v4074_v28  ;;  %v483_v35 = vshrl.u32 %v4072_v42, 8 }
 0x1d1   : > { %v4080_v40 = vmul.u32.u64.low 3372735055, %v474_v38  ;;  %v4081_v41 = vmul.u32.u64.high 3372735055, %v474_v38, %v4080_v40  ;;  %v4087_v52 = vmul.u32.u64.low 3372735055, %v476_v45  ;;  %v4088_v53 = vmul.u32.u64.high 3372735055, %v476_v45, %v4087_v52 }
 0x1d2   : > { %v494_v31 = vshrl.u32 %v4075_v30, 8  ;;  %v484_v33 = vmul.u32 326, %v483_v35  ;;  %v4093_v57 = vmul.u32.u64.low 3372735055, %v475_v47  ;;  %v4094_v58 = vmul.u32.u64.high 3372735055, %v475_v47, %v4093_v57 }
 0x1d3   : > { %v505_v55 = vshrl.u32 %v4081_v41, 8  ;;  %v527_v1 = vshrl.u32 %v4088_v53, 8 }
 0x1d4   : > { %v495_v34 = vmul.u32 326, %v494_v31  ;;  %v485_v36 = vsub.s32 %v472_v25, %v484_v33  ;;  %v516_v62 = vshrl.u32 %v4094_v58, 8 }
 0x1d5   : > { %v506_v32 = vmul.u32 326, %v505_v55  ;;  %v528_v51 = vmul.u32 326, %v527_v1 }
 0x1d6   : > { %v496_v37 = vsub.s32 %v473_v26, %v495_v34  ;;  %vm532_vm11 = vcmp.ne.s32.totalorder %v485_v36, 0  ;;  %vm537_vm12 = vcmp.lt.s32.totalorder %v485_v36, 0  ;;  %v547_v39 = vadd.s32 326, %v485_v36 }
 0x1d7   : > { %vm542_vm8 = vmand %vm537_vm12, %vm532_vm11  ;;  %v507_v3 = vsub.s32 %v474_v38, %v506_v32  ;;  %v517_v5 = vmul.u32 326, %v516_v62  ;;  %v529_v8 = vsub.s32 %v476_v45, %v528_v51 }
 0x1d8   : > { %vm533_vm13 = vcmp.ne.s32.totalorder %v496_v37, 0  ;;  %vm538_vm14 = vcmp.lt.s32.totalorder %v496_v37, 0  ;;  %v548_v43 = vadd.s32 326, %v496_v37  ;;  %v4083_v46 = vsel %vm542_vm8, %v547_v39, %v485_v36 }
 0x1d9   : > { %vm543_vm10 = vmand %vm538_vm14, %vm533_vm13  ;;  %v563_v54 = vsub.s32 0, %v4083_v46  ;;  %vm534_vm11 = vcmp.ne.s32.totalorder %v507_v3, 0  ;;  %vm539_vm12 = vcmp.lt.s32.totalorder %v507_v3, 0  ;;  %v549_v7 = vadd.s32 326, %v507_v3 }
 0x1da   : > { %v4085_v48 = vsel %vm543_vm10, %v548_v43, %v496_v37  ;;  %vm544_vm13 = vmand %vm539_vm12, %vm534_vm11  ;;  %v518_v11 = vsub.s32 %v475_v47, %v517_v5  ;;  %vm536_vm14 = vcmp.ne.s32.totalorder %v529_v8, 0  ;;  %vm541_vm8 = vcmp.lt.s32.totalorder %v529_v8, 0 }
 0x1db   : > { %v574_v56 = vsub.s32 0, %v4085_v48  ;;  %v3085_v59 = vmin.u32 %v563_v54, %v4083_v46  ;;  %v4108_v60 = vsel %vm544_vm13, %v549_v7, %v507_v3  ;;  %v551_v13 = vadd.s32 326, %v529_v8  ;;  %vm546_vm9 = vmand %vm541_vm8, %vm536_vm14 }
 0x1dc   : > { %v585_v15 = vsub.s32 0, %v4108_v60  ;;  %vm535_vm10 = vcmp.ne.s32.totalorder %v518_v11, 0  ;;  %vm540_vm0 = vcmp.lt.s32.totalorder %v518_v11, 0  ;;  %v550_v18 = vadd.s32 326, %v518_v11 }
 0x1dd   : > { %v3086_v61 = vmin.u32 %v574_v56, %v4085_v48  ;;  %v4099_v2 = vmul.u32.u64.low 3817748708, %v3085_v59  ;;  %v4100_v29 = vmul.u32.u64.high 3817748708, %v3085_v59, %v4099_v2  ;;  %vm545_vm7 = vmand %vm540_vm0, %vm535_vm10  ;;  %v4111_v14 = vsel %vm546_vm9, %v551_v13, %v529_v8 }
 0x1de   : > { %v3087_v20 = vmin.u32 %v585_v15, %v4108_v60  ;;  %v4114_v22 = vsel %vm545_vm7, %v550_v18, %v518_v11  ;;  %v607_v23 = vsub.s32 0, %v4111_v14  ;;  %vm562_vm11 = vcmp.lt.s32.totalorder %v4083_v46, 0 }
 0x1df   : > { %v4102_v49 = vmul.u32.u64.low 3817748708, %v3086_v61  ;;  %v4103_v50 = vmul.u32.u64.high 3817748708, %v3086_v61, %v4102_v49  ;;  %v568_v9 = vshrl.u32 %v4100_v29, 4  ;;  %vm573_vm12 = vcmp.lt.s32.totalorder %v4085_v48, 0 }
 0x1e0   : > { %v4118_v17 = vmul.u32.u64.low 3817748708, %v3087_v20  ;;  %v4119_v63 = vmul.u32.u64.high 3817748708, %v3087_v20, %v4118_v17  ;;  %v596_v4 = vsub.s32 0, %v4114_v22  ;;  %v4124_v25 = vmin.u32 %v607_v23, %v4111_v14 }
 0x1e1   : > { %v579_v10 = vshrl.u32 %v4103_v50, 4  ;;  %v569_v12 = vmul.u32 18, %v568_v9  ;;  %vm557_vm10 = vcmp.lt.s32.totalorder %v4083_v46, 288 }
 0x1e2   : > { %v4127_v27 = vmin.u32 %v596_v4, %v4114_v22  ;;  %v4132_v28 = vmul.u32.u64.low 3817748708, %v4124_v25  ;;  %v4133_v30 = vmul.u32.u64.high 3817748708, %v4124_v25, %v4132_v28  ;;  %v590_v37 = vshrl.u32 %v4119_v63, 4 }
 0x1e3   : > { %v580_v6 = vmul.u32 18, %v579_v10  ;;  %v570_v16 = vsub.s32 %v3085_v59, %v569_v12 }
 0x1e4   : > { %v4147_v40 = vmul.u32.u64.low 3817748708, %v4127_v27  ;;  %v4148_v41 = vmul.u32.u64.high 3817748708, %v4127_v27, %v4147_v40  ;;  %v591_v53 = vmul.u32 18, %v590_v37  ;;  %v612_v58 = vshrl.u32 %v4133_v30, 4 }
 0x1e5   : > { %v581_v19 = vsub.s32 %v3086_v61, %v580_v6  ;;  %v571_v21 = vsub.s32 0, %v570_v16 }
 0x1e6   : > { %v592_v2 = vsub.s32 %v3087_v20, %v591_v53  ;;  %v601_v50 = vshrl.u32 %v4148_v41, 4  ;;  %v613_v8 = vmul.u32 18, %v612_v58 }
 0x1e7   : > { %v582_v24 = vsub.s32 0, %v581_v19  ;;  %v572_v44 = vsel %vm562_vm11, %v571_v21, %v570_v16 }
 0x1e8   : > { %vm617_vm0 = vcmp.ne.s32.totalorder %v572_v44, 0  ;;  %vm622_vm7 = vcmp.lt.s32.totalorder %v572_v44, 0  ;;  %v632_v31 = vadd.s32 18, %v572_v44  ;;  %v593_v11 = vsub.s32 0, %v592_v2 }
 0x1e9   : > { %v583_v26 = vsel %vm573_vm12, %v582_v24, %v581_v19  ;;  %vm4138_vm14 = vmand %vm622_vm7, %vm617_vm0  ;;  %vm558_vm12 = vcmp.lt.s32.totalorder %v4085_v48, 288  ;;  %v602_v6 = vmul.u32 18, %v601_v50  ;;  %v614_v63 = vsub.s32 %v4124_v25, %v613_v8 }
 0x1ea   : > { %vm618_vm9 = vcmp.ne.s32.totalorder %v583_v26, 0  ;;  %vm623_vm13 = vcmp.lt.s32.totalorder %v583_v26, 0  ;;  %v633_v36 = vadd.s32 18, %v583_v26  ;;  %v637_v52 = vsel %vm4138_vm14, %v632_v31, %v572_v44 }
 0x1eb   : > { %vm4150_vm8 = vmand %vm623_vm13, %vm618_vm9  ;;  %vm642_vm11 = vcmp.lt.s32.totalorder %v637_v52, 16  ;;  %vm584_vm13 = vcmp.lt.s32.totalorder %v4108_v60, 0  ;;  %vm606_vm14 = vcmp.lt.s32.totalorder %v4111_v14, 0  ;;  %v615_v53 = vsub.s32 0, %v614_v63 }
 0x1ec   : > { %v638_v57 = vsel %vm4150_vm8, %v633_v36, %v583_v26  ;;  %vm4180_vm7 = vmand %vm557_vm10, %vm642_vm11  ;;  %v4212_v30 = vsel %vm584_vm13, %v593_v11, %v592_v2  ;;  %v603_v36 = vsub.s32 %v4127_v27, %v602_v6  ;;  %vm595_vm8 = vcmp.lt.s32.totalorder %v4114_v22, 0 }
 0x1ed   : > { %vm643_vm0 = vcmp.lt.s32.totalorder %v638_v57, 16  ;;  %v4197_v19 = vsel %vm4180_vm7, 1.0, %v5326_v0  ;;  %vm619_vm10 = vcmp.ne.s32.totalorder %v4212_v30, 0  ;;  %vm624_vm11 = vcmp.lt.s32.totalorder %v4212_v30, 0 }
 0x1ee   : > { %vm648_vm9 = vmand %vm558_vm12, %vm643_vm0  ;;  %5357 = vst [vmem:[#allocation16_spill] sm:$0xff] %v4197_v19  ;;  %vm293_vm0 = vcmask 154624  }
 0x1ef   : > { %v4200_v20 = vsel %vm648_vm9, 1.0, %v5326_v0  ;;  %294 = vst.msk [vmem:[#allocation2 + $0x30] sm:$0xff] %vm293_vm0, %v5326_v0  ;;  %vm4295_vm9 = vmand %vm624_vm11, %vm619_vm10  ;;  %vm559_vm11 = vcmp.lt.s32.totalorder %v4108_v60, 288 }
 0x1f0   : > { %5358 = vst [vmem:[#allocation17_spill] sm:$0xff] %v4200_v20 }
 0x27e   : > { %v4129_v42 = vpop.f32.mrf.mxu0 }
 0x27f   : > { %v1097_v35 = vmul.f32 0.70710677, %v4129_v42 }
 0x280   : > { %v4136_v33 = vpop.f32.mrf.mxu0 }
 0x281   : > { %v4143_v38 = vclamps-f32 %v1097_v35, 4.0  ;;  %v1098_v39 = vmul.f32 0.70710677, %v4136_v33 }
 0x283   : > { %v4156_v45 = vmul.f32 %v4143_v38, %v4143_v38  ;;  %v4158_v47 = vclamps-f32 %v1098_v39, 4.0 }
 0x285   : > { %v1117_v54 = vmul.f32 -2.7261424e-10, %v4156_v45  ;;  %v1177_v55 = vmul.f32 -1.45660715e-05, %v4156_v45  ;;  %v4166_v56 = vmul.f32 %v4158_v47, %v4158_v47 }
 0x287   : > { %v1122_v59 = vadd.f32 2.7706815e-08, %v1117_v54  ;;  %v1182_v32 = vadd.f32 -0.00021337405, %v1177_v55  ;;  %v1118_v61 = vmul.f32 -2.7261424e-10, %v4166_v56 }
 0x288   : > { %v1178_v1 = vmul.f32 -1.45660715e-05, %v4166_v56 }
 0x289   : > { %v1127_v29 = vmul.f32 %v1122_v59, %v4156_v45  ;;  %v1187_v3 = vmul.f32 %v1182_v32, %v4156_v45  ;;  %v1123_v49 = vadd.f32 2.7706815e-08, %v1118_v61 }
 0x28a   : > { %v1183_v62 = vadd.f32 -0.00021337405, %v1178_v1 }
 0x28b   : > { %v1132_v5 = vadd.f32 -2.101024e-06, %v1127_v29  ;;  %v1192_v7 = vadd.f32 -0.001682827, %v1187_v3  ;;  %v1128_v48 = vmul.f32 %v1123_v49, %v4166_v56 }
 0x28c   : > { %v1188_v9 = vmul.f32 %v1183_v62, %v4166_v56  ;;  %v4186_v10 = vpop.f32.mrf.mxu0 }
 0x28d   : > { %v1137_v12 = vmul.f32 %v1132_v5, %v4156_v45  ;;  %v1197_v46 = vmul.f32 %v1192_v7, %v4156_v45  ;;  %v1133_v13 = vadd.f32 -2.101024e-06, %v1128_v48  ;;  %v1101_v18 = vmul.f32 0.70710677, %v4186_v10 }
 0x28e   : > { %v1193_v15 = vadd.f32 -0.001682827, %v1188_v9  ;;  %v4191_v16 = vpop.f32.mrf.mxu1  ;;  %v3187_v21 = vpop.f32.mrf.mxu0 }
 0x28f   : > { %v1142_v23 = vadd.f32 -5.6925062e-05, %v1137_v12  ;;  %v1202_v24 = vadd.f32 -0.0073733293, %v1197_v46  ;;  %v1138_v17 = vmul.f32 %v1133_v13, %v4166_v56  ;;  %v1099_v44 = vmul.f32 0.70710677, %v4191_v16 }
 0x290   : > { %v1198_v4 = vmul.f32 %v1193_v15, %v4166_v56  ;;  %v4206_v26 = vpop.f32.mrf.mxu1  ;;  %v4208_v28 = vclamps-f32 %v1101_v18, 4.0 }
 0x291   : > { %v1147_v35 = vmul.f32 %v1142_v23, %v4156_v45  ;;  %v1207_v31 = vmul.f32 %v1202_v24, %v4156_v45  ;;  %v1143_v34 = vadd.f32 -5.6925062e-05, %v1138_v17  ;;  %v4217_v37 = vclamps-f32 %v1099_v44, 4.0 }
 0x292   : > { %v1203_v25 = vadd.f32 -0.0073733293, %v1198_v4  ;;  %v1100_v39 = vmul.f32 0.70710677, %v4206_v26  ;;  %v4222_v40 = vmul.f32 %v4208_v28, %v4208_v28  ;;  %v604_v23 = vsub.s32 0, %v603_v36 }
 0x293   : > { %v1152_v41 = vadd.f32 -0.00073499064, %v1147_v35  ;;  %v1212_v43 = vadd.f32 -0.014264739, %v1207_v31  ;;  %v1148_v52 = vmul.f32 %v1143_v34, %v4166_v56  ;;  %v4229_v27 = vmul.f32 %v4217_v37, %v4217_v37 }
 0x294   : > { %v1208_v54 = vmul.f32 %v1203_v25, %v4166_v56  ;;  %v4231_v55 = vclamps-f32 %v1100_v39, 4.0  ;;  %v1121_v57 = vmul.f32 -2.7261424e-10, %v4222_v40  ;;  %v1181_v32 = vmul.f32 -1.45660715e-05, %v4222_v40 }
 0x295   : > { %v1157_v58 = vmul.f32 %v1152_v41, %v4156_v45  ;;  %3393 = vrcp.f32 %v1212_v43  ;;  %v1153_v59 = vadd.f32 -0.00073499064, %v1148_v52  ;;  %v1119_v1 = vmul.f32 -2.7261424e-10, %v4229_v27 }
 0x296   : > { %v1213_v61 = vadd.f32 -0.014264739, %v1208_v54  ;;  %v1179_v2 = vmul.f32 -1.45660715e-05, %v4229_v27  ;;  %v4241_v29 = vmul.f32 %v4231_v55, %v4231_v55  ;;  %v1126_v50 = vadd.f32 2.7706815e-08, %v1121_v57 }
 0x297   : > { %v1162_v3 = vadd.f32 -0.0029546, %v1157_v58  ;;  %v1158_v49 = vmul.f32 %v1153_v59, %v4166_v56  ;;  %v1186_v62 = vadd.f32 -0.00021337405, %v1181_v32  ;;  %v1124_v51 = vadd.f32 2.7706815e-08, %v1119_v1 }
 0x298   : > { %3395 = vrcp.f32 %v1213_v61  ;;  %v1184_v5 = vadd.f32 -0.00021337405, %v1179_v2  ;;  %v1120_v7 = vmul.f32 -2.7261424e-10, %v4241_v29  ;;  %v1180_v9 = vmul.f32 -1.45660715e-05, %v4241_v29 }
 0x299   : > { %v1167_v48 = vmul.f32 %v1162_v3, %v4156_v45  ;;  %v1163_v8 = vadd.f32 -0.0029546, %v1158_v49  ;;  %v1131_v11 = vmul.f32 %v1126_v50, %v4222_v40  ;;  %v1129_v12 = vmul.f32 %v1124_v51, %v4229_v27 }
 0x29a   : > { %v1189_v46 = vmul.f32 %v1184_v5, %v4229_v27  ;;  %v1125_v13 = vadd.f32 2.7706815e-08, %v1120_v7  ;;  %v1191_v6 = vmul.f32 %v1186_v62, %v4222_v40  ;;  %v1185_v18 = vadd.f32 -0.00021337405, %v1180_v9 }
 0x29b   : > { %v1168_v15 = vmul.f32 %v1163_v8, %v4166_v56  ;;  %v1136_v21 = vadd.f32 -2.101024e-06, %v1131_v11  ;;  %v1134_v24 = vadd.f32 -2.101024e-06, %v1129_v12  ;;  %v1172_v44 = vadd.f32 -0.016096033, %v1167_v48 }
 0x29c   : > { %v1194_v17 = vadd.f32 -0.001682827, %v1189_v46  ;;  %v1130_v45 = vmul.f32 %v1125_v13, %v4241_v29  ;;  %v1196_v4 = vadd.f32 -0.001682827, %v1191_v6  ;;  %v1190_v35 = vmul.f32 %v1185_v18, %v4241_v29 }
 0x29d   : > { %v1141_v31 = vmul.f32 %v1136_v21, %v4222_v40  ;;  %v4257_v34 = vsel %vm606_vm14, %v615_v53, %v614_v63  ;;  %v1139_v25 = vmul.f32 %v1134_v24, %v4229_v27  ;;  %v1173_v43 = vadd.f32 -0.016096033, %v1168_v15 }
 0x29e   : > { %v1199_v56 = vmul.f32 %v1194_v17, %v4229_v27  ;;  %v1135_v39 = vadd.f32 -2.101024e-06, %v1130_v45  ;;  %v1201_v41 = vmul.f32 %v1196_v4, %v4222_v40  ;;  %v1195_v52 = vadd.f32 -0.001682827, %v1190_v35 }
 0x29f   : > { %v1146_v54 = vadd.f32 -5.6925062e-05, %v1141_v31  ;;  %v4264_v57 = vsel %vm595_vm8, %v604_v23, %v603_v36  ;;  %v1144_v58 = vadd.f32 -5.6925062e-05, %v1139_v25  ;;  %v1217_v53 = vmul.f32 %v4143_v38, %v1172_v44 }
 0x2a0   : > { %v1204_v59 = vadd.f32 -0.0073733293, %v1199_v56  ;;  %v1140_v32 = vmul.f32 %v1135_v39, %v4241_v29  ;;  %v1206_v63 = vadd.f32 -0.0073733293, %v1201_v41  ;;  %v1200_v61 = vmul.f32 %v1195_v52, %v4241_v29 }
 0x2a1   : > { %v1151_v1 = vmul.f32 %v1146_v54, %v4222_v40  ;;  %vm621_vm12 = vcmp.ne.s32.totalorder %v4257_v34, 0  ;;  %v1149_v2 = vmul.f32 %v1144_v58, %v4229_v27  ;;  %v1218_v38 = vmul.f32 %v4158_v47, %v1173_v43 }
 0x2a2   : > { %v3394_v36 = vpop.eup %3393  ;;  %v1209_v3 = vmul.f32 %v1204_v59, %v4229_v27  ;;  %v1145_v49 = vadd.f32 -5.6925062e-05, %v1140_v32  ;;  %v1211_v50 = vmul.f32 %v1206_v63, %v4222_v40  ;;  %v1205_v51 = vadd.f32 -0.0073733293, %v1200_v61 }
 0x2a3   : > { %v1227_v62 = vmul.f32 %v3394_v36, %v1217_v53  ;;  %v1156_v5 = vadd.f32 -0.00073499064, %v1151_v1  ;;  %v1154_v7 = vadd.f32 -0.00073499064, %v1149_v2  ;;  %v1092_v12 = vmul.f32 0.5, %v4129_v42 }
 0x2a4   : > { %v1214_v48 = vadd.f32 -0.014264739, %v1209_v3  ;;  %v1150_v8 = vmul.f32 %v1145_v49, %v4241_v29  ;;  %v1216_v9 = vadd.f32 -0.014264739, %v1211_v50  ;;  %v1210_v13 = vmul.f32 %v1205_v51, %v4241_v29 }
 0x2a5   : > { %v3396_v11 = vpop.eup %3395  ;;  %v1232_v46 = vadd.f32 1.0, %v1227_v62  ;;  %v1161_v6 = vmul.f32 %v1156_v5, %v4222_v40  ;;  %v1159_v18 = vmul.f32 %v1154_v7, %v4229_v27  ;;  %v1093_v17 = vmul.f32 0.5, %v4136_v33 }
 0x2a6   : > { %v1228_v15 = vmul.f32 %v3396_v11, %v1218_v38  ;;  %3397 = vrcp.f32 %v1214_v48  ;;  %v1155_v47 = vadd.f32 -0.00073499064, %v1150_v8  ;;  %v1215_v23 = vadd.f32 -0.014264739, %v1210_v13 }
 0x2a7   : > { %v1237_v21 = vmul.f32 %v1232_v46, %v1092_v12  ;;  %v1166_v24 = vadd.f32 -0.0029546, %v1161_v6  ;;  %3399 = vrcp.f32 %v1216_v9  ;;  %v1164_v4 = vadd.f32 -0.0029546, %v1159_v18 }
 0x2a8   : > { %v1233_v45 = vadd.f32 1.0, %v1228_v15  ;;  %v1160_v42 = vmul.f32 %v1155_v47, %v4241_v29  ;;  %3401 = vrcp.f32 %v1215_v23  ;;  %vm626_vm7 = vcmp.lt.s32.totalorder %v4257_v34, 0 }
 0x2a9   : > { %v1171_v44 = vmul.f32 %v1166_v24, %v4222_v40  ;;  %v1242_v35 = vmul.f32 %v4197_v19, %v1237_v21  ;;  %v1169_v25 = vmul.f32 %v1164_v4, %v4229_v27  ;;  %v634_v39 = vadd.s32 18, %v4212_v30  ;;  %vm4305_vm8 = vmand %vm626_vm7, %vm621_vm12 }
 0x2aa   : > { %v1238_v31 = vmul.f32 %v1233_v45, %v1093_v17  ;;  %v1165_v56 = vadd.f32 -0.0029546, %v1160_v42  ;;  %vm620_vm13 = vcmp.ne.s32.totalorder %v4264_v57, 0  ;;  %vm625_vm14 = vcmp.lt.s32.totalorder %v4264_v57, 0 }
 0x2ab   : > { %v1252_v41 = vrot.slane %v1242_v35, 4  ;;  %v636_v40 = vadd.s32 18, %v4257_v34  ;;  %v1176_v54 = vadd.f32 -0.016096033, %v1171_v44  ;;  %v635_v58 = vadd.s32 18, %v4264_v57  ;;  %vm4315_vm10 = vmand %vm625_vm14, %vm620_vm13  ;;  %v4446_v35 = vld [vmem:[#allocation2 + $0x28] sm:$0xff] }
 0x2ac   : > { %v1243_v27 = vmul.f32 %v4200_v20, %v1238_v31  ;;  %v1170_v52 = vmul.f32 %v1165_v56, %v4241_v29  ;;  %v1174_v59 = vadd.f32 -0.016096033, %v1169_v25  ;;  %v639_v63 = vsel %vm4295_vm9, %v634_v39, %v4212_v30 }
 0x2ad   : > { %1257 = vrot.lane.b32.xlu1 %v1252_v41, %s3615_s24  ;;  %v641_v61 = vsel %vm4305_vm8, %v636_v40, %v4257_v34  ;;  %v1221_v1 = vmul.f32 %v4208_v28, %v1176_v54  ;;  %vm644_vm12 = vcmp.lt.s32.totalorder %v639_v63, 16  ;;  %v640_v30 = vsel %vm4315_vm10, %v635_v58, %v4264_v57 }
 0x2ae   : > { %v1253_v32 = vrot.slane %v1243_v27, 4  ;;  %v1175_v29 = vadd.f32 -0.016096033, %v1170_v52  ;;  %v1219_v36 = vmul.f32 %v4217_v37, %v1174_v59  ;;  %vm561_vm7 = vcmp.lt.s32.totalorder %v4111_v14, 288  ;;  %vm649_vm13 = vmand %vm559_vm11, %vm644_vm12 }
 0x2af   : > { %vm646_vm9 = vcmp.lt.s32.totalorder %v641_v61, 16  ;;  %vm560_vm14 = vcmp.lt.s32.totalorder %v4114_v22, 288  ;;  %vm645_vm8 = vcmp.lt.s32.totalorder %v640_v30, 16  ;;  %v1096_v28 = vmul.f32 0.5, %v4186_v10 }
 0x2b0   : > { %1259 = vrot.lane.b32.xlu0 %v1253_v32, %s3615_s24  ;;  %v1220_v60 = vmul.f32 %v4231_v55, %v1175_v29  ;;  %vm651_vm5 = vmand %vm561_vm7, %vm646_vm9  ;;  %v1094_v37 = vmul.f32 0.5, %v4191_v16  ;;  %v4336_v38 = vsel %vm649_vm13, 1.0, %v5326_v0  ;;  %v1095_v10 = vmul.f32 0.5, %v4206_v26 }
 0x2b1   : > { %5365 = vst [vmem:[#allocation18_spill] sm:$0xff] %v4336_v38  ;;  %vm650_vm10 = vmand %vm560_vm14, %vm645_vm8  ;;  %v4339_v55 = vsel %vm651_vm5, 1.0, %v5326_v0  ;;  %vm1276_vm5 = vcmask 1047708   ;;  %vm1281_vm11 = vcmask 990212   ;;  %vm5368_vm12 = vcmask 900096  }
 0x2b2   : > { %5366 = vst [vmem:[#allocation19_spill] sm:$0xff] %v4339_v55  ;;  %v4344_v16 = vsel %vm650_vm10, 1.0, %v5326_v0  ;;  %vm5369_vm7 = vmmov %vm5368_vm12  ;;  %vm5370_vm9 = vcmask 1031168   ;;  %vm5372_vm14 = vcmask 1039360   ;;  %vm1457_vm10 = vcmask 588800  }
 0x2b3   : > { %v3398_v2 = vpop.eup %3397  ;;  %5367 = vst [vmem:[#allocation20_spill] sm:$0xff] %v4344_v16  ;;  %vm5371_vm13 = vmmov %vm5370_vm9 }
 0x2b4   : > { %v3400_v3 = vpop.eup %3399  ;;  %v1229_v34 = vmul.f32 %v3398_v2, %v1219_v36  ;;  %vm5373_vm8 = vmmov %vm5372_vm14 }
 0x2b5   : > { %v1231_v49 = vmul.f32 %v3400_v3, %v1221_v1  ;;  %v3402_v57 = vpop.eup %3401 }
 0x2b6   : > { %v1234_v50 = vadd.f32 1.0, %v1229_v34  ;;  %v1230_v14 = vmul.f32 %v3402_v57, %v1220_v60 }
 0x2b7   : > { %v1236_v62 = vadd.f32 1.0, %v1231_v49 }
 0x2b8   : > { %v1239_v22 = vmul.f32 %v1234_v50, %v1094_v37  ;;  %v1235_v51 = vadd.f32 1.0, %v1230_v14 }
 0x2b9   : > { %v1241_v5 = vmul.f32 %v1236_v62, %v1096_v28 }
 0x2ba   : > { %v1244_v7 = vmul.f32 %v4336_v38, %v1239_v22  ;;  %v1240_v48 = vmul.f32 %v1235_v51, %v1095_v10 }
 0x2bb   : > { %v1246_v8 = vmul.f32 %v4339_v55, %v1241_v5 }
 0x2bc   : > { %v1254_v9 = vrot.slane %v1244_v7, 4  ;;  %v1245_v11 = vmul.f32 %v4344_v16, %v1240_v48 }
 0x2bd   : > { %v1256_v12 = vrot.slane %v1246_v8, 4 }
 0x2be   : > { %1261 = vrot.lane.b32.xlu1 %v1254_v9, %s3615_s24  ;;  %v1255_v46 = vrot.slane %v1245_v11, 4 }
 0x2c0   : > { %1263 = vrot.lane.b32.xlu0 %v1255_v46, %s3615_s24 }
 0x2c2   : > { %1265 = vrot.lane.b32.xlu1 %v1256_v12, %s3615_s24 }
 0x31f   : > { %v1258_v26 = vpop.permute.xlu1 %1257 }
 0x320   : > { %1277 = vst.msk [vmem:[#allocation2] sm:$0xf0] %vm1276_vm5, %v1258_v26 }
 0x322   : > { %v1260_v13 = vpop.permute.xlu0 %1259 }
 0x323   : > { %v1267_v6 = vsel %vm293_vm0, %v1258_v26, %v1260_v13 }
 0x324   : > { %1278 = vst [vmem:[#allocation2 + $0x8] sm:$0xf0] %v1267_v6 }
 0x327   : > { %v4354_v15 = vld [vmem:[#allocation2] sm:$0xff] }
 0x328   : > { %1412 = vrot.lane.b32.xlu1 %v4354_v15, %s3631_s13  ;;  %1434 = vrot.lane.b32.xlu0 %v4354_v15, %s3647_s6  ;;  %v4473_v56 = vrot.slane %v4354_v15, 4 }
 0x32b   : > { %v4376_v45 = vld [vmem:[#allocation2 + $0x8] sm:$0xff] }
 0x32c   : > { %1370 = vrot.lane.b32.xlu1 %v4354_v15, %s3651_s16  ;;  %1390 = vrot.lane.b32.xlu0 %v4354_v15, %s3648_s9  ;;  %v4463_v31 = vrot.slane %v4376_v45, 4 }
 0x330   : > { %v1262_v18 = vpop.permute.xlu1 %1261  ;;  %1332 = vrot.lane.b32.xlu1 %v4354_v15, %s3652_s17  ;;  %1351 = vrot.lane.b32.xlu0 %v4354_v15, %s3638_s12 }
 0x331   : > { %v1268_v47 = vsel %vm293_vm0, %v1260_v13, %v1262_v18 }
 0x332   : > { %1279 = vst [vmem:[#allocation2 + $0x10] sm:$0xf0] %v1268_v47  ;;  %v1264_v21 = vpop.permute.xlu0 %1263 }
 0x333   : > { %v1269_v23 = vsel %vm293_vm0, %v1262_v18, %v1264_v21  ;;  %v4561_v18 = vld [vmem:[#allocation8] sm:$0xf] }
 0x334   : > { %v1266_v24 = vpop.permute.xlu1 %1265  ;;  %1294 = vrot.lane.b32.xlu1 %v4354_v15, %s3650_s10  ;;  %1313 = vrot.lane.b32.xlu0 %v4354_v15, %s3649_s8  ;;  %1280 = vst [vmem:[#allocation2 + $0x18] sm:$0xf0] %v1269_v23 }
 0x335   : > { %v1270_v17 = vsel %vm293_vm0, %v1264_v21, %v1266_v24 }
 0x336   : > { %1282 = vst.msk [vmem:[#allocation2 + $0x20] sm:$0xf0] %vm1281_vm11, %v1270_v17 }
 0x338   : > { %1436 = vrot.lane.b32.xlu0 %v4376_v45, %s3647_s6 }
 0x339   : > { %v4380_v4 = vld [vmem:[#allocation2 + $0x10] sm:$0xff] }
 0x33a   : > { %1438 = vrot.lane.b32.xlu1 %v4380_v4, %s3647_s6  ;;  %v4468_v25 = vrot.slane %v4380_v4, 4 }
 0x33b   : > { %v4412_v42 = vld [vmem:[#allocation2 + $0x18] sm:$0xff] }
 0x33c   : > { %1416 = vrot.lane.b32.xlu0 %v4380_v4, %s3631_s13  ;;  %v4523_v61 = vrot.slane %v4412_v42, 4 }
 0x33d   : > { %v4426_v44 = vld [vmem:[#allocation2 + $0x20] sm:$0xff] }
 0x33e   : > { %1414 = vrot.lane.b32.xlu1 %v4376_v45, %s3631_s13  ;;  %v4535_v3 = vrot.slane %v4426_v44, 4 }
 0x340   : > { %1392 = vrot.lane.b32.xlu0 %v4376_v45, %s3648_s9 }
 0x342   : > { %1394 = vrot.lane.b32.xlu1 %v4380_v4, %s3648_s9 }
 0x344   : > { %1374 = vrot.lane.b32.xlu0 %v4380_v4, %s3651_s16 }
 0x346   : > { %1372 = vrot.lane.b32.xlu1 %v4376_v45, %s3651_s16 }
 0x348   : > { %1353 = vrot.lane.b32.xlu0 %v4376_v45, %s3638_s12 }
 0x34a   : > { %1355 = vrot.lane.b32.xlu1 %v4380_v4, %s3638_s12 }
 0x34c   : > { %1336 = vrot.lane.b32.xlu0 %v4380_v4, %s3652_s17 }
 0x34e   : > { %1334 = vrot.lane.b32.xlu1 %v4376_v45, %s3652_s17 }
 0x350   : > { %1315 = vrot.lane.b32.xlu0 %v4376_v45, %s3649_s8 }
 0x352   : > { %1317 = vrot.lane.b32.xlu1 %v4380_v4, %s3649_s8 }
 0x354   : > { %1298 = vrot.lane.b32.xlu0 %v4380_v4, %s3650_s10 }
 0x356   : > { %1296 = vrot.lane.b32.xlu1 %v4376_v45, %s3650_s10 }
 0x358   : > { %1418 = vrot.lane.b32.xlu0 %v4412_v42, %s3631_s13 }
 0x35a   : > { %1440 = vrot.lane.b32.xlu1 %v4412_v42, %s3647_s6 }
 0x35c   : > { %1376 = vrot.lane.b32.xlu0 %v4412_v42, %s3651_s16 }
 0x35e   : > { %1396 = vrot.lane.b32.xlu1 %v4412_v42, %s3648_s9 }
 0x360   : > { %1338 = vrot.lane.b32.xlu0 %v4412_v42, %s3652_s17 }
 0x362   : > { %1357 = vrot.lane.b32.xlu1 %v4412_v42, %s3638_s12 }
 0x364   : > { %1442 = vrot.lane.b32.xlu0 %v4426_v44, %s3647_s6 }
 0x366   : > { %1319 = vrot.lane.b32.xlu1 %v4412_v42, %s3649_s8 }
 0x368   : > { %1398 = vrot.lane.b32.xlu0 %v4426_v44, %s3648_s9 }
 0x36a   : > { %1420 = vrot.lane.b32.xlu1 %v4426_v44, %s3631_s13 }
 0x36c   : > { %1359 = vrot.lane.b32.xlu0 %v4426_v44, %s3638_s12 }
 0x36e   : > { %1378 = vrot.lane.b32.xlu1 %v4426_v44, %s3651_s16 }
 0x370   : > { %1321 = vrot.lane.b32.xlu0 %v4426_v44, %s3649_s8 }
 0x372   : > { %1340 = vrot.lane.b32.xlu1 %v4426_v44, %s3652_s17 }
 0x374   : > { %1300 = vrot.lane.b32.xlu0 %v4412_v42, %s3650_s10 }
 0x376   : > { %1302 = vrot.lane.b32.xlu1 %v4426_v44, %s3650_s10 }
 0x378   : > { %1444 = vrot.lane.b32.xlu0 %v4446_v35, %s3647_s6 }
 0x37a   : > { %1422 = vrot.lane.b32.xlu1 %v4446_v35, %s3631_s13 }
 0x37c   : > { %1400 = vrot.lane.b32.xlu0 %v4446_v35, %s3648_s9 }
 0x37e   : > { %2181 = vrot.lane.b32.xlu1 %v4376_v45, %s3647_s6 }
 0x380   : > { %2183 = vrot.lane.b32.xlu0 %v4380_v4, %s3647_s6 }
 0x382   : > { %2179 = vrot.lane.b32.xlu1 %v4354_v15, %s3647_s6 }
 0x384   : > { %2137 = vrot.lane.b32.xlu0 %v4463_v31, %s3631_s13 }
 0x386   : > { %2139 = vrot.lane.b32.xlu1 %v4468_v25, %s3631_s13 }
 0x388   : > { %2135 = vrot.lane.b32.xlu0 %v4473_v56, %s3631_s13 }
 0x38a   : > { %2090 = vrot.lane.b32.xlu1 %v4376_v45, %s3648_s9 }
 0x38c   : > { %2092 = vrot.lane.b32.xlu0 %v4380_v4, %s3648_s9 }
 0x38e   : > { %2088 = vrot.lane.b32.xlu1 %v4354_v15, %s3648_s9 }
 0x390   : > { %2050 = vrot.lane.b32.xlu0 %v4463_v31, %s3651_s16 }
 0x392   : > { %2052 = vrot.lane.b32.xlu1 %v4468_v25, %s3651_s16 }
 0x394   : > { %2048 = vrot.lane.b32.xlu0 %v4473_v56, %s3651_s16 }
 0x396   : > { %2012 = vrot.lane.b32.xlu1 %v4376_v45, %s3638_s12 }
 0x398   : > { %2014 = vrot.lane.b32.xlu0 %v4380_v4, %s3638_s12 }
 0x39a   : > { %2010 = vrot.lane.b32.xlu1 %v4354_v15, %s3638_s12  ;;  %v1413_v39 = vpop.permute.xlu1 %1412  ;;  %v1435_v41 = vpop.permute.xlu0 %1434 }
 0x39c   : > { %1974 = vrot.lane.b32.xlu0 %v4463_v31, %s3652_s17 }
 0x39e   : > { %1976 = vrot.lane.b32.xlu1 %v4468_v25, %s3652_s17  ;;  %v1371_v33 = vpop.permute.xlu1 %1370  ;;  %v1391_v40 = vpop.permute.xlu0 %1390 }
 0x3a0   : > { %1972 = vrot.lane.b32.xlu0 %v4473_v56, %s3652_s17 }
 0x3a2   : > { %1936 = vrot.lane.b32.xlu1 %v4376_v45, %s3649_s8  ;;  %v1333_v27 = vpop.permute.xlu1 %1332  ;;  %v1352_v43 = vpop.permute.xlu0 %1351 }
 0x3a4   : > { %1938 = vrot.lane.b32.xlu0 %v4380_v4, %s3649_s8 }
 0x3a6   : > { %1934 = vrot.lane.b32.xlu1 %v4354_v15, %s3649_s8  ;;  %v1295_v52 = vpop.permute.xlu1 %1294  ;;  %v1314_v54 = vpop.permute.xlu0 %1313 }
 0x3a8   : > { %1898 = vrot.lane.b32.xlu0 %v4463_v31, %s3650_s10 }
 0x3aa   : > { %1900 = vrot.lane.b32.xlu1 %v4468_v25, %s3650_s10  ;;  %v1437_v58 = vpop.permute.xlu0 %1436 }
 0x3ab   : > { %v1446_v63 = vsel %vm838_vm15, %v1435_v41, %v1437_v58 }
 0x3ac   : > { %v4511_v59 = vpop.permute.xlu1 %1438  ;;  %2185 = vrot.lane.b32.xlu0 %v4412_v42, %s3647_s6 }
 0x3ad   : > { %v1447_v32 = vsel %vm838_vm15, %v1437_v58, %v4511_v59 }
 0x3ae   : > { %1896 = vrot.lane.b32.xlu1 %v4473_v56, %s3650_s10  ;;  %1475 = vmatprep.subr.mxu1 %v1447_v32  ;;  %v4520_v53 = vpop.permute.xlu0 %1416 }
 0x3af   : > { %1476 = vmatpush1.msra.mxu1 %v1446_v63 }
 0x3b0   : > { %v1415_v29 = vpop.permute.xlu1 %1414  ;;  %2141 = vrot.lane.b32.xlu0 %v4523_v61, %s3631_s13 }
 0x3b1   : > { %v1425_v1 = vsel %vm815_vm2, %v1415_v29, %v4520_v53  ;;  %v1424_v30 = vsel %vm815_vm2, %v1413_v39, %v1415_v29 }
 0x3b2   : > { %2187 = vrot.lane.b32.xlu1 %v4426_v44, %s3647_s6  ;;  %1477 = vmatprep.subr.mxu1 %v1425_v1  ;;  %v1393_v36 = vpop.permute.xlu0 %1392 }
 0x3b3   : > { %1478 = vmatpush1.msra.mxu1 %v1424_v30  ;;  %v1402_v60 = vsel %vm791_vm1, %v1391_v40, %v1393_v36 }
 0x3b4   : > { %v4532_v2 = vpop.permute.xlu1 %1394 }
 0x3b5   : > { %v1403_v34 = vsel %vm791_vm1, %v1393_v36, %v4532_v2 }
 0x3b6   : > { %2143 = vrot.lane.b32.xlu1 %v4535_v3, %s3631_s13  ;;  %1479 = vmatprep.subr.mxu1 %v1403_v34  ;;  %v4542_v28 = vpop.permute.xlu0 %1374 }
 0x3b7   : > { %1480 = vmatpush1.msra.mxu1 %v1402_v60 }
 0x3b8   : > { %v1373_v49 = vpop.permute.xlu1 %1372 }
 0x3b9   : > { %v1381_v57 = vsel %vm768_vm3, %v1373_v49, %v4542_v28  ;;  %v1380_v37 = vsel %vm768_vm3, %v1371_v33, %v1373_v49 }
 0x3ba   : > { %1481 = vmatprep.subr.mxu1 %v1381_v57  ;;  %v1354_v50 = vpop.permute.xlu0 %1353 }
 0x3bb   : > { %1482 = vmatpush1.msra.mxu1 %v1380_v37  ;;  %v1361_v22 = vsel %vm748_vm4, %v1352_v43, %v1354_v50 }
 0x3bc   : > { %v4547_v14 = vpop.permute.xlu1 %1355 }
 0x3bd   : > { %v1362_v62 = vsel %vm748_vm4, %v1354_v50, %v4547_v14 }
 0x3be   : > { %1483 = vmatprep.subr.mxu1 %v1362_v62  ;;  %v4552_v10 = vpop.permute.xlu0 %1336 }
 0x3bf   : > { %1484 = vmatpush1.msra.mxu1 %v1361_v22 }
 0x3c0   : > { %v1335_v51 = vpop.permute.xlu1 %1334 }
 0x3c1   : > { %v1343_v5 = vsel %vm5368_vm12, %v1335_v51, %v4552_v10  ;;  %v1342_v7 = vsel %vm5369_vm7, %v1333_v27, %v1335_v51  ;;  %vm5375_vm12 = vmmov %vm5369_vm7 }
 0x3c2   : > { %1485 = vmatprep.subr.mxu1 %v1343_v5  ;;  %v1316_v48 = vpop.permute.xlu0 %1315 }
 0x3c3   : > { %1486 = vmatpush1.msra.mxu1 %v1342_v7  ;;  %v1323_v11 = vsel %vm5371_vm13, %v1314_v54, %v1316_v48  ;;  %vm5376_vm13 = vmmov %vm5370_vm9 }
 0x3c4   : > { %v1318_v8 = vpop.permute.xlu1 %1317 }
 0x3c5   : > { %v1324_v9 = vsel %vm5370_vm9, %v1316_v48, %v1318_v8 }
 0x3c6   : > { %1487 = vmatprep.subr.mxu1 %v1324_v9  ;;  %v1299_v12 = vpop.permute.xlu0 %1298 }
 0x3c7   : > { %1488 = vmatpush1.msra.mxu1 %v1323_v11 }
 0x3c8   : > { %v1297_v46 = vpop.permute.xlu1 %1296 }
 0x3c9   : > { %v1305_v26 = vsel %vm5372_vm14, %v1297_v46, %v1299_v12  ;;  %v1304_v13 = vsel %vm5373_vm8, %v1295_v52, %v1297_v46  ;;  %vm5377_vm14 = vmmov %vm5373_vm8 }
 0x3ca   : > { %1489 = vmatprep.subr.mxu1 %v1305_v26  ;;  %v1419_v6 = vpop.permute.xlu0 %1418 }
 0x3cb   : > { %1490 = vmatpush1.msra.mxu1 %v1304_v13  ;;  %v1426_v43 = vsel %vm815_vm2, %v4520_v53, %v1419_v6 }
 0x3cc   : > { %v1441_v47 = vpop.permute.xlu1 %1440  ;;  %1491 = vmatprep.subr.mxu1 %v4376_v45 }
 0x3cd   : > { %1492 = vmatpush1.msra.mxu1 %v4354_v15  ;;  %v1448_v15 = vsel %vm838_vm15, %v4511_v59, %v1441_v47 }
 0x3ce   : > { %3108 = vmatmul.mubr.msk.f32.vlgmr.msra.gmra.mxu1 %vm1457_vm10, %v4561_v18  ;;  %v1377_v21 = vpop.permute.xlu0 %1376  ;;  %3188 = vmatprep.subr.mxu1 %v5326_v0 }
 0x3cf   : > { %3206 = vmatprep.mubr.msk.f32.mxu1 %vm5374_vm6, %v5326_v0  ;;  %v1382_v63 = vsel %vm768_vm3, %v4542_v28, %v1377_v21 }
 0x3d0   : > { %v1397_v23 = vpop.permute.xlu1 %1396 }
 0x3d1   : > { %v1404_v32 = vsel %vm791_vm1, %v4532_v2, %v1397_v23 }
 0x3d2   : > { %v1339_v24 = vpop.permute.xlu0 %1338 }
 0x3d3   : > { %v1344_v2 = vsel %vm5369_vm7, %v4552_v10, %v1339_v24 }
 0x3d4   : > { %v1358_v17 = vpop.permute.xlu1 %1357 }
 0x3d5   : > { %v1363_v30 = vsel %vm748_vm4, %v4547_v14, %v1358_v17 }
 0x3d6   : > { %v1443_v39 = vpop.permute.xlu0 %1442 }
 0x3d7   : > { %v1449_v41 = vsel %vm838_vm15, %v1441_v47, %v1443_v39 }
 0x3d8   : > { %v1320_v33 = vpop.permute.xlu1 %1319  ;;  %1546 = vmatprep.subr.mxu0 %v1449_v41 }
 0x3d9   : > { %1547 = vmatpush1.msra.mxu0 %v1448_v15  ;;  %v1325_v49 = vsel %vm5376_vm13, %v1318_v8, %v1320_v33  ;;  %vm5385_vm13 = vcmask 1043456  }
 0x3da   : > { %v1399_v45 = vpop.permute.xlu0 %1398 }
 0x3db   : > { %v1405_v54 = vsel %vm791_vm1, %v1397_v23, %v1399_v45 }
 0x3dc   : > { %v1421_v40 = vpop.permute.xlu1 %1420 }
 0x3dd   : > { %v1427_v27 = vsel %vm815_vm2, %v1419_v6, %v1421_v40 }
 0x3de   : > { %1548 = vmatprep.subr.mxu0 %v1427_v27  ;;  %v1360_v52 = vpop.permute.xlu0 %1359 }
 0x3df   : > { %1549 = vmatpush1.msra.mxu0 %v1426_v43  ;;  %v1364_v53 = vsel %vm748_vm4, %v1358_v17, %v1360_v52 }
 0x3e0   : > { %v1379_v58 = vpop.permute.xlu1 %1378  ;;  %1550 = vmatprep.subr.mxu0 %v1405_v54 }
 0x3e1   : > { %1551 = vmatpush1.msra.mxu0 %v1404_v32  ;;  %v1383_v59 = vsel %vm768_vm3, %v1377_v21, %v1379_v58 }
 0x3e2   : > { %1552 = vmatprep.subr.mxu0 %v1383_v59  ;;  %v1322_v29 = vpop.permute.xlu0 %1321 }
 0x3e3   : > { %1553 = vmatpush1.msra.mxu0 %v1382_v63  ;;  %v1326_v60 = vsel %vm5370_vm9, %v1320_v33, %v1322_v29 }
 0x3e4   : > { %v1341_v1 = vpop.permute.xlu1 %1340  ;;  %1554 = vmatprep.subr.mxu0 %v1364_v53 }
 0x3e5   : > { %1555 = vmatpush1.msra.mxu0 %v1363_v30  ;;  %v1345_v36 = vsel %vm5375_vm12, %v1339_v24, %v1341_v1  ;;  %vm5381_vm12 = vmmov %vm5370_vm9  ;;  %vm301_vm9 = vcmask 97280  }
 0x3e6   : > { %1556 = vmatprep.subr.mxu0 %v1345_v36  ;;  %v1301_v34 = vpop.permute.xlu0 %1300  ;;  %302 = vst.msk [vmem:[#allocation2 + $0x58] sm:$0xff] %vm301_vm9, %v5326_v0 }
 0x3e7   : > { %1557 = vmatpush1.msra.mxu0 %v1344_v2  ;;  %v1306_v37 = vsel %vm5373_vm8, %v1299_v12, %v1301_v34 }
 0x3e8   : > { %v1303_v28 = vpop.permute.xlu1 %1302  ;;  %1558 = vmatprep.subr.mxu0 %v1326_v60 }
 0x3e9   : > { %1559 = vmatpush1.msra.mxu0 %v1325_v49  ;;  %v1307_v57 = vsel %vm5377_vm14, %v1301_v34, %v1303_v28  ;;  %vm299_vm14 = vcmask 1048520  }
 0x3ea   : > { %1560 = vmatprep.subr.mxu0 %v1307_v57  ;;  %v1445_v50 = vpop.permute.xlu0 %1444 }
 0x3eb   : > { %1561 = vmatpush1.msra.mxu0 %v1306_v37  ;;  %v1450_v14 = vsel %vm838_vm15, %v1443_v39, %v1445_v50 }
 0x3ec   : > { %v1423_v62 = vpop.permute.xlu1 %1422  ;;  %1562 = vmatprep.subr.mxu0 %v4412_v42  ;;  %3189 = vmatpush3.msra.mxu1 %v1450_v14 }
 0x3ed   : > { %v1428_v22 = vsel %vm815_vm2, %v1421_v40, %v1423_v62  ;;  %1563 = vmatpush1.msra.mxu0 %v4380_v4  ;;  %3190 = vmatprep.subr.mxu1 %v5326_v0 }
 0x3ee   : > { %3109 = vmatmul.mubr.msk.f32.vlgmr.msra.gmra.mxu0 %vm1457_vm10, %v4561_v18  ;;  %3191 = vmatpush3.msra.mxu1 %v1428_v22  ;;  %v1401_v10 = vpop.permute.xlu0 %1400 }
 0x3ef   : > { %v1406_v51 = vsel %vm791_vm1, %v1399_v45, %v1401_v10  ;;  %3192 = vmatprep.subr.mxu1 %v5326_v0  ;;  %2316 = vmatprep.mubr.f32.mxu0 %v5326_v0 }
 0x3f0   : > { %v4602_v5 = vpop.permute.xlu1 %2181  ;;  %3193 = vmatpush3.msra.mxu1 %v1406_v51 }
 0x3f1   : > { %3194 = vmatprep.subr.mxu1 %v5326_v0 }
 0x3f2   : > { %3195 = vmatpush3.msra.mxu1 %v1379_v58  ;;  %v4605_v4 = vpop.permute.xlu0 %2183  ;;  %v4669_v58 = vld [vmem:[#allocation2 + $0x58] sm:$0xf] }
 0x3f3   : > { %3196 = vmatprep.subr.mxu1 %v5326_v0  ;;  %2201 = vrot.lane.b32.xlu0 %v4669_v58, %s3647_s6 }
 0x3f4   : > { %v4608_v7 = vpop.permute.xlu1 %2179  ;;  %3197 = vmatpush3.msra.mxu1 %v1360_v52 }
 0x3f5   : > { %3198 = vmatprep.subr.mxu1 %v5326_v0 }
 0x3f6   : > { %3199 = vmatpush3.msra.mxu1 %v1341_v1  ;;  %v4611_v48 = vpop.permute.xlu0 %2137 }
 0x3f7   : > { %3200 = vmatprep.subr.mxu1 %v5326_v0 }
 0x3f8   : > { %v4614_v8 = vpop.permute.xlu1 %2139  ;;  %3201 = vmatpush3.msra.mxu1 %v1322_v29 }
 0x3f9   : > { %3202 = vmatprep.subr.mxu1 %v5326_v0 }
 0x3fa   : > { %3203 = vmatpush3.msra.mxu1 %v1303_v28  ;;  %v4617_v9 = vpop.permute.xlu0 %2135 }
 0x3fb   : > { %3204 = vmatprep.subr.mxu1 %v5326_v0 }
 0x3fc   : > { %v4620_v11 = vpop.permute.xlu1 %2090  ;;  %3205 = vmatpush3.msra.mxu1 %v4426_v44 }
 0x3fd   : > { %3207 = vmatmul.mubr.msk.f32.vlgmr.msra.gmra.mxu1 %vm1457_vm10, %v4561_v18  ;;  %vm5378_vm10 = vmmov %vm5369_vm7 }
 0x3fe   : > { %v4625_v12 = vpop.permute.xlu0 %2092  ;;  %2387 = vmatprep.mubr.f32.mxu1 %v5326_v0  ;;  %vm5384_vm7 = vmmov %vm5373_vm8  ;;  %vm1852_vm8 = vcmask 1043608  }
 0x400   : > { %v4628_v46 = vpop.permute.xlu1 %2088 }
 0x402   : > { %v4630_v26 = vpop.permute.xlu0 %2050 }
 0x404   : > { %v4632_v13 = vpop.permute.xlu1 %2052 }
 0x406   : > { %v4634_v6 = vpop.permute.xlu0 %2048 }
 0x408   : > { %v4636_v47 = vpop.permute.xlu1 %2012 }
 0x40a   : > { %v4638_v21 = vpop.permute.xlu0 %2014 }
 0x40c   : > { %v2011_v23 = vpop.permute.xlu1 %2010 }
 0x40d   : > { %v4642_v18 = vsel %vm748_vm4, %v2011_v23, %v4636_v47 }
 0x40e   : > { %v4644_v24 = vpop.permute.xlu0 %1974 }
 0x410   : > { %v4646_v17 = vpop.permute.xlu1 %1976 }
 0x412   : > { %v1973_v39 = vpop.permute.xlu0 %1972 }
 0x413   : > { %v4650_v41 = vsel %vm5378_vm10, %v1973_v39, %v4644_v24  ;;  %vm5387_vm10 = vmmov %vm5385_vm13 }
 0x414   : > { %5379 = vst [vmem:[#allocation21_spill] sm:$0xff] %v4650_v41  ;;  %v4652_v33 = vpop.permute.xlu1 %1936 }
 0x415   : > { %5380 = vst [vmem:[#allocation22_spill] sm:$0xff] %v4652_v33 }
 0x416   : > { %v4658_v40 = vpop.permute.xlu0 %1938 }
 0x417   : > { %5383 = vst [vmem:[#allocation24_spill] sm:$0xff] %v4658_v40 }
 0x418   : > { %v1935_v15 = vpop.permute.xlu1 %1934 }
 0x419   : > { %v4656_v45 = vsel %vm5381_vm12, %v1935_v15, %v4652_v33  ;;  %vm5388_vm12 = vmmov %vm5384_vm7 }
 0x41a   : > { %5382 = vst [vmem:[#allocation23_spill] sm:$0xff] %v4656_v45  ;;  %v4662_v43 = vpop.permute.xlu0 %1898 }
 0x41c   : > { %v4660_v27 = vpop.permute.xlu1 %1900 }
 0x420   : > { %v1897_v52 = vpop.permute.xlu1 %1896 }
 0x421   : > { %v4666_v54 = vsel %vm5384_vm7, %v1897_v52, %v4662_v43  ;;  %vm5389_vm7 = vmmov %vm5387_vm10 }
 0x422   : > { %vm5390_vm9 = vmmov %vm5389_vm7 }
 0x48e   : > { %v1527_v32 = vpop.f32.mrf.mxu1 }
 0x48f   : > { %v1678_v59 = vmul.f32 0.70710677, %v1527_v32 }
 0x490   : > { %v4673_v63 = vpop.f32.mrf.mxu1 }
 0x491   : > { %v3111_v29 = vclamps-f32 %v1678_v59, 4.0  ;;  %v1679_v53 = vmul.f32 0.70710677, %v4673_v63 }
 0x493   : > { %v1693_v1 = vmul.f32 %v3111_v29, %v3111_v29  ;;  %v3112_v30 = vclamps-f32 %v1679_v53, 4.0 }
 0x495   : > { %v1698_v36 = vmul.f32 -2.7261424e-10, %v1693_v1  ;;  %v1758_v2 = vmul.f32 -1.45660715e-05, %v1693_v1  ;;  %v1694_v34 = vmul.f32 %v3112_v30, %v3112_v30 }
 0x497   : > { %v1703_v60 = vadd.f32 2.7706815e-08, %v1698_v36  ;;  %v1763_v28 = vadd.f32 -0.00021337405, %v1758_v2  ;;  %v1699_v49 = vmul.f32 -2.7261424e-10, %v1694_v34 }
 0x498   : > { %v1759_v57 = vmul.f32 -1.45660715e-05, %v1694_v34 }
 0x499   : > { %v1708_v37 = vmul.f32 %v1703_v60, %v1693_v1  ;;  %v1768_v50 = vmul.f32 %v1763_v28, %v1693_v1  ;;  %v1704_v14 = vadd.f32 2.7706815e-08, %v1699_v49 }
 0x49a   : > { %v1764_v62 = vadd.f32 -0.00021337405, %v1759_v57 }
 0x49b   : > { %v1713_v22 = vadd.f32 -2.101024e-06, %v1708_v37  ;;  %v1773_v10 = vadd.f32 -0.001682827, %v1768_v50  ;;  %v1709_v51 = vmul.f32 %v1704_v14, %v1694_v34 }
 0x49c   : > { %v1769_v23 = vmul.f32 %v1764_v62, %v1694_v34 }
 0x49d   : > { %v1718_v39 = vmul.f32 %v1713_v22, %v1693_v1  ;;  %v1778_v15 = vmul.f32 %v1773_v10, %v1693_v1  ;;  %v1714_v52 = vadd.f32 -2.101024e-06, %v1709_v51 }
 0x49e   : > { %v1774_v59 = vadd.f32 -0.001682827, %v1769_v23 }
 0x49f   : > { %v1723_v53 = vadd.f32 -5.6925062e-05, %v1718_v39  ;;  %v1783_v0 = vadd.f32 -0.0073733293, %v1778_v15  ;;  %v1719_v45 = vmul.f32 %v1714_v52, %v1694_v34 }
 0x4a0   : > { %v1779_v33 = vmul.f32 %v1774_v59, %v1694_v34 }
 0x4a1   : > { %v1728_v36 = vmul.f32 %v1723_v53, %v1693_v1  ;;  %v1788_v2 = vmul.f32 %v1783_v0, %v1693_v1  ;;  %v1724_v40 = vadd.f32 -5.6925062e-05, %v1719_v45 }
 0x4a2   : > { %v1784_v41 = vadd.f32 -0.0073733293, %v1779_v33 }
 0x4a3   : > { %v1733_v60 = vadd.f32 -0.00073499064, %v1728_v36  ;;  %v1793_v28 = vadd.f32 -0.014264739, %v1788_v2  ;;  %v1729_v49 = vmul.f32 %v1724_v40, %v1694_v34  ;;  %v1673_v36 = vmul.f32 0.5, %v1527_v32 }
 0x4a4   : > { %v1789_v57 = vmul.f32 %v1784_v41, %v1694_v34 }
 0x4a5   : > { %v1738_v37 = vmul.f32 %v1733_v60, %v1693_v1  ;;  %3403 = vrcp.f32 %v1793_v28  ;;  %v1734_v50 = vadd.f32 -0.00073499064, %v1729_v49 }
 0x4a6   : > { %v1794_v14 = vadd.f32 -0.014264739, %v1789_v57 }
 0x4a7   : > { %v1743_v62 = vadd.f32 -0.0029546, %v1738_v37  ;;  %v1739_v22 = vmul.f32 %v1734_v50, %v1694_v34 }
 0x4a8   : > { %3405 = vrcp.f32 %v1794_v14 }
 0x4a9   : > { %v1748_v10 = vmul.f32 %v1743_v62, %v1693_v1  ;;  %v1744_v51 = vadd.f32 -0.0029546, %v1739_v22 }
 0x4ab   : > { %v1749_v23 = vmul.f32 %v1744_v51, %v1694_v34  ;;  %v1753_v39 = vadd.f32 -0.016096033, %v1748_v10  ;;  %v1674_v10 = vmul.f32 0.5, %v4673_v63 }
 0x4ad   : > { %v1754_v33 = vadd.f32 -0.016096033, %v1749_v23  ;;  %v1798_v40 = vmul.f32 %v3111_v29, %v1753_v39 }
 0x4ae   : > { %v4676_v15 = vpop.f32.mrf.mxu0 }
 0x4af   : > { %v1680_v0 = vmul.f32 0.70710677, %v4676_v15  ;;  %v1799_v2 = vmul.f32 %v3112_v30, %v1754_v33 }
 0x4b0   : > { %v4679_v45 = vpop.f32.mrf.mxu0 }
 0x4b1   : > { %v4681_v41 = vclamps-f32 %v1680_v0, 4.0  ;;  %v1681_v52 = vmul.f32 0.70710677, %v4679_v45 }
 0x4b2   : > { %v3404_v59 = vpop.eup %3403 }
 0x4b3   : > { %v1808_v53 = vmul.f32 %v3404_v59, %v1798_v40  ;;  %v4686_v1 = vmul.f32 %v4681_v41, %v4681_v41  ;;  %v4688_v34 = vclamps-f32 %v1681_v52, 4.0 }
 0x4b5   : > { %v3406_v60 = vpop.eup %3405  ;;  %v1813_v28 = vadd.f32 1.0, %v1808_v53  ;;  %v1700_v49 = vmul.f32 -2.7261424e-10, %v4686_v1  ;;  %v1760_v29 = vmul.f32 -1.45660715e-05, %v4686_v1  ;;  %v4694_v57 = vmul.f32 %v4688_v34, %v4688_v34 }
 0x4b6   : > { %v1809_v37 = vmul.f32 %v3406_v60, %v1799_v2 }
 0x4b7   : > { %v1818_v50 = vmul.f32 %v1813_v28, %v1673_v36  ;;  %v1705_v14 = vadd.f32 2.7706815e-08, %v1700_v49  ;;  %v1765_v62 = vadd.f32 -0.00021337405, %v1760_v29  ;;  %v1701_v22 = vmul.f32 -2.7261424e-10, %v4694_v57 }
 0x4b8   : > { %v1814_v32 = vadd.f32 1.0, %v1809_v37  ;;  %v1761_v30 = vmul.f32 -1.45660715e-05, %v4694_v57  ;;  %v2133_v37 = vrot.slane %v4669_v58, 4 }
 0x4b9   : > { %v1823_v51 = vmul.f32 %v4197_v19, %v1818_v50  ;;  %v1710_v23 = vmul.f32 %v1705_v14, %v4686_v1  ;;  %v1770_v39 = vmul.f32 %v1765_v62, %v4686_v1  ;;  %v1706_v0 = vadd.f32 2.7706815e-08, %v1701_v22 }
 0x4ba   : > { %v1819_v33 = vmul.f32 %v1814_v32, %v1674_v10  ;;  %v1766_v40 = vadd.f32 -0.00021337405, %v1761_v30  ;;  %v2132_v10 = vrot.slane %v4446_v35, 4 }
 0x4bb   : > { %v1715_v52 = vadd.f32 -2.101024e-06, %v1710_v23  ;;  %v1775_v59 = vadd.f32 -0.001682827, %v1770_v39  ;;  %v1711_v53 = vmul.f32 %v1706_v0, %v4694_v57  ;;  %1833 = vrot.lane.b32.xlu1 %v1823_v51, %s3615_s24 }
 0x4bc   : > { %v1824_v63 = vmul.f32 %v4200_v20, %v1819_v33  ;;  %v1771_v36 = vmul.f32 %v1766_v40, %v4694_v57 }
 0x4bd   : > { %v1720_v2 = vmul.f32 %v1715_v52, %v4686_v1  ;;  %v1780_v60 = vmul.f32 %v1775_v59, %v4686_v1  ;;  %v1716_v28 = vadd.f32 -2.101024e-06, %v1711_v53  ;;  %v4708_v49 = vpop.f32.mrf.mxu1 }
 0x4be   : > { %v1776_v29 = vadd.f32 -0.001682827, %v1771_v36  ;;  %1835 = vrot.lane.b32.xlu0 %v1824_v63, %s3615_s24  ;;  %v1682_v50 = vmul.f32 0.70710677, %v4708_v49  ;;  %v2134_v63 = vsel %vm5385_vm13, %v2132_v10, %v2133_v37  ;;  %vm5392_vm13 = vmmov %vm5389_vm7 }
 0x4bf   : > { %v1725_v14 = vadd.f32 -5.6925062e-05, %v1720_v2  ;;  %v1785_v62 = vadd.f32 -0.0073733293, %v1780_v60  ;;  %v1721_v22 = vmul.f32 %v1716_v28, %v4694_v57  ;;  %v3208_v32 = vpop.f32.mrf.mxu1 }
 0x4c0   : > { %v1781_v30 = vmul.f32 %v1776_v29, %v4694_v57  ;;  %v4716_v51 = vclamps-f32 %v1682_v50, 4.0 }
 0x4c1   : > { %v1730_v23 = vmul.f32 %v1725_v14, %v4686_v1  ;;  %v1790_v39 = vmul.f32 %v1785_v62, %v4686_v1  ;;  %v1726_v0 = vadd.f32 -5.6925062e-05, %v1721_v22 }
 0x4c2   : > { %v1786_v33 = vadd.f32 -0.0073733293, %v1781_v30  ;;  %v1697_v40 = vmul.f32 %v4716_v51, %v4716_v51  ;;  %2094 = vrot.lane.b32.xlu0 %v4412_v42, %s3648_s9 }
 0x4c3   : > { %v1735_v52 = vadd.f32 -0.00073499064, %v1730_v23  ;;  %v1795_v59 = vadd.f32 -0.014264739, %v1790_v39  ;;  %v1731_v53 = vmul.f32 %v1726_v0, %v4694_v57 }
 0x4c4   : > { %v1791_v36 = vmul.f32 %v1786_v33, %v4694_v57  ;;  %v1702_v2 = vmul.f32 -2.7261424e-10, %v1697_v40  ;;  %v1762_v60 = vmul.f32 -1.45660715e-05, %v1697_v40 }
 0x4c5   : > { %v1740_v28 = vmul.f32 %v1735_v52, %v4686_v1  ;;  %3407 = vrcp.f32 %v1795_v59  ;;  %v1736_v29 = vadd.f32 -0.00073499064, %v1731_v53 }
 0x4c6   : > { %v1796_v50 = vadd.f32 -0.014264739, %v1791_v36  ;;  %v1707_v14 = vadd.f32 2.7706815e-08, %v1702_v2  ;;  %v1767_v62 = vadd.f32 -0.00021337405, %v1762_v60  ;;  %2157 = vrot.lane.b32.xlu0 %v2134_v63, %s3631_s13 }
 0x4c7   : > { %v1745_v22 = vadd.f32 -0.0029546, %v1740_v28  ;;  %v1741_v32 = vmul.f32 %v1736_v29, %v4694_v57 }
 0x4c8   : > { %3409 = vrcp.f32 %v1796_v50  ;;  %v1712_v30 = vmul.f32 %v1707_v14, %v1697_v40  ;;  %v1772_v23 = vmul.f32 %v1767_v62, %v1697_v40 }
 0x4c9   : > { %v1750_v37 = vmul.f32 %v1745_v22, %v4686_v1  ;;  %v1746_v39 = vadd.f32 -0.0029546, %v1741_v32 }
 0x4ca   : > { %v1717_v0 = vadd.f32 -2.101024e-06, %v1712_v30  ;;  %v1777_v33 = vadd.f32 -0.001682827, %v1772_v23  ;;  %2145 = vrot.lane.b32.xlu0 %v2132_v10, %s3631_s13  ;;  %v1675_v30 = vmul.f32 0.5, %v4676_v15 }
 0x4cb   : > { %v1751_v52 = vmul.f32 %v1746_v39, %v4694_v57  ;;  %v1755_v36 = vadd.f32 -0.016096033, %v1750_v37 }
 0x4cc   : > { %v1722_v59 = vmul.f32 %v1717_v0, %v1697_v40  ;;  %v1782_v53 = vmul.f32 %v1777_v33, %v1697_v40 }
 0x4cd   : > { %v1756_v60 = vadd.f32 -0.016096033, %v1751_v52  ;;  %v1800_v1 = vmul.f32 %v4681_v41, %v1755_v36  ;;  %v1676_v41 = vmul.f32 0.5, %v4679_v45  ;;  %v5386_v45 = vmov 0.0  }
 0x4ce   : > { %v1727_v2 = vadd.f32 -5.6925062e-05, %v1722_v59  ;;  %v1787_v63 = vadd.f32 -0.0073733293, %v1782_v53  ;;  %2056 = vrot.lane.b32.xlu0 %v4535_v3, %s3651_s16  ;;  %300 = vst.msk [vmem:[#allocation2 + $0x50] sm:$0xff] %vm299_vm14, %v5386_v45  ;;  %vm1857_vm14 = vcmask 986112  }
 0x4cf   : > { %v1801_v10 = vmul.f32 %v4688_v34, %v1756_v60  ;;  %v1677_v60 = vmul.f32 0.5, %v4708_v49 }
 0x4d0   : > { %v1732_v28 = vmul.f32 %v1727_v2, %v1697_v40  ;;  %v1792_v29 = vmul.f32 %v1787_v63, %v1697_v40 }
 0x4d2   : > { %v3408_v50 = vpop.eup %3407  ;;  %v1737_v14 = vadd.f32 -0.00073499064, %v1732_v28  ;;  %v1797_v62 = vadd.f32 -0.014264739, %v1792_v29  ;;  %2016 = vrot.lane.b32.xlu0 %v4412_v42, %s3638_s12  ;;  %v4762_v29 = vpop.permute.xlu0 %2185 }
 0x4d3   : > { %v1810_v57 = vmul.f32 %v3408_v50, %v1800_v1 }
 0x4d4   : > { %v1742_v22 = vmul.f32 %v1737_v14, %v1697_v40  ;;  %3411 = vrcp.f32 %v1797_v62 }
 0x4d5   : > { %v3410_v32 = vpop.eup %3409  ;;  %v1815_v23 = vadd.f32 1.0, %v1810_v57 }
 0x4d6   : > { %v1811_v37 = vmul.f32 %v3410_v32, %v1801_v10  ;;  %v1747_v0 = vadd.f32 -0.0029546, %v1742_v22  ;;  %v4766_v1 = vpop.permute.xlu0 %2141  ;;  %v1917_v32 = vsel %vm5388_vm12, %v4662_v43, %v4660_v27  ;;  %vm5397_vm12 = vmmov %vm5389_vm7 }
 0x4d7   : > { %v1820_v39 = vmul.f32 %v1815_v23, %v1675_v30 }
 0x4d8   : > { %v1816_v33 = vadd.f32 1.0, %v1811_v37  ;;  %v1752_v53 = vmul.f32 %v1747_v0, %v1697_v40 }
 0x4d9   : > { %v1825_v52 = vmul.f32 %v4336_v38, %v1820_v39 }
 0x4da   : > { %v1821_v59 = vmul.f32 %v1816_v33, %v1676_v41  ;;  %v1757_v36 = vadd.f32 -0.016096033, %v1752_v53  ;;  %v4770_v50 = vpop.permute.xlu0 %2201 }
 0x4db   : > { %1837 = vrot.lane.b32.xlu1 %v1825_v52, %s3615_s24 }
 0x4dc   : > { %v1826_v34 = vmul.f32 %v4344_v16, %v1821_v59  ;;  %v1802_v2 = vmul.f32 %v4716_v51, %v1757_v36 }
 0x4de   : > { %1839 = vrot.lane.b32.xlu0 %v1826_v34, %s3615_s24 }
 0x4df   : > { %2189 = vrot.lane.b32.xlu1 %v4446_v35, %s3647_s6 }
 0x4e1   : > { %v3412_v15 = vpop.eup %3411 }
 0x4e2   : > { %v1812_v40 = vmul.f32 %v3412_v15, %v1802_v2 }
 0x4e3   : > { %2096 = vrot.lane.b32.xlu1 %v4426_v44, %s3648_s9 }
 0x4e4   : > { %v1817_v63 = vadd.f32 1.0, %v1812_v40 }
 0x4e6   : > { %v1822_v28 = vmul.f32 %v1817_v63, %v1677_v60 }
 0x4e7   : > { %2110 = vrot.lane.b32.xlu1 %v4669_v58, %s3648_s9  ;;  %v4764_v58 = vpop.permute.xlu1 %2187 }
 0x4e8   : > { %v1827_v51 = vmul.f32 %v4339_v55, %v1822_v28 }
 0x4eb   : > { %2054 = vrot.lane.b32.xlu1 %v4523_v61, %s3651_s16  ;;  %v4768_v49 = vpop.permute.xlu1 %2143 }
 0x4ef   : > { %2098 = vrot.lane.b32.xlu1 %v4446_v35, %s3648_s9 }
 0x4f3   : > { %1841 = vrot.lane.b32.xlu1 %v1827_v51, %s3615_s24 }
 0x4f7   : > { %2018 = vrot.lane.b32.xlu1 %v4426_v44, %s3638_s12 }
 0x52d   : > { %v1834_v14 = vpop.permute.xlu1 %1833 }
 0x52e   : > { %1853 = vst.msk [vmem:[#allocation2 + $0x30] sm:$0xf] %vm1852_vm8, %v1834_v14  ;;  %vm5394_vm8 = vmmov %vm5389_vm7 }
 0x530   : > { %v1836_v35 = vpop.permute.xlu0 %1835 }
 0x531   : > { %v1843_v62 = vsel %vm293_vm0, %v1834_v14, %v1836_v35 }
 0x532   : > { %1854 = vst [vmem:[#allocation2 + $0x38] sm:$0xf] %v1843_v62 }
 0x534   : > { %v4773_v57 = vpop.permute.xlu0 %2094 }
 0x535   : > { %v1865_v10 = vld [vmem:[#allocation2 + $0x30] sm:$0xf] }
 0x536   : > { %2191 = vrot.lane.b32.xlu0 %v1865_v10, %s3647_s6  ;;  %2100 = vrot.lane.b32.xlu1 %v1865_v10, %s3648_s9  ;;  %v4779_v22 = vsel %vm5387_vm10, %v1865_v10, %v4666_v54  ;;  %v1886_v39 = vrot.slane %v1865_v10, 4  ;;  %vm5395_vm10 = vmmov %vm5389_vm7 }
 0x538   : > { %v4784_v23 = vpop.permute.xlu0 %2157  ;;  %v1887_v43 = vsel %vm5390_vm9, %v4473_v56, %v1886_v39  ;;  %vm5398_vm9 = vmmov %vm5389_vm7 }
 0x539   : > { %v1866_v30 = vld [vmem:[#allocation2 + $0x38] sm:$0xf] }
 0x53a   : > { %2020 = vrot.lane.b32.xlu1 %v1865_v10, %s3638_s12  ;;  %2193 = vrot.lane.b32.xlu0 %v1866_v30, %s3647_s6  ;;  %v4789_v37 = vsel %vm5389_vm7, %v1866_v30, %v1917_v32  ;;  %v1888_v36 = vrot.slane %v1866_v30, 4 }
 0x53c   : > { %v4793_v54 = vpop.permute.xlu0 %2145  ;;  %v1889_v63 = vsel %vm5392_vm13, %v4463_v31, %v1888_v36  ;;  %vm5399_vm13 = vmmov %vm5389_vm7 }
 0x53e   : > { %1944 = vrot.lane.b32.xlu1 %v1865_v10, %s3649_s8  ;;  %2102 = vrot.lane.b32.xlu0 %v1866_v30, %s3648_s9 }
 0x540   : > { %v4798_v0 = vpop.permute.xlu0 %2056 }
 0x542   : > { %2147 = vrot.lane.b32.xlu0 %v1887_v43, %s3631_s13 }
 0x544   : > { %v4802_v41 = vpop.permute.xlu0 %2016 }
 0x546   : > { %2022 = vrot.lane.b32.xlu0 %v1866_v30, %s3638_s12 }
 0x54a   : > { %2058 = vrot.lane.b32.xlu0 %v1887_v43, %s3651_s16 }
 0x54d   : > { %v1838_v33 = vpop.permute.xlu1 %1837 }
 0x54e   : > { %v1844_v52 = vsel %vm293_vm0, %v1836_v35, %v1838_v33  ;;  %1946 = vrot.lane.b32.xlu0 %v1866_v30, %s3649_s8 }
 0x54f   : > { %1855 = vst [vmem:[#allocation2 + $0x40] sm:$0xf] %v1844_v52 }
 0x550   : > { %v1840_v59 = vpop.permute.xlu0 %1839 }
 0x551   : > { %v1845_v53 = vsel %vm293_vm0, %v1838_v33, %v1840_v59  ;;  %v4807_v56 = vpop.permute.xlu1 %2189 }
 0x552   : > { %1856 = vst [vmem:[#allocation2 + $0x48] sm:$0xf] %v1845_v53  ;;  %1982 = vrot.lane.b32.xlu0 %v1887_v43, %s3652_s17 }
 0x555   : > { %v2097_v34 = vpop.permute.xlu1 %2096 }
 0x556   : > { %1906 = vrot.lane.b32.xlu0 %v1887_v43, %s3650_s10  ;;  %v4811_v15 = vld [vmem:[#allocation2 + $0x40] sm:$0xf]  ;;  %v4815_v2 = vsel %vm791_vm1, %v4773_v57, %v2097_v34 }
 0x557   : > { %5391 = vst [vmem:[#allocation25_spill] sm:$0xff] %v4811_v15  ;;  %2195 = vrot.lane.b32.xlu1 %v4811_v15, %s3647_s6  ;;  %v1890_v62 = vrot.slane %v4811_v15, 4 }
 0x559   : > { %v4819_v40 = vpop.permute.xlu1 %2110  ;;  %v4839_v35 = vld [vmem:[#allocation2 + $0x48] sm:$0xf]  ;;  %v1891_v10 = vsel %vm5394_vm8, %v4468_v25, %v1890_v62  ;;  %vm5401_vm8 = vmmov %vm5389_vm7 }
 0x55a   : > { %2149 = vrot.lane.b32.xlu0 %v1889_v63, %s3631_s13  ;;  %5393 = vst [vmem:[#allocation26_spill] sm:$0xff] %v4839_v35  ;;  %v1892_v32 = vrot.slane %v4839_v35, 4 }
 0x55b   : > { %2104 = vrot.lane.b32.xlu1 %v4811_v15, %s3648_s9 }
 0x55c   : > { %v1893_v30 = vsel %vm5395_vm10, %v4523_v61, %v1892_v32  ;;  %vm5402_vm10 = vmmov %vm5389_vm7 }
 0x55d   : > { %v4826_v60 = vpop.permute.xlu1 %2054 }
 0x55e   : > { %2060 = vrot.lane.b32.xlu0 %v1889_v63, %s3651_s16 }
 0x55f   : > { %2024 = vrot.lane.b32.xlu1 %v4811_v15, %s3638_s12 }
 0x561   : > { %v2099_v28 = vpop.permute.xlu1 %2098 }
 0x562   : > { %v4832_v51 = vsel %vm791_vm1, %v2097_v34, %v2099_v28  ;;  %1984 = vrot.lane.b32.xlu0 %v1889_v63, %s3652_s17 }
 0x563   : > { %1948 = vrot.lane.b32.xlu1 %v4811_v15, %s3649_s8  ;;  %v2159_v15 = vsel %vm815_vm2, %v4617_v9, %v4611_v48 }
 0x565   : > { %v1842_v31 = vpop.permute.xlu1 %1841 }
 0x566   : > { %v1846_v14 = vsel %vm293_vm0, %v1840_v59, %v1842_v31  ;;  %1908 = vrot.lane.b32.xlu0 %v1889_v63, %s3650_s10 }
 0x567   : > { %1858 = vst.msk [vmem:[#allocation2 + $0x50] sm:$0xf] %vm1857_vm14, %v1846_v14  ;;  %2026 = vrot.lane.b32.xlu1 %v4839_v35, %s3638_s12  ;;  %vm5400_vm14 = vmmov %vm5389_vm7 }
 0x569   : > { %v4892_v53 = vpop.permute.xlu1 %2018 }
 0x56a   : > { %2197 = vrot.lane.b32.xlu0 %v4839_v35, %s3647_s6 }
 0x56b   : > { %2151 = vrot.lane.b32.xlu1 %v1891_v10, %s3631_s13 }
 0x56e   : > { %2106 = vrot.lane.b32.xlu0 %v4839_v35, %s3648_s9  ;;  %v4861_v25 = vld [vmem:[#allocation2 + $0x50] sm:$0xf] }
 0x56f   : > { %2062 = vrot.lane.b32.xlu1 %v1891_v10, %s3651_s16  ;;  %5396 = vst [vmem:[#allocation27_spill] sm:$0xff] %v4861_v25  ;;  %v1894_v39 = vrot.slane %v4861_v25, 4 }
 0x571   : > { %v1895_v43 = vsel %vm5397_vm12, %v4535_v3, %v1894_v39  ;;  %v2203_v39 = vsel %vm838_vm15, %v4608_v7, %v4602_v5  ;;  %vm5403_vm12 = vcmask 1031168  }
 0x572   : > { %1950 = vrot.lane.b32.xlu0 %v4839_v35, %s3649_s8 }
 0x573   : > { %1986 = vrot.lane.b32.xlu1 %v1891_v10, %s3652_s17 }
 0x576   : > { %2153 = vrot.lane.b32.xlu0 %v1893_v30, %s3631_s13 }
 0x577   : > { %1910 = vrot.lane.b32.xlu1 %v1891_v10, %s3650_s10 }
 0x57a   : > { %1988 = vrot.lane.b32.xlu0 %v1893_v30, %s3652_s17 }
 0x57b   : > { %2064 = vrot.lane.b32.xlu1 %v1893_v30, %s3651_s16 }
 0x57e   : > { %2028 = vrot.lane.b32.xlu0 %v4861_v25, %s3638_s12 }
 0x57f   : > { %2199 = vrot.lane.b32.xlu1 %v4861_v25, %s3647_s6  ;;  %s5266_s6 = scalar_lea.hbm %s5315_s5, %s3268_s11 }
 0x582   : > { %2066 = vrot.lane.b32.xlu0 %v1895_v43, %s3651_s16 }
 0x583   : > { %2108 = vrot.lane.b32.xlu1 %v4861_v25, %s3648_s9 }
 0x586   : > { %1978 = vrot.lane.b32.xlu0 %v4523_v61, %s3652_s17 }
 0x587   : > { %1952 = vrot.lane.b32.xlu1 %v4861_v25, %s3649_s8 }
 0x58a   : > { %1940 = vrot.lane.b32.xlu0 %v4412_v42, %s3649_s8 }
 0x58b   : > { %2155 = vrot.lane.b32.xlu1 %v1895_v43, %s3631_s13 }
 0x58e   : > { %1912 = vrot.lane.b32.xlu0 %v1893_v30, %s3650_s10  ;;  %v2204_v30 = vsel %vm838_vm15, %v4602_v5, %v4605_v4 }
 0x58f   : > { %1980 = vrot.lane.b32.xlu1 %v4535_v3, %s3652_s17 }
 0x592   : > { %1902 = vrot.lane.b32.xlu0 %v4523_v61, %s3650_s10 }
 0x593   : > { %1942 = vrot.lane.b32.xlu1 %v4426_v44, %s3649_s8  ;;  %s3655_s8 = smov [#allocation11]  }
 0x597   : > { %1990 = vrot.lane.b32.xlu1 %v1895_v43, %s3652_s17 }
 0x59b   : > { %1914 = vrot.lane.b32.xlu1 %v1895_v43, %s3650_s10 }
 0x59f   : > { %1904 = vrot.lane.b32.xlu1 %v4535_v3, %s3650_s10  ;;  %s3538_s10 = sshll.u32 %s3655_s8, 4  ;;  %s3539_s10 = int_to_ptr.vmem [resolvable:$false] %s3538_s10 }
 0x5a0   : > { %s3540_s16 = scalar_lea.vmem %s3539_s10, 768 }
 0x5a8   : > { %v2192_v42 = vpop.permute.xlu0 %2191  ;;  %v2101_v36 = vpop.permute.xlu1 %2100 }
 0x5ac   : > { %v2194_v33 = vpop.permute.xlu0 %2193  ;;  %v2021_v61 = vpop.permute.xlu1 %2020 }
 0x5ad   : > { %v2208_v10 = vsel %vm838_vm15, %v2192_v42, %v2194_v33 }
 0x5b0   : > { %v2103_v52 = vpop.permute.xlu0 %2102  ;;  %v1945_v44 = vpop.permute.xlu1 %1944 }
 0x5b1   : > { %v2117_v5 = vsel %vm791_vm1, %v2101_v36, %v2103_v52 }
 0x5b2   : > { %v2233_v36 = vsel %vm5400_vm14, %v2117_v5, %v2159_v15 }
 0x5b4   : > { %v2148_v59 = vpop.permute.xlu0 %2147 }
 0x5b8   : > { %v2023_v34 = vpop.permute.xlu0 %2022 }
 0x5bc   : > { %v2059_v63 = vpop.permute.xlu0 %2058 }
 0x5c0   : > { %v1947_v28 = vpop.permute.xlu0 %1946 }
 0x5c4   : > { %v4894_v31 = vpop.permute.xlu0 %1982 }
 0x5c8   : > { %v4896_v14 = vpop.permute.xlu0 %1906 }
 0x5c9   : > { %v4898_v62 = vpop.permute.xlu1 %2195 }
 0x5ca   : > { %v2209_v3 = vsel %vm838_vm15, %v2194_v33, %v4898_v62 }
 0x5cb   : > { %3116 = vmatprep.subr.msk.mxu0 %vm5389_vm7, %v2209_v3  ;;  %vm5404_vm7 = vmmov %vm5403_vm12 }
 0x5cc   : > { %3117 = vmatpush1.msk.msra.mxu0 %vm5398_vm9, %v2208_v10  ;;  %v2150_v32 = vpop.permute.xlu0 %2149  ;;  %vm5405_vm9 = vcmask 900096  }
 0x5cd   : > { %v4911_v43 = vpop.permute.xlu1 %2104  ;;  %2258 = vmatprep.subr.mxu0 %v2204_v30  ;;  %v2160_v30 = vsel %vm815_vm2, %v4611_v48, %v4614_v8  ;;  %vm5407_vm14 = vmmov %vm5405_vm9 }
 0x5ce   : > { %2259 = vmatpush1.msra.mxu0 %v2203_v39  ;;  %v2118_v20 = vsel %vm791_vm1, %v2103_v52, %v4911_v43  ;;  %v2164_v39 = vsel %vm815_vm2, %v2148_v59, %v2150_v32  ;;  %v2113_v59 = vsel %vm791_vm1, %v4620_v11, %v4625_v12 }
 0x5cf   : > { %v2234_v25 = vsel %vm5399_vm13, %v2118_v20, %v2160_v30  ;;  %v2034_v20 = vsel %vm748_vm4, %v2021_v61, %v2023_v34  ;;  %vm5406_vm13 = vmmov %vm5405_vm9 }
 0x5d0   : > { %v2061_v16 = vpop.permute.xlu0 %2060 }
 0x5d1   : > { %v4913_v55 = vpop.permute.xlu1 %2024  ;;  %v2072_v5 = vsel %vm768_vm3, %v2059_v63, %v2061_v16 }
 0x5d2   : > { %v2035_v48 = vsel %vm748_vm4, %v2023_v34, %v4913_v55 }
 0x5d4   : > { %v1985_v42 = vpop.permute.xlu0 %1984 }
 0x5d5   : > { %v4915_v33 = vpop.permute.xlu1 %1948 }
 0x5d6   : > { %v1959_v63 = vsel %vm5403_vm12, %v1947_v28, %v4915_v33  ;;  %vm5412_vm12 = vmmov %vm5404_vm7 }
 0x5d8   : > { %v1909_v3 = vpop.permute.xlu0 %1908 }
 0x5d9   : > { %v4917_v10 = vpop.permute.xlu1 %2026 }
 0x5dc   : > { %v4919_v38 = vpop.permute.xlu0 %2197 }
 0x5dd   : > { %v4923_v19 = vpop.permute.xlu1 %2151 }
 0x5de   : > { %v2165_v7 = vsel %vm815_vm2, %v2150_v32, %v4923_v19  ;;  %v2112_v32 = vsel %vm791_vm1, %v4628_v46, %v4620_v11  ;;  %v2068_v11 = vsel %vm768_vm3, %v4634_v6, %v4630_v26 }
 0x5df   : > { %2260 = vmatprep.subr.mxu0 %v2165_v7  ;;  %v2228_v34 = vsel %vm5402_vm10, %v2034_v20, %v2068_v11  ;;  %vm5409_vm10 = vmmov %vm5401_vm8  ;;  %v5413_v20 = vld [vmem:[#allocation23_spill] sm:$0xff]  ;;  %v2210_v11 = vsel %vm838_vm15, %v4898_v62, %v4919_v38  ;;  %v3423_v62 = vld [vmem:[#allocation2 + $0x8] sm:$0xff] }
 0x5e0   : > { %2261 = vmatpush1.msra.mxu0 %v2164_v39  ;;  %v4935_v35 = vpop.permute.xlu0 %2106  ;;  %v1993_v39 = vsel %vm5406_vm13, %v4644_v24, %v4646_v17  ;;  %vm5416_vm13 = vmmov %vm5401_vm8 }
 0x5e1   : > { %v4938_v52 = vpop.permute.xlu1 %2062  ;;  %2262 = vmatprep.subr.mxu0 %v2234_v25  ;;  %v2069_v25 = vsel %vm768_vm3, %v4630_v26, %v4632_v13  ;;  %v1958_v26 = vsel %vm5404_vm7, %v1945_v44, %v1947_v28  ;;  %v5410_v44 = vld [vmem:[#allocation24_spill] sm:$0xff]  ;;  %vm5414_vm7 = vcmask 1039360  }
 0x5e2   : > { %2263 = vmatpush1.msra.mxu0 %v2233_v36  ;;  %v2073_v15 = vsel %vm768_vm3, %v2061_v16, %v4938_v52  ;;  %v2229_v46 = vsel %vm5401_vm8, %v2035_v48, %v2069_v25  ;;  %v2031_v16 = vsel %vm748_vm4, %v4636_v47, %v4638_v21  ;;  %v1996_v47 = vsel %vm5407_vm14, %v4894_v31, %v1985_v42  ;;  %v5411_v48 = vld [vmem:[#allocation22_spill] sm:$0xff]  ;;  %vm5417_vm14 = vmmov %vm5401_vm8 }
 0x5e3   : > { %2264 = vmatprep.subr.mxu0 %v2113_v59  ;;  %v2224_v59 = vsel %vm5401_vm8, %v1959_v63, %v1993_v39  ;;  %v1955_v24 = vsel %vm5412_vm12, %v5411_v48, %v5410_v44  ;;  %v2162_v39 = vsel %vm815_vm2, %v4766_v1, %v4768_v49  ;;  %vm5420_vm12 = vmmov %vm5401_vm8 }
 0x5e4   : > { %2265 = vmatpush1.msra.mxu0 %v2112_v32  ;;  %v4950_v9 = vpop.permute.xlu0 %1950 }
 0x5e5   : > { %v4958_v7 = vpop.permute.xlu1 %1986  ;;  %2266 = vmatprep.subr.mxu0 %v2073_v15 }
 0x5e6   : > { %2267 = vmatpush1.msra.mxu0 %v2072_v5  ;;  %v1997_v6 = vsel %vm5405_vm9, %v1985_v42, %v4958_v7  ;;  %vm5415_vm9 = vmmov %vm5414_vm7 }
 0x5e7   : > { %2268 = vmatprep.subr.mxu0 %v2229_v46  ;;  %v1920_v15 = vsel %vm5415_vm9, %v4896_v14, %v1909_v3  ;;  %v2206_v14 = vsel %vm838_vm15, %v4762_v29, %v4764_v58  ;;  %v3424_v46 = vld [vmem:[#allocation2] sm:$0xff]  ;;  %vm5424_vm9 = vcmask 900096  }
 0x5e8   : > { %2269 = vmatpush1.msra.mxu0 %v2228_v34  ;;  %v4965_v61 = vpop.permute.xlu0 %2153 }
 0x5e9   : > { %v4972_v30 = vpop.permute.xlu1 %1910  ;;  %2270 = vmatprep.subr.mxu0 %v2031_v16 }
 0x5ea   : > { %2271 = vmatpush1.msra.mxu0 %v4642_v18  ;;  %v5408_v18 = vld [vmem:[#allocation21_spill] sm:$0xff]  ;;  %v1921_v42 = vsel %vm5414_vm7, %v1909_v3, %v4972_v30  ;;  %v5015_v3 = vld [vmem:[%s5313_s3] sm:$0xf] }
 0x5eb   : > { %2272 = vmatprep.subr.mxu0 %v1997_v6  ;;  %v2223_v28 = vsel %vm5409_vm10, %v1958_v26, %v5408_v18  ;;  %v2119_v6 = vsel %vm791_vm1, %v4911_v43, %v4935_v35  ;;  %vm5419_vm10 = vmmov %vm5401_vm8 }
 0x5ec   : > { %2273 = vmatpush1.msra.mxu0 %v1996_v47  ;;  %v4983_v36 = vpop.permute.xlu0 %1988  ;;  %v2163_v47 = vsel %vm815_vm2, %v4768_v49, %v4793_v54 }
 0x5ed   : > { %v4986_v32 = vpop.permute.xlu1 %2064  ;;  %2274 = vmatprep.subr.mxu0 %v2224_v59 }
 0x5ee   : > { %2275 = vmatpush1.msra.mxu0 %v2223_v28 }
 0x5ef   : > { %2276 = vmatprep.subr.mxu0 %v1955_v24 }
 0x5f0   : > { %2277 = vmatpush1.msra.mxu0 %v5413_v20  ;;  %v4994_v31 = vpop.permute.xlu0 %2028 }
 0x5f1   : > { %v2200_v25 = vpop.permute.xlu1 %2199  ;;  %2278 = vmatprep.subr.mxu0 %v1921_v42 }
 0x5f2   : > { %v2211_v5 = vsel %vm838_vm15, %v4919_v38, %v2200_v25  ;;  %2279 = vmatpush1.msra.mxu0 %v1920_v15  ;;  %v2205_v38 = vsel %vm838_vm15, %v4605_v4, %v4762_v29  ;;  %v2212_v34 = vsel %vm838_vm15, %v2200_v25, %v4770_v50  ;;  %v2207_v4 = vsel %vm838_vm15, %v4764_v58, %v4807_v56  ;;  %vm5418_vm15 = vmmov %vm5401_vm8 }
 0x5f3   : > { %2280 = vmatprep.subr.mxu0 %v4789_v37  ;;  %3119 = vmatprep.subr.msk.mxu1 %vm5416_vm13, %v2211_v5  ;;  %vm5425_vm13 = vmmov %vm5424_vm9 }
 0x5f4   : > { %2281 = vmatpush1.msra.mxu0 %v4779_v22  ;;  %3120 = vmatpush1.msk.msra.mxu1 %vm5417_vm14, %v2210_v11  ;;  %v2067_v22 = vpop.permute.xlu0 %2066  ;;  %vm5426_vm14 = vmmov %vm5424_vm9  ;;  %v5438_v11 = vld [vmem:[#allocation27_spill] sm:$0xff] }
 0x5f5   : > { %v2109_v37 = vpop.permute.xlu1 %2108  ;;  %2282 = vmatprep.subr.mxu0 %v3423_v62  ;;  %2329 = vmatprep.subr.mxu1 %v2206_v14  ;;  %v5440_v14 = vld [vmem:[#allocation26_spill] sm:$0xff]  ;;  %v3426_v62 = vld [vmem:[#allocation2 + $0x18] sm:$0xff] }
 0x5f6   : > { %2283 = vmatpush1.msra.mxu0 %v3424_v46  ;;  %2330 = vmatpush1.msra.mxu1 %v2205_v38  ;;  %v2120_v16 = vsel %vm791_vm1, %v4935_v35, %v2109_v37  ;;  %v2121_v63 = vsel %vm791_vm1, %v2109_v37, %v4819_v40  ;;  %v2166_v40 = vsel %vm815_vm2, %v4923_v19, %v4965_v61  ;;  %v3425_v37 = vld [vmem:[#allocation2 + $0x20] sm:$0xff] }
 0x5f7   : > { %3118 = vmatmul.mubr.msk.f32.vlgmr.msra.gmra.mxu0 %vm768_vm3, %v5015_v3  ;;  %3209 = vmatprep.subr.mxu0 %v5386_v45  ;;  %v2236_v35 = vsel %vm5418_vm15, %v2120_v16, %v2162_v39  ;;  %v2237_v43 = vsel %vm5419_vm10, %v2121_v63, %v2163_v47  ;;  %v2114_v19 = vsel %vm791_vm1, %v4625_v12, %v4773_v57  ;;  %vm5421_vm1 = vmmov %vm5401_vm8  ;;  %vm5428_vm15 = vcmask 1031168  }
 0x5f8   : > { %3210 = vmatpush3.msk.msra.mxu0 %vm5401_vm8, %v2212_v34  ;;  %3237 = vmatprep.mubr.msk.f32.mxu0 %vm5374_vm6, %v5386_v45  ;;  %v1979_v50 = vpop.permute.xlu0 %1978  ;;  %v2071_v12 = vsel %vm768_vm3, %v4826_v60, %v4798_v0  ;;  %v2074_v57 = vsel %vm768_vm3, %v4938_v52, %v4986_v32  ;;  %vm5423_vm7 = vmmov %vm5421_vm1 }
 0x5f9   : > { %v5031_v29 = vpop.permute.xlu1 %1952  ;;  %3211 = vmatprep.subr.mxu0 %v5386_v45  ;;  %v1994_v28 = vsel %vm5425_vm13, %v4646_v17, %v1979_v50  ;;  %vm5427_vm8 = vmmov %vm5424_vm9  ;;  %vm5434_vm13 = vcmask 1039360  }
 0x5fa   : > { %3212 = vmatpush3.msra.mxu0 %v2207_v4  ;;  %v1998_v24 = vsel %vm5427_vm8, %v4958_v7, %v4983_v36  ;;  %vm5429_vm10 = vmmov %vm5428_vm15 }
 0x5fb   : > { %3213 = vmatprep.subr.mxu0 %v5386_v45  ;;  %v1960_v17 = vsel %vm5429_vm10, %v4915_v33, %v4950_v9  ;;  %vm5436_vm8 = vmmov %vm5434_vm13 }
 0x5fc   : > { %v1941_v54 = vpop.permute.xlu0 %1940 }
 0x5fd   : > { %v2156_v26 = vpop.permute.xlu1 %2155 }
 0x5fe   : > { %v2168_v58 = vsel %vm815_vm2, %v2156_v26, %v4784_v23  ;;  %v2167_v56 = vsel %vm815_vm2, %v4965_v61, %v2156_v26  ;;  %v2161_v23 = vsel %vm815_vm2, %v4614_v8, %v4766_v1  ;;  %v2037_v8 = vsel %vm748_vm4, %v4917_v10, %v4994_v31  ;;  %vm5422_vm2 = vmmov %vm5421_vm1 }
 0x5ff   : > { %2331 = vmatprep.subr.mxu1 %v2167_v56  ;;  %3214 = vmatpush3.msra.mxu0 %v2168_v58  ;;  %v2235_v49 = vsel %vm5420_vm12, %v2119_v6, %v2161_v23  ;;  %v2036_v1 = vsel %vm748_vm4, %v4913_v55, %v4917_v10  ;;  %v2075_v61 = vsel %vm768_vm3, %v4986_v32, %v2067_v22  ;;  %vm5430_vm12 = vmmov %vm5421_vm1 }
 0x600   : > { %2332 = vmatpush1.msra.mxu1 %v2166_v40  ;;  %3215 = vmatprep.subr.mxu0 %v5386_v45  ;;  %v2070_v55 = vsel %vm768_vm3, %v4632_v13, %v4826_v60  ;;  %v2231_v10 = vsel %vm5422_vm2, %v2037_v8, %v2071_v12  ;;  %v1913_v32 = vpop.permute.xlu0 %1912  ;;  %v2033_v13 = vsel %vm748_vm4, %v4802_v41, %v4892_v53  ;;  %vm5431_vm2 = vmmov %vm5421_vm1 }
 0x601   : > { %v1981_v59 = vpop.permute.xlu1 %1980  ;;  %2333 = vmatprep.subr.mxu1 %v2236_v35  ;;  %3216 = vmatpush3.msra.mxu0 %v2237_v43  ;;  %v2230_v52 = vsel %vm5423_vm7, %v2036_v1, %v2070_v55  ;;  %v2225_v7 = vsel %vm5431_vm2, %v1960_v17, %v1994_v28  ;;  %vm5432_vm7 = vmmov %vm5429_vm10 }
 0x602   : > { %2334 = vmatpush1.msra.mxu1 %v2235_v49  ;;  %3217 = vmatprep.subr.mxu0 %v5386_v45  ;;  %v1995_v60 = vsel %vm5424_vm9, %v1979_v50, %v1981_v59  ;;  %vm5433_vm9 = vmmov %vm5432_vm7 }
 0x603   : > { %2335 = vmatprep.subr.mxu1 %v4815_v2  ;;  %3218 = vmatpush3.msra.mxu0 %v4832_v51  ;;  %v2232_v51 = vsel %vm5421_vm1, %v4994_v31, %v4798_v0  ;;  %v2032_v0 = vsel %vm748_vm4, %v4638_v21, %v4802_v41  ;;  %v1961_v21 = vsel %vm5428_vm15, %v4950_v9, %v5031_v29  ;;  %vm5437_vm15 = vmmov %vm5436_vm8 }
 0x604   : > { %2336 = vmatpush1.msra.mxu1 %v2114_v19  ;;  %3219 = vmatprep.subr.mxu0 %v5386_v45  ;;  %v2227_v41 = vsel %vm5430_vm12, %v5031_v29, %v1981_v59  ;;  %v1956_v33 = vsel %vm5433_vm9, %v5410_v44, %v1941_v54  ;;  %vm5439_vm10 = vmmov %vm5421_vm1 }
 0x605   : > { %v1943_v2 = vpop.permute.xlu1 %1942  ;;  %2337 = vmatprep.subr.mxu1 %v2075_v61  ;;  %3220 = vmatpush3.msra.mxu0 %v2067_v22  ;;  %vm5441_vm12 = vmmov %vm5421_vm1  ;;  %v3427_v22 = vld [vmem:[#allocation2 + $0x10] sm:$0xff] }
 0x606   : > { %2338 = vmatpush1.msra.mxu1 %v2074_v57  ;;  %3221 = vmatprep.subr.mxu0 %v5386_v45  ;;  %v1957_v31 = vsel %vm5432_vm7, %v1941_v54, %v1943_v2 }
 0x607   : > { %2339 = vmatprep.subr.mxu1 %v2231_v10  ;;  %3222 = vmatpush3.msra.mxu0 %v2232_v51 }
 0x608   : > { %2340 = vmatpush1.msra.mxu1 %v2230_v52  ;;  %3223 = vmatprep.subr.mxu0 %v5386_v45 }
 0x609   : > { %v1991_v18 = vpop.permute.xlu1 %1990  ;;  %2341 = vmatprep.subr.mxu1 %v2033_v13  ;;  %3224 = vmatpush3.msra.mxu0 %v4892_v53  ;;  %v2226_v53 = vsel %vm5421_vm1, %v1961_v21, %v1995_v60 }
 0x60a   : > { %2342 = vmatpush1.msra.mxu1 %v2032_v0  ;;  %3225 = vmatprep.subr.mxu0 %v5386_v45  ;;  %v1999_v48 = vsel %vm5426_vm14, %v4983_v36, %v1991_v18  ;;  %v1903_v36 = vpop.permute.xlu0 %1902  ;;  %vm5435_vm14 = vmmov %vm5434_vm13 }
 0x60b   : > { %2343 = vmatprep.subr.mxu1 %v1999_v48  ;;  %3226 = vmatpush3.msra.mxu0 %v1991_v18  ;;  %v1922_v42 = vsel %vm5435_vm14, %v4972_v30, %v1913_v32  ;;  %v1918_v15 = vsel %vm5436_vm8, %v4660_v27, %v1903_v36  ;;  %v5442_v30 = vld [vmem:[#allocation25_spill] sm:$0xff] }
 0x60c   : > { %2344 = vmatpush1.msra.mxu1 %v1998_v24  ;;  %3227 = vmatprep.subr.mxu0 %v5386_v45  ;;  %v2220_v27 = vsel %vm5421_vm1, %v5442_v30, %v1918_v15 }
 0x60d   : > { %v1915_v20 = vpop.permute.xlu1 %1914  ;;  %2345 = vmatprep.subr.mxu1 %v2226_v53  ;;  %3228 = vmatpush3.msra.mxu0 %v2227_v41 }
 0x60e   : > { %2346 = vmatpush1.msra.mxu1 %v2225_v7  ;;  %3229 = vmatprep.subr.mxu0 %v5386_v45  ;;  %v1923_v9 = vsel %vm5434_vm13, %v1913_v32, %v1915_v20 }
 0x60f   : > { %2347 = vmatprep.subr.mxu1 %v1957_v31  ;;  %3230 = vmatpush3.msra.mxu0 %v1943_v2 }
 0x610   : > { %2348 = vmatpush1.msra.mxu1 %v1956_v33  ;;  %3231 = vmatprep.subr.mxu0 %v5386_v45 }
 0x611   : > { %v1905_v25 = vpop.permute.xlu1 %1904  ;;  %2349 = vmatprep.subr.mxu1 %v1923_v9  ;;  %3232 = vmatpush3.msra.mxu0 %v1915_v20 }
 0x612   : > { %v1919_v5 = vsel %vm5437_vm15, %v1903_v36, %v1905_v25  ;;  %v2222_v44 = vsel %vm5439_vm10, %v5438_v11, %v1905_v25  ;;  %2350 = vmatpush1.msra.mxu1 %v1922_v42  ;;  %3233 = vmatprep.subr.mxu0 %v5386_v45 }
 0x613   : > { %3234 = vmatpush3.msra.mxu0 %v2222_v44  ;;  %v2221_v38 = vsel %vm5441_vm12, %v5440_v14, %v1919_v5 }
 0x614   : > { %2351 = vmatprep.subr.mxu1 %v2221_v38  ;;  %3235 = vmatprep.subr.mxu0 %v5386_v45 }
 0x615   : > { %2352 = vmatpush1.msra.mxu1 %v2220_v27  ;;  %3236 = vmatpush3.msra.mxu0 %v3425_v37 }
 0x616   : > { %2353 = vmatprep.subr.mxu1 %v3426_v62  ;;  %3238 = vmatmul.mubr.msk.f32.vlgmr.msra.gmra.mxu0 %vm768_vm3, %v5015_v3 }
 0x617   : > { %2354 = vmatpush1.msra.mxu1 %v3427_v22 }
 0x618   : > { %3121 = vmatmul.mubr.msk.f32.vlgmr.msra.gmra.mxu1 %vm768_vm3, %v5015_v3  ;;  %vm2712_vm3 = vcmask 130048  }
 0x619   : > { %2780 = vmatprep.mubr.f32.mxu1 %v5386_v45 }
 0x6b7   : > { %v5144_v46 = vpop.f32.mrf.mxu0 }
 0x6b8   : > { %v2469_v34 = vmul.f32 0.70710677, %v5144_v46 }
 0x6b9   : > { %v5147_v4 = vpop.f32.mrf.mxu0 }
 0x6ba   : > { %v3124_v29 = vclamps-f32 %v2469_v34, 4.0  ;;  %v2470_v50 = vmul.f32 0.70710677, %v5147_v4 }
 0x6bc   : > { %v2484_v16 = vmul.f32 %v3124_v29, %v3124_v29  ;;  %v3125_v63 = vclamps-f32 %v2470_v50, 4.0 }
 0x6be   : > { %v2489_v26 = vmul.f32 -2.7261424e-10, %v2484_v16  ;;  %v2549_v6 = vmul.f32 -1.45660715e-05, %v2484_v16  ;;  %v2485_v58 = vmul.f32 %v3125_v63, %v3125_v63 }
 0x6c0   : > { %v2494_v56 = vadd.f32 2.7706815e-08, %v2489_v26  ;;  %v2554_v39 = vadd.f32 -0.00021337405, %v2549_v6  ;;  %v2490_v47 = vmul.f32 -2.7261424e-10, %v2485_v58 }
 0x6c1   : > { %v2550_v3 = vmul.f32 -1.45660715e-05, %v2485_v58  ;;  %v2464_v26 = vmul.f32 0.5, %v5144_v46 }
 0x6c2   : > { %v2499_v40 = vmul.f32 %v2494_v56, %v2484_v16  ;;  %v2559_v23 = vmul.f32 %v2554_v39, %v2484_v16  ;;  %v2495_v35 = vadd.f32 2.7706815e-08, %v2490_v47 }
 0x6c3   : > { %v2555_v43 = vadd.f32 -0.00021337405, %v2550_v3  ;;  %v2465_v3 = vmul.f32 0.5, %v5147_v4 }
 0x6c4   : > { %v2504_v59 = vadd.f32 -2.101024e-06, %v2499_v40  ;;  %v2564_v49 = vadd.f32 -0.001682827, %v2559_v23  ;;  %v2500_v54 = vmul.f32 %v2495_v35, %v2485_v58 }
 0x6c5   : > { %v2560_v19 = vmul.f32 %v2555_v43, %v2485_v58 }
 0x6c6   : > { %v2509_v8 = vmul.f32 %v2504_v59, %v2484_v16  ;;  %v2569_v1 = vmul.f32 %v2564_v49, %v2484_v16  ;;  %v2505_v61 = vadd.f32 -2.101024e-06, %v2500_v54  ;;  %v5443_v49 = vld [vmem:[#allocation16_spill] sm:$0xff] }
 0x6c7   : > { %v2565_v12 = vadd.f32 -0.001682827, %v2560_v19 }
 0x6c8   : > { %v2514_v57 = vadd.f32 -5.6925062e-05, %v2509_v8  ;;  %v2574_v2 = vadd.f32 -0.0073733293, %v2569_v1  ;;  %v2510_v55 = vmul.f32 %v2505_v61, %v2485_v58 }
 0x6c9   : > { %v2570_v51 = vmul.f32 %v2565_v12, %v2485_v58 }
 0x6ca   : > { %v2519_v10 = vmul.f32 %v2514_v57, %v2484_v16  ;;  %v2579_v52 = vmul.f32 %v2574_v2, %v2484_v16  ;;  %v2515_v32 = vadd.f32 -5.6925062e-05, %v2510_v55 }
 0x6cb   : > { %v2575_v13 = vadd.f32 -0.0073733293, %v2570_v51 }
 0x6cc   : > { %v2524_v0 = vadd.f32 -0.00073499064, %v2519_v10  ;;  %v2584_v60 = vadd.f32 -0.014264739, %v2579_v52  ;;  %v2520_v18 = vmul.f32 %v2515_v32, %v2485_v58  ;;  %v5444_v52 = vld [vmem:[#allocation17_spill] sm:$0xff] }
 0x6cd   : > { %v2580_v28 = vmul.f32 %v2575_v13, %v2485_v58 }
 0x6ce   : > { %v2529_v48 = vmul.f32 %v2524_v0, %v2484_v16  ;;  %3413 = vrcp.f32 %v2584_v60  ;;  %v2525_v24 = vadd.f32 -0.00073499064, %v2520_v18 }
 0x6cf   : > { %v2585_v21 = vadd.f32 -0.014264739, %v2580_v28 }
 0x6d0   : > { %v2534_v17 = vadd.f32 -0.0029546, %v2529_v48  ;;  %v2530_v41 = vmul.f32 %v2525_v24, %v2485_v58 }
 0x6d1   : > { %3415 = vrcp.f32 %v2585_v21 }
 0x6d2   : > { %v2539_v53 = vmul.f32 %v2534_v17, %v2484_v16  ;;  %v2535_v20 = vadd.f32 -0.0029546, %v2530_v41 }
 0x6d4   : > { %v2540_v7 = vmul.f32 %v2535_v20, %v2485_v58  ;;  %v2544_v36 = vadd.f32 -0.016096033, %v2539_v53 }
 0x6d6   : > { %v5150_v31 = vpop.f32.mrf.mxu0  ;;  %v2545_v9 = vadd.f32 -0.016096033, %v2540_v7  ;;  %v2589_v11 = vmul.f32 %v3124_v29, %v2544_v36 }
 0x6d7   : > { %v2473_v33 = vmul.f32 0.70710677, %v5150_v31 }
 0x6d8   : > { %v5153_v42 = vpop.f32.mrf.mxu1  ;;  %v3239_v15 = vpop.f32.mrf.mxu0  ;;  %v2590_v62 = vmul.f32 %v3125_v63, %v2545_v9 }
 0x6d9   : > { %v5155_v25 = vclamps-f32 %v2473_v33, 4.0  ;;  %v2471_v5 = vmul.f32 0.70710677, %v5153_v42 }
 0x6da   : > { %v5158_v44 = vpop.f32.mrf.mxu1 }
 0x6db   : > { %v3414_v14 = vpop.eup %3413  ;;  %v5162_v38 = vmul.f32 %v5155_v25, %v5155_v25  ;;  %v5164_v30 = vclamps-f32 %v2471_v5, 4.0  ;;  %v2472_v27 = vmul.f32 0.70710677, %v5158_v44 }
 0x6dc   : > { %v2599_v37 = vmul.f32 %v3414_v14, %v2589_v11 }
 0x6dd   : > { %v2493_v22 = vmul.f32 -2.7261424e-10, %v5162_v38  ;;  %v2553_v34 = vmul.f32 -1.45660715e-05, %v5162_v38  ;;  %v5171_v29 = vmul.f32 %v5164_v30, %v5164_v30  ;;  %v5173_v50 = vclamps-f32 %v2472_v27, 4.0 }
 0x6de   : > { %v3416_v16 = vpop.eup %3415  ;;  %v2604_v6 = vadd.f32 1.0, %v2599_v37 }
 0x6df   : > { %v2600_v58 = vmul.f32 %v3416_v16, %v2590_v62  ;;  %v2498_v56 = vadd.f32 2.7706815e-08, %v2493_v22  ;;  %v2558_v39 = vadd.f32 -0.00021337405, %v2553_v34  ;;  %v2491_v47 = vmul.f32 -2.7261424e-10, %v5171_v29 }
 0x6e0   : > { %v2609_v63 = vmul.f32 %v2604_v6, %v2464_v26  ;;  %v2551_v40 = vmul.f32 -1.45660715e-05, %v5171_v29  ;;  %v5181_v23 = vmul.f32 %v5173_v50, %v5173_v50 }
 0x6e1   : > { %v2605_v35 = vadd.f32 1.0, %v2600_v58  ;;  %v2503_v43 = vmul.f32 %v2498_v56, %v5162_v38  ;;  %v2563_v46 = vmul.f32 %v2558_v39, %v5162_v38  ;;  %v2496_v59 = vadd.f32 2.7706815e-08, %v2491_v47 }
 0x6e2   : > { %v2614_v54 = vmul.f32 %v5443_v49, %v2609_v63  ;;  %v2556_v19 = vadd.f32 -0.00021337405, %v2551_v40  ;;  %v2492_v8 = vmul.f32 -2.7261424e-10, %v5181_v23  ;;  %v2552_v1 = vmul.f32 -1.45660715e-05, %v5181_v23 }
 0x6e3   : > { %v2610_v4 = vmul.f32 %v2605_v35, %v2465_v3  ;;  %v2508_v61 = vadd.f32 -2.101024e-06, %v2503_v43  ;;  %v2568_v12 = vadd.f32 -0.001682827, %v2563_v46  ;;  %v2501_v57 = vmul.f32 %v2496_v59, %v5171_v29 }
 0x6e4   : > { %v2624_v2 = vrot.slane %v2614_v54, 4  ;;  %v2561_v55 = vmul.f32 %v2556_v19, %v5171_v29  ;;  %v2497_v51 = vadd.f32 2.7706815e-08, %v2492_v8  ;;  %v2557_v10 = vadd.f32 -0.00021337405, %v2552_v1 }
 0x6e5   : > { %v2615_v32 = vmul.f32 %v5444_v52, %v2610_v4  ;;  %v2513_v13 = vmul.f32 %v2508_v61, %v5162_v38  ;;  %v2573_v0 = vmul.f32 %v2568_v12, %v5162_v38  ;;  %v2506_v60 = vadd.f32 -2.101024e-06, %v2501_v57 }
 0x6e6   : > { %v2566_v18 = vadd.f32 -0.001682827, %v2561_v55  ;;  %v2502_v28 = vmul.f32 %v2497_v51, %v5181_v23  ;;  %v2562_v48 = vmul.f32 %v2557_v10, %v5181_v23  ;;  %2629 = vrot.lane.b32.xlu0 %v2624_v2, %s3615_s24  ;;  %v2466_v10 = vmul.f32 0.5, %v5153_v42  ;;  %v2655_v42 = vld [vmem:[#allocation2 + $0x10] sm:$0xff] }
 0x6e7   : > { %v2625_v24 = vrot.slane %v2615_v32, 4  ;;  %v2518_v21 = vadd.f32 -5.6925062e-05, %v2513_v13  ;;  %v2578_v17 = vadd.f32 -0.0073733293, %v2573_v0  ;;  %v2511_v41 = vmul.f32 %v2506_v60, %v5171_v29  ;;  %v5445_v60 = vld [vmem:[#allocation18_spill] sm:$0xff] }
 0x6e8   : > { %v2571_v53 = vmul.f32 %v2566_v18, %v5171_v29  ;;  %v2507_v20 = vadd.f32 -2.101024e-06, %v2502_v28  ;;  %v2567_v7 = vadd.f32 -0.001682827, %v2562_v48  ;;  %v5446_v28 = vld [vmem:[#allocation19_spill] sm:$0xff] }
 0x6e9   : > { %v2523_v36 = vmul.f32 %v2518_v21, %v5162_v38  ;;  %v2583_v33 = vmul.f32 %v2578_v17, %v5162_v38  ;;  %v2516_v9 = vadd.f32 -5.6925062e-05, %v2511_v41  ;;  %2631 = vrot.lane.b32.xlu1 %v2625_v24, %s3615_s24  ;;  %v5447_v21 = vld [vmem:[#allocation20_spill] sm:$0xff] }
 0x6ea   : > { %v2576_v15 = vadd.f32 -0.0073733293, %v2571_v53  ;;  %v2512_v5 = vmul.f32 %v2507_v20, %v5181_v23  ;;  %v2572_v11 = vmul.f32 %v2567_v7, %v5181_v23  ;;  %v2653_v41 = vld [vmem:[#allocation2] sm:$0xff] }
 0x6eb   : > { %v2528_v14 = vadd.f32 -0.00073499064, %v2523_v36  ;;  %v2588_v27 = vadd.f32 -0.014264739, %v2583_v33  ;;  %v2521_v37 = vmul.f32 %v2516_v9, %v5171_v29 }
 0x6ec   : > { %v2581_v62 = vmul.f32 %v2576_v15, %v5171_v29  ;;  %v2517_v22 = vadd.f32 -5.6925062e-05, %v2512_v5  ;;  %v2577_v34 = vadd.f32 -0.0073733293, %v2572_v11 }
 0x6ed   : > { %v2533_v16 = vmul.f32 %v2528_v14, %v5162_v38  ;;  %3417 = vrcp.f32 %v2588_v27  ;;  %v2526_v26 = vadd.f32 -0.00073499064, %v2521_v37 }
 0x6ee   : > { %v2586_v6 = vadd.f32 -0.014264739, %v2581_v62  ;;  %v2522_v58 = vmul.f32 %v2517_v22, %v5181_v23  ;;  %v2582_v56 = vmul.f32 %v2577_v34, %v5181_v23  ;;  %v2656_v34 = vld [vmem:[#allocation2 + $0x18] sm:$0xff] }
 0x6ef   : > { %v2538_v39 = vadd.f32 -0.0029546, %v2533_v16  ;;  %v2531_v47 = vmul.f32 %v2526_v26, %v5171_v29  ;;  %v2657_v16 = vld [vmem:[#allocation2 + $0x20] sm:$0xff] }
 0x6f0   : > { %3419 = vrcp.f32 %v2586_v6  ;;  %v2527_v63 = vadd.f32 -0.00073499064, %v2522_v58  ;;  %v2587_v3 = vadd.f32 -0.014264739, %v2582_v56 }
 0x6f1   : > { %v2543_v40 = vmul.f32 %v2538_v39, %v5162_v38  ;;  %v2536_v35 = vadd.f32 -0.0029546, %v2531_v47 }
 0x6f2   : > { %v2532_v43 = vmul.f32 %v2527_v63, %v5181_v23  ;;  %3421 = vrcp.f32 %v2587_v3 }
 0x6f3   : > { %v2541_v46 = vmul.f32 %v2536_v35, %v5171_v29  ;;  %v2548_v49 = vadd.f32 -0.016096033, %v2543_v40  ;;  %v2468_v29 = vmul.f32 0.5, %v5150_v31 }
 0x6f4   : > { %v2537_v59 = vadd.f32 -0.0029546, %v2532_v43  ;;  %v2663_v43 = vld [vmem:[#allocation9] sm:$0xf] }
 0x6f5   : > { %v2546_v19 = vadd.f32 -0.016096033, %v2541_v46  ;;  %v2593_v8 = vmul.f32 %v5155_v25, %v2548_v49  ;;  %v2467_v25 = vmul.f32 0.5, %v5158_v44  ;;  %v2654_v44 = vld [vmem:[#allocation2 + $0x8] sm:$0xff] }
 0x6f6   : > { %v2542_v54 = vmul.f32 %v2537_v59, %v5181_v23 }
 0x6f7   : > { %v2591_v12 = vmul.f32 %v5164_v30, %v2546_v19 }
 0x6f8   : > { %v2547_v4 = vadd.f32 -0.016096033, %v2542_v54 }
 0x6fa   : > { %v3418_v1 = vpop.eup %3417  ;;  %v2592_v55 = vmul.f32 %v5173_v50, %v2547_v4 }
 0x6fb   : > { %v2603_v61 = vmul.f32 %v3418_v1, %v2593_v8 }
 0x6fd   : > { %v3420_v57 = vpop.eup %3419  ;;  %v2608_v38 = vadd.f32 1.0, %v2603_v61 }
 0x6fe   : > { %v2601_v2 = vmul.f32 %v3420_v57, %v2591_v12 }
 0x6ff   : > { %v3422_v51 = vpop.eup %3421  ;;  %v2613_v32 = vmul.f32 %v2608_v38, %v2468_v29 }
 0x700   : > { %v2606_v52 = vadd.f32 1.0, %v2601_v2  ;;  %v2602_v23 = vmul.f32 %v3422_v51, %v2592_v55 }
 0x701   : > { %v2618_v48 = vmul.f32 %v5446_v28, %v2613_v32 }
 0x702   : > { %v2611_v13 = vmul.f32 %v2606_v52, %v2466_v10  ;;  %v2607_v0 = vadd.f32 1.0, %v2602_v23 }
 0x703   : > { %v2628_v31 = vrot.slane %v2618_v48, 4 }
 0x704   : > { %v2616_v18 = vmul.f32 %v5445_v60, %v2611_v13  ;;  %v2612_v30 = vmul.f32 %v2607_v0, %v2467_v25 }
 0x706   : > { %v2626_v24 = vrot.slane %v2616_v18, 4  ;;  %v2617_v50 = vmul.f32 %v5447_v21, %v2612_v30 }
 0x708   : > { %v2627_v17 = vrot.slane %v2617_v50, 4  ;;  %2633 = vrot.lane.b32.xlu0 %v2626_v24, %s3615_s24 }
 0x70a   : > { %2635 = vrot.lane.b32.xlu1 %v2627_v17, %s3615_s24 }
 0x70c   : > { %2637 = vrot.lane.b32.xlu0 %v2628_v31, %s3615_s24  ;;  %s3247_s24 = smul.u32 24, %s3830_s27 }
 0x70e   : > { %2678 = vrot.lane.b32.xlu1 %v2655_v42, %s3638_s12 }
 0x710   : > { %2676 = vrot.lane.b32.xlu0 %v2654_v44, %s3638_s12 }
 0x714   : > { %2674 = vrot.lane.b32.xlu0 %v2653_v41, %s3638_s12 }
 0x758   : > { %v2630_v53 = vpop.permute.xlu0 %2629 }
 0x759   : > { %2648 = vst.msk [vmem:[#allocation2 + $0x30] sm:$0xf0] %vm1276_vm5, %v2630_v53  ;;  %vm5448_vm5 = vmmov %vm5421_vm1 }
 0x75b   : > { %v2632_v20 = vpop.permute.xlu1 %2631 }
 0x75c   : > { %v2639_v7 = vsel %vm293_vm0, %v2630_v53, %v2632_v20 }
 0x75d   : > { %2649 = vst [vmem:[#allocation2 + $0x38] sm:$0xf0] %v2639_v7 }
 0x760   : > { %v2658_v36 = vld [vmem:[#allocation2 + $0x30] sm:$0xff] }
 0x761   : > { %2684 = vrot.lane.b32.xlu1 %v2658_v36, %s3638_s12 }
 0x764   : > { %v2659_v33 = vld [vmem:[#allocation2 + $0x38] sm:$0xff] }
 0x765   : > { %2686 = vrot.lane.b32.xlu1 %v2659_v33, %s3638_s12 }
 0x77a   : > { %v2634_v9 = vpop.permute.xlu0 %2633 }
 0x77b   : > { %v2640_v15 = vsel %vm293_vm0, %v2632_v20, %v2634_v9 }
 0x77c   : > { %2650 = vst [vmem:[#allocation2 + $0x40] sm:$0xf0] %v2640_v15  ;;  %v2636_v5 = vpop.permute.xlu1 %2635 }
 0x77d   : > { %v2641_v11 = vsel %vm293_vm0, %v2634_v9, %v2636_v5 }
 0x77e   : > { %2651 = vst [vmem:[#allocation2 + $0x48] sm:$0xf0] %v2641_v11  ;;  %v2638_v14 = vpop.permute.xlu0 %2637 }
 0x77f   : > { %v2642_v27 = vsel %vm293_vm0, %v2636_v5, %v2638_v14  ;;  %vm2946_vm0 = vcmask 474112  }
 0x780   : > { %2652 = vst.msk [vmem:[#allocation2 + $0x50] sm:$0xf0] %vm1281_vm11, %v2642_v27  ;;  %v2679_v26 = vpop.permute.xlu1 %2678 }
 0x782   : > { %v2677_v6 = vpop.permute.xlu0 %2676 }
 0x783   : > { %v2660_v37 = vld [vmem:[#allocation2 + $0x40] sm:$0xff]  ;;  %v2695_v35 = vsel %vm748_vm4, %v2677_v6, %v2679_v26 }
 0x784   : > { %2688 = vrot.lane.b32.xlu0 %v2660_v37, %s3638_s12 }
 0x785   : > { %v2661_v62 = vld [vmem:[#allocation2 + $0x48] sm:$0xff] }
 0x786   : > { %2690 = vrot.lane.b32.xlu1 %v2661_v62, %s3638_s12  ;;  %v2675_v56 = vpop.permute.xlu0 %2674 }
 0x787   : > { %v2662_v22 = vld [vmem:[#allocation2 + $0x50] sm:$0xff]  ;;  %v2694_v46 = vsel %vm748_vm4, %v2675_v56, %v2677_v6 }
 0x788   : > { %2692 = vrot.lane.b32.xlu0 %v2662_v22, %s3638_s12 }
 0x78a   : > { %2680 = vrot.lane.b32.xlu1 %v2656_v34, %s3638_s12 }
 0x78c   : > { %2682 = vrot.lane.b32.xlu0 %v2657_v16, %s3638_s12  ;;  %s281_s12 = scalar_lea.vmem [#allocation11], %s3247_s24 }
 0x78d   : > { %s2968_s26 = sshll.u32 %s281_s12, 4  ;;  %s5260_s26 = int_to_ptr.vmem [resolvable:$true] %s2968_s26 }
 0x78e   : > { %s3534_s9 = scalar_lea.vmem %s5260_s26, 384  ;;  %p3541_p13 = scmp.lt.s32.totalorder %s5260_s26, %s3539_s10 }
 0x78f   : > { %p3535_p12 = scmp.ne.s32.totalorder %s5260_s26, %s3534_s9  ;;  %p3542_p0 = scmp.lt.s32.totalorder %s3540_s16, %s3534_s9 }
 0x791   : > { %p3536_p7 = pnand %p3535_p12, %p5449_p5  ;;  %p3543_p1 = por %p3542_p0, %p3541_p13 }
 0x793   : > { %p3537_p10 = pneg %p3536_p7 }
 0x795   : > { %p3544_p3 = pnand %p3543_p1, %p3537_p10 }
 0x7d3   : > { %v2685_v58 = vpop.permute.xlu1 %2684 }
 0x7d7   : > { %v2687_v39 = vpop.permute.xlu1 %2686 }
 0x7d8   : > { %v2698_v3 = vsel %vm748_vm4, %v2685_v58, %v2687_v39 }
 0x7f6   : > { %v2689_v47 = vpop.permute.xlu0 %2688 }
 0x7f7   : > { %v2699_v63 = vsel %vm748_vm4, %v2687_v39, %v2689_v47 }
 0x7f8   : > { %v2691_v40 = vpop.permute.xlu1 %2690  ;;  %2744 = vmatprep.subr.mxu1 %v2699_v63 }
 0x7f9   : > { %2745 = vmatpush1.msra.mxu1 %v2698_v3  ;;  %v2700_v54 = vsel %vm748_vm4, %v2689_v47, %v2691_v40 }
 0x7fa   : > { %2746 = vmatprep.subr.mxu1 %v2695_v35  ;;  %v2693_v59 = vpop.permute.xlu0 %2692 }
 0x7fb   : > { %2747 = vmatpush1.msra.mxu1 %v2694_v46  ;;  %v2701_v49 = vsel %vm748_vm4, %v2691_v40, %v2693_v59 }
 0x7fc   : > { %3129 = vmatmul.mubr.msk.f32.vlgmr.msra.gmra.mxu1 %vm2712_vm3, %v2663_v43  ;;  %2815 = vmatprep.subr.mxu1 %v2701_v49  ;;  %v2681_v19 = vpop.permute.xlu1 %2680 }
 0x7fd   : > { %2816 = vmatpush1.msra.mxu1 %v2700_v54  ;;  %2851 = vmatprep.mubr.f32.mxu1 %v5386_v45  ;;  %v2696_v4 = vsel %vm748_vm4, %v2679_v26, %v2681_v19 }
 0x7fe   : > { %v2683_v8 = vpop.permute.xlu0 %2682 }
 0x7ff   : > { %v2697_v1 = vsel %vm748_vm4, %v2681_v19, %v2683_v8  ;;  %vm2934_vm4 = vcmask 257024  }
 0x800   : > { %2817 = vmatprep.subr.mxu1 %v2697_v1 }
 0x801   : > { %2818 = vmatpush1.msra.mxu1 %v2696_v4 }
 0x802   : > { %3130 = vmatmul.mubr.msk.f32.vlgmr.msra.gmra.mxu1 %vm2712_vm3, %v2663_v43  ;;  %3240 = vmatprep.subr.mxu1 %v5386_v45 }
 0x803   : > { %3241 = vmatpush3.msra.mxu1 %v2693_v59  ;;  %3244 = vmatprep.mubr.msk.f32.mxu1 %vm5374_vm6, %v5386_v45 }
 0x804   : > { %3242 = vmatprep.subr.mxu1 %v5386_v45 }
 0x805   : > { %3243 = vmatpush3.msra.mxu1 %v2683_v8 }
 0x806   : > { %3245 = vmatmul.mubr.msk.f32.vlgmr.msra.gmra.mxu1 %vm2712_vm3, %v2663_v43 }
 0x8bc   : > { %v2782_v61 = vpop.f32.mrf.mxu1 }
 0x8bd   : > { %v2783_v57 = vadd.f32 %v2782_v61, %v2694_v46 }
 0x8be   : > { %v2784_v12 = vpop.f32.mrf.mxu1 }
 0x8bf   : > { %v2785_v38 = vadd.f32 %v2784_v12, %v2695_v35 }
 0x8c1   : > { %v2931_v2 = vcombine.low %v2783_v57, %v2785_v38 }
 0x8c2   : > { %v2853_v55 = vpop.f32.mrf.mxu1 }
 0x8c3   : > { %2933 = vst [vmem:[%s281_s12] sm:$0xff] %v2931_v2  ;;  %v2854_v51 = vadd.f32 %v2853_v55, %v2696_v4 }
 0x8c4   : > { %v2855_v29 = vpop.f32.mrf.mxu1 }
 0x8c5   : > { %v2856_v10 = vadd.f32 %v2855_v29, %v2697_v1  ;;  %2935 = vst.msk [vmem:[%s281_s12 + $0x8] sm:$0xf] %vm2934_vm4, %v2854_v51 }
 0x8c6   : > { %v2924_v45 = vpop.f32.mrf.mxu1 }
 0x8c7   : > { %v2938_v52 = vcombine.low %v2854_v51, %v2856_v10  ;;  %v2925_v23 = vadd.f32 %v2924_v45, %v2683_v8 }
 0x8c8   : > { %v3246_v32 = vpop.f32.mrf.mxu1 }
 0x8c9   : > { %2941 = vrot.lane.b32.xlu0 %v2925_v23, %s3654_s7  ;;  %2939 = vrot.lane.b32.xlu1 %v2938_v52, %s3654_s7 }
 0x93b   : > { %v2942_v13 = vpop.permute.xlu0 %2941  ;;  %v2940_v25 = vpop.permute.xlu1 %2939 }
 0x93c   : > { %v2944_v0 = vrot.slane %v2942_v13, 4  ;;  %3133 = vst.msk [vmem:[%s281_s12 + $0x14] sm:$0xf] %vm2934_vm4, %v2942_v13  ;;  %v2943_v60 = vrot.slane %v2940_v25, 4 }
 0x93e   : > { %v2945_v18 = vsel %vm5448_vm5, %v2943_v60, %v2944_v0 }
 0x93f   : > { %v2947_v30 = vsel %vm2946_vm0, %v2940_v25, %v2945_v18 }
 0x940   : > { %3132 = vst [vmem:[%s281_s12 + $0xc] sm:$0xff] %v2947_v30 }
 0x941   : > { %3547 = shalt.err (!%p3544_p3)
}
 0x942   : > { %s3548_s17 = scalar_lea.hbm %s5266_s6, 384  ;;  %s3552_s24 = scalar_lea.hbm %s5315_s5, 768 }
 0x943   : > { %p3549_p2 = scmp.ne.s32.totalorder %s5266_s6, %s3548_s17  ;;  %p3553_p4 = scmp.lt.s32.totalorder %s5266_s6, %s5315_s5 }
 0x944   : > { %p3554_p6 = scmp.lt.s32.totalorder %s3552_s24, %s3548_s17 }
 0x945   : > { %p3550_p9 = pnand %p3549_p2, %p5449_p5 }
 0x946   : > { %p3555_p8 = por %p3554_p6, %p3553_p4 }
 0x947   : > { %p3551_p11 = pneg %p3550_p9 }
 0x949   : > { %p3556_p12 = pnand %p3555_p8, %p3551_p11 }
 0x94b   : > { %3559 = shalt.err (!%p3556_p12)
}
 0x94c   : > { %s3656_s11 = smov 192   ;;  %s3657_s14 = smov 12  }
 0x94d   : > { %3283 = dma.vmem_to_hbm [thread:$0]  (%p5449_p5), %s5260_s26, 384, %s5266_s6, %s2954_s22, %s3656_s11, %s3656_s11, %s3657_s14  }
 0x94e PF: > { %s2983_s15 = sand.u32 1, %s3594_s18   ;;  %p5450_p7 = scmp.ne.s32.totalorder %s5339_s25, 0 }
 0x94f   : > { %p5451_p10 = scmp.ge.s32.totalorder %s3606_s21, 2  ;;  %s2984_s9 = scalar_lea.sflag [#allocation5], %s2983_s15 }
 0x951   : > { %p3300_p13 = pnand %p5451_p10, %p5450_p7 }
 0x953   : > { %p3301_p0 = pneg %p3300_p13 }
 0x955   : > { %3589 = dma.done.wait (%p3301_p0), %s2984_s9, 384  }
 0x956   : > { %3591 = vsyncadd (%p3301_p0), %s2984_s9, 4294966912  ;;  %p20_p1 = scmp.ge.s32.totalorder %s3775_s23, 4   ;;  %s5452_s18 = smov %s3598_s19 }
 0x957   : > { %s5453_s19 = smov %s3602_s20  ;;  %s5454_s20 = smov %s3785_s29 }
 0x958   : > { %s5455_s21 = smov %s3775_s23  ;;  %22 = sbr.rel (!%p20_p1) target bundleno = 7 (0x7), region = 98 }
 0x95d   :  { %2989 = vsyncpa [#allocation4], 1 }
 0x95e   :  { %2991 = vsyncpa [#allocation4 + $0x1], 1 }
 0x95f   :  { %2992 = vsyncpa [#allocation7], 1 }
 0x960   :  { %2993 = vsyncpa [#allocation10], 1 }
 0x961   :  { %2994 = vsyncpa [#allocation5], 1 }
 0x962   :  { %2996 = vsyncpa [#allocation5 + $0x1], 1 }

</bundles_post_ra>
